<compile_context>
chip_gen: v5e
topology: v5e:2x2
jax: 0.10.0
libtpu: 0.0.40
codegen_flags: <defaults>
</compile_context>

<pallas_src>
import functools

import jax
import jax.numpy as jnp
import numpy as np
from jax.experimental import pallas as pl
from jax.experimental.pallas import tpu as pltpu  # noqa: F401


# ----------------------------- in-kernel helpers ----------------------------

def _erf(x):
    # Exact-GELU semantics (PyTorch nn.GELU default): erf via the
    # Abramowitz & Stegun 7.1.26 rational approximation (|err| < 1.5e-7).
    p = 0.3275911
    a1, a2, a3, a4, a5 = (0.254829592, -0.284496736, 1.421413741,
                          -1.453152027, 1.061405429)
    s = jnp.where(x >= 0.0, 1.0, -1.0)
    ax = jnp.abs(x)
    t = 1.0 / (1.0 + p * ax)
    poly = ((((a5 * t + a4) * t + a3) * t + a2) * t + a1) * t
    return s * (1.0 - poly * jnp.exp(-ax * ax))


def _gelu(x):
    return 0.5 * x * (1.0 + _erf(x * (2.0 ** -0.5)))


def _layernorm(x, w, b, eps=1e-5):
    mu = jnp.mean(x, axis=-1, keepdims=True)
    var = jnp.mean((x - mu) ** 2, axis=-1, keepdims=True)
    return (x - mu) * jax.lax.rsqrt(var + eps) * w + b


# ------------------------------- fused kernel -------------------------------

def fused_forward_kernel(*refs):
    """Whole network in a single kernel invocation.  All activations live in
    VMEM/vregs; the only HBM traffic is the operand load and the tiny
    (B, num_classes) logits store."""
    f32, bf16 = jnp.float32, jnp.bfloat16

    (xp_ref, wpat_ref, posb_ref) = refs[0:3]
    stage1_refs = refs[3:20]
    (sel_ref, wd_ref, bd_ref) = refs[20:23]
    stage2_refs = refs[23:40]
    (pool_ref, wcls_ref, bcls_ref) = refs[40:43]
    o_ref = refs[-1]

    def block(x, brefs):
        (ln1w, ln1b, wq, wk, wv, bq, bk, bv, wproj, bproj, mask,
         ln2w, ln2b, wfc1, bfc1, wfc2, bfc2) = brefs
        num_heads = wq.shape[0]

        # --- LayerNorm 1 + multi-head attention ---------------------------
        # Heads handled via host-side weight splits (no unaligned activation
        # slices / concat); batch separation via additive block-diag mask.
        xn = _layernorm(x, ln1w[...], ln1b[...])
        xn_b = xn.astype(bf16)
        mask_v = mask[...]
        acc = None
        for h in range(num_heads):             # static unroll (3 / 6 heads)
            q = jnp.dot(xn_b, wq[h], preferred_element_type=f32) + bq[h]
            k = jnp.dot(xn_b, wk[h], preferred_element_type=f32) + bk[h]
            v = jnp.dot(xn_b, wv[h], preferred_element_type=f32) + bv[h]
            s = jax.lax.dot_general(q.astype(bf16), k.astype(bf16),
                                    (((1,), (1,)), ((), ())),
                                    preferred_element_type=f32)
            s = s + mask_v                     # -1e30 across batch boundary
            s = s - jnp.max(s, axis=-1, keepdims=True)
            e = jnp.exp(s)
            p = e * pl.reciprocal(jnp.sum(e, axis=-1, keepdims=True),
                                  approx=True)
            av = jnp.dot(p.astype(bf16), v.astype(bf16),
                         preferred_element_type=f32)
            ho = jnp.dot(av.astype(bf16), wproj[h],
                         preferred_element_type=f32)
            acc = ho if acc is None else acc + ho
        x1 = x + acc + bproj[...]

        # --- LayerNorm 2 + MLP (Linear -> GELU -> Linear), dropout p=0 -----
        xn2 = _layernorm(x1, ln2w[...], ln2b[...])
        h1 = jnp.dot(xn2.astype(bf16), wfc1[...],
                     preferred_element_type=f32) + bfc1[...]
        h1 = _gelu(h1)
        h2 = jnp.dot(h1.astype(bf16), wfc2[...],
                     preferred_element_type=f32) + bfc2[...]
        return x1 + h2

    # patch_embed (Conv k=p,s=p as matmul over host-side im2col rows)
    # + positional embedding (conv bias pre-folded into posb on host).
    x = (jnp.dot(xp_ref[...].astype(bf16), wpat_ref[...],
                 preferred_element_type=f32)
         + posb_ref[...])                                     # (B*N1, E)

    x = block(x, stage1_refs)                                 # stage 1

    # downsample Conv2d(E, 2E, k=2, s=2): 4 taps, each = (token gather)@W_tap
    acc = None
    for kpos in range(4):                                     # static unroll
        xsel = jnp.dot(sel_ref[kpos], x,
                       preferred_element_type=f32)            # exact 0/1 gather
        t = jnp.dot(xsel.astype(bf16), wd_ref[kpos],
                    preferred_element_type=f32)
        acc = t if acc is None else acc + t
    x = acc + bd_ref[...]                                     # (B*N2, 2E)

    x = block(x, stage2_refs)                                 # stage 2

    # AdaptiveAvgPool2d(1) (per-sample token mean) + classifier
    pooled = jnp.dot(pool_ref[...], x, preferred_element_type=f32)   # (B, 2E)
    logits = (jnp.dot(pooled.astype(bf16), wcls_ref[...],
                      preferred_element_type=f32) + bcls_ref[...])
    o_ref[...] = logits.astype(o_ref.dtype)


# --------------------------- host-side constants -----------------------------

def _block_diag_mask(batch, n_tok):
    m = np.full((batch * n_tok, batch * n_tok), -1e30, np.float32)
    for b in range(batch):
        m[b * n_tok:(b + 1) * n_tok, b * n_tok:(b + 1) * n_tok] = 0.0
    return jnp.asarray(m)


def _downsample_sel(batch, hp, wp):
    # sel[kpos] @ x_tokens gathers, per output token, the (kh,kw) tap of its
    # 2x2 input patch; kpos = kh*2 + kw.  Block-diagonal over the batch.
    h2, w2 = hp // 2, wp // 2
    n1, n2 = hp * wp, h2 * w2
    sel = np.zeros((4, batch * n2, batch * n1), np.float32)
    for b in range(batch):
        for kh in range(2):
            for kw in range(2):
                kpos = kh * 2 + kw
                for i in range(h2):
                    for j in range(w2):
                        sel[kpos, b * n2 + i * w2 + j,
                            b * n1 + (2 * i + kh) * wp + (2 * j + kw)] = 1.0
    return jnp.asarray(sel)


def _pool_matrix(batch, n_tok):
    p = np.zeros((batch, batch * n_tok), np.float32)
    for b in range(batch):
        p[b, b * n_tok:(b + 1) * n_tok] = 1.0 / n_tok
    return jnp.asarray(p)


def prepare_inputs(params, batch, *, grid_hw=(4, 4)):
    """One-time host transform of the PyTorch-layout params into the flat,
    kernel-ready operand list: per-head weight splits (1/sqrt(dh) folded into
    Wq/bq), transposed matmul weights cast to bf16, patch-embed bias folded
    into the positional embedding, and the gather / mask / pool constants."""
    f32, bf16 = jnp.float32, jnp.bfloat16
    E = params['patch_w'].shape[0]
    E2 = params['down_w'].shape[0]
    Hp, Wp = grid_hw
    N1 = Hp * Wp
    N2 = (Hp // 2) * (Wp // 2)

    def prep_block(blk, num_heads, n_tok):
        C = blk['proj_w'].shape[0]
        dh = C // num_heads
        scale = 1.0 / float(dh) ** 0.5
        qkv_w, qkv_b = blk['qkv_w'], blk['qkv_b']

        def heads_w(w, scl):
            # (C_out, C_in) -> (num_heads, C_in, dh), scale folded in
            return (jnp.transpose(w.reshape(num_heads, dh, C), (0, 2, 1))
                    * scl).astype(bf16)

        def heads_b(b, scl):
            return (b.reshape(num_heads, 1, dh) * scl).astype(f32)

        return [
            blk['ln1_w'].reshape(1, C).astype(f32),
            blk['ln1_b'].reshape(1, C).astype(f32),
            heads_w(qkv_w[:C], scale),            # wq  (query scale folded)
            heads_w(qkv_w[C:2 * C], 1.0),         # wk
            heads_w(qkv_w[2 * C:], 1.0),          # wv
            heads_b(qkv_b[:C], scale),            # bq
            heads_b(qkv_b[C:2 * C], 1.0),         # bk
            heads_b(qkv_b[2 * C:], 1.0),          # bv
            blk['proj_w'].T.reshape(num_heads, dh, C).astype(bf16),   # wproj
            blk['proj_b'].reshape(1, C).astype(f32),
            _block_diag_mask(batch, n_tok),
            blk['ln2_w'].reshape(1, C).astype(f32),
            blk['ln2_b'].reshape(1, C).astype(f32),
            blk['fc1_w'].T.astype(bf16),
            blk['fc1_b'].reshape(1, -1).astype(f32),
            blk['fc2_w'].T.astype(bf16),
            blk['fc2_b'].reshape(1, C).astype(f32),
        ]

    w_patch = params['patch_w'].reshape(E, -1).T.astype(bf16)   # (3*p*p, E)
    pos = params['pos'].transpose(0, 2, 3, 1).reshape(N1, E)
    pos = jnp.tile(pos, (batch, 1))                             # (B*N1, E)
    pos_bias = (pos + params['patch_b'].reshape(1, E)).astype(f32)

    sel = _downsample_sel(batch, Hp, Wp)                        # (4, B*N2, B*N1)
    wd = params['down_w'].transpose(2, 3, 1, 0).reshape(4, E, E2).astype(bf16)
    bd = params['down_b'].reshape(1, E2).astype(f32)

    pool = _pool_matrix(batch, N2)                              # (B, B*N2)
    w_cls = params['cls_w'].T.astype(bf16)                      # (2E, ncls)
    b_cls = params['cls_b'].reshape(1, -1).astype(f32)

    args = [w_patch, pos_bias]
    args += prep_block(params['stage1'], 3, N1)
    args += [sel, wd, bd]
    args += prep_block(params['stage2'], 6, N2)
    args += [pool, w_cls, b_cls]
    return args


# ------------------------------ forward wrapper ------------------------------

def swin_forward(x_nchw, weight_args, *, patch_size=4):
    B, Cin, H, W = x_nchw.shape
    p = patch_size
    Hp, Wp = H // p, W // p
    # patch-embed im2col (pure layout plumbing; the matmul runs in the kernel)
    xp = x_nchw.reshape(B, Cin, Hp, p, Wp, p).transpose(0, 2, 4, 1, 3, 5)
    xp = xp.reshape(B * Hp * Wp, Cin * p * p)
    num_classes = weight_args[-2].shape[1]
    # Single fused pallas_call, no grid: every operand is VMEM-resident.
    # TODO(synk): at real Swin sizes (N~3136 tokens, C>=96) add token-dim
    # tiling (grid over token blocks, "arbitrary" axis) instead of holding
    # full-sequence activations in VMEM (v7x has only 64 MiB/TC).
    return pl.pallas_call(
        fused_forward_kernel,
        out_shape=jax.ShapeDtypeStruct((B, num_classes), jnp.float32),
    )(xp, *weight_args)


# --------------------------- deterministic params ---------------------------

def init_params(key, embed_dim=24, patch_size=4, grid_hw=(4, 4), num_classes=2):
    keys = iter(jax.random.split(key, 64))

    def nrm(shape, scale=0.05):
        return scale * jax.random.normal(next(keys), shape, jnp.float32)

    def block_params(dim):
        hid = int(dim * 4.0)
        return dict(
            ln1_w=1.0 + nrm((dim,), 0.02), ln1_b=nrm((dim,), 0.02),
            qkv_w=nrm((3 * dim, dim)), qkv_b=nrm((3 * dim,), 0.02),
            proj_w=nrm((dim, dim)), proj_b=nrm((dim,), 0.02),
            ln2_w=1.0 + nrm((dim,), 0.02), ln2_b=nrm((dim,), 0.02),
            fc1_w=nrm((hid, dim)), fc1_b=nrm((hid,), 0.02),
            fc2_w=nrm((dim, hid)), fc2_b=nrm((dim,), 0.02),
        )

    E, E2 = embed_dim, embed_dim * 2
    return dict(
        patch_w=nrm((E, 3, patch_size, patch_size)),
        patch_b=nrm((E,), 0.02),
        pos=nrm((1, E, grid_hw[0], grid_hw[1]), 0.02),
        stage1=block_params(E),
        down_w=nrm((E2, E, 2, 2)),
        down_b=nrm((E2,), 0.02),
        stage2=block_params(E2),
        cls_w=nrm((num_classes, E2)),
        cls_b=nrm((num_classes,), 0.02),
    )


if __name__ == "__main__":
    key = jax.random.PRNGKey(0)
    kx, kp = jax.random.split(key)
    # small shapes: input_resolution=(16,16), patch=4, embed_dim=24 (heads 3/6)
    x = jax.random.normal(kx, (2, 3, 16, 16), jnp.float32)
    params = init_params(kp, embed_dim=24, patch_size=4,
                         grid_hw=(4, 4), num_classes=2)
    weight_args = prepare_inputs(params, batch=2, grid_hw=(4, 4))
    fwd = jax.jit(functools.partial(swin_forward, patch_size=4))
    logits = fwd(x, weight_args)
    jax.block_until_ready(logits)
    assert logits.shape == (2, 2), logits.shape
    assert bool(jnp.all(jnp.isfinite(logits)))
    print("KERNEL_OK")
</pallas_src>

<mosaic_0001>
module attributes {stable_mosaic.version = 11 : i64} {
  func.func @fused_forward_kernel(%arg0: memref<32x48xf32, #tpu.memory_space<vmem>>, %arg1: memref<48x24xbf16, #tpu.memory_space<vmem>>, %arg2: memref<32x24xf32, #tpu.memory_space<vmem>>, %arg3: memref<1x24xf32, #tpu.memory_space<vmem>>, %arg4: memref<1x24xf32, #tpu.memory_space<vmem>>, %arg5: memref<3x24x8xbf16, #tpu.memory_space<vmem>>, %arg6: memref<3x24x8xbf16, #tpu.memory_space<vmem>>, %arg7: memref<3x24x8xbf16, #tpu.memory_space<vmem>>, %arg8: memref<3x1x8xf32, #tpu.memory_space<vmem>>, %arg9: memref<3x1x8xf32, #tpu.memory_space<vmem>>, %arg10: memref<3x1x8xf32, #tpu.memory_space<vmem>>, %arg11: memref<3x8x24xbf16, #tpu.memory_space<vmem>>, %arg12: memref<1x24xf32, #tpu.memory_space<vmem>>, %arg13: memref<32x32xf32, #tpu.memory_space<vmem>>, %arg14: memref<1x24xf32, #tpu.memory_space<vmem>>, %arg15: memref<1x24xf32, #tpu.memory_space<vmem>>, %arg16: memref<24x96xbf16, #tpu.memory_space<vmem>>, %arg17: memref<1x96xf32, #tpu.memory_space<vmem>>, %arg18: memref<96x24xbf16, #tpu.memory_space<vmem>>, %arg19: memref<1x24xf32, #tpu.memory_space<vmem>>, %arg20: memref<4x8x32xf32, #tpu.memory_space<vmem>>, %arg21: memref<4x24x48xbf16, #tpu.memory_space<vmem>>, %arg22: memref<1x48xf32, #tpu.memory_space<vmem>>, %arg23: memref<1x48xf32, #tpu.memory_space<vmem>>, %arg24: memref<1x48xf32, #tpu.memory_space<vmem>>, %arg25: memref<6x48x8xbf16, #tpu.memory_space<vmem>>, %arg26: memref<6x48x8xbf16, #tpu.memory_space<vmem>>, %arg27: memref<6x48x8xbf16, #tpu.memory_space<vmem>>, %arg28: memref<6x1x8xf32, #tpu.memory_space<vmem>>, %arg29: memref<6x1x8xf32, #tpu.memory_space<vmem>>, %arg30: memref<6x1x8xf32, #tpu.memory_space<vmem>>, %arg31: memref<6x8x48xbf16, #tpu.memory_space<vmem>>, %arg32: memref<1x48xf32, #tpu.memory_space<vmem>>, %arg33: memref<8x8xf32, #tpu.memory_space<vmem>>, %arg34: memref<1x48xf32, #tpu.memory_space<vmem>>, %arg35: memref<1x48xf32, #tpu.memory_space<vmem>>, %arg36: memref<48x192xbf16, #tpu.memory_space<vmem>>, %arg37: memref<1x192xf32, #tpu.memory_space<vmem>>, %arg38: memref<192x48xbf16, #tpu.memory_space<vmem>>, %arg39: memref<1x48xf32, #tpu.memory_space<vmem>>, %arg40: memref<2x8xf32, #tpu.memory_space<vmem>>, %arg41: memref<48x2xbf16, #tpu.memory_space<vmem>>, %arg42: memref<1x2xf32, #tpu.memory_space<vmem>>, %arg43: memref<2x2xf32, #tpu.memory_space<vmem>>) attributes {dimension_semantics = [], scalar_prefetch = 0 : i64, scratch_operands = 0 : i64, tpu.core_type = #tpu.core_type<tc>} {
    %c0 = arith.constant 0 : index
    %c0_0 = arith.constant 0 : index
    %0 = vector.load %arg0[%c0, %c0_0] : memref<32x48xf32, #tpu.memory_space<vmem>>, vector<32x48xf32>
    %1 = arith.truncf %0 : vector<32x48xf32> to vector<32x48xbf16>
    %c0_1 = arith.constant 0 : index
    %c0_2 = arith.constant 0 : index
    %2 = vector.load %arg1[%c0_1, %c0_2] : memref<48x24xbf16, #tpu.memory_space<vmem>>, vector<48x24xbf16>
    %cst = arith.constant dense<0.000000e+00> : vector<32x24xf32>
    %3 = tpu.matmul %1, %2, %cst {dimension_numbers = #tpu.dot_dimension_numbers<[1], [0], [0], [1], [0, 0, 1, 1], [], []>} : vector<32x48xbf16>, vector<48x24xbf16>, vector<32x24xf32> -> vector<32x24xf32>
    %c0_3 = arith.constant 0 : index
    %c0_4 = arith.constant 0 : index
    %4 = vector.load %arg2[%c0_3, %c0_4] : memref<32x24xf32, #tpu.memory_space<vmem>>, vector<32x24xf32>
    %5 = arith.addf %3, %4 : vector<32x24xf32>
    %c0_5 = arith.constant 0 : index
    %c0_6 = arith.constant 0 : index
    %6 = vector.load %arg3[%c0_5, %c0_6] : memref<1x24xf32, #tpu.memory_space<vmem>>, vector<1x24xf32>
    %c0_7 = arith.constant 0 : index
    %c0_8 = arith.constant 0 : index
    %7 = vector.load %arg4[%c0_7, %c0_8] : memref<1x24xf32, #tpu.memory_space<vmem>>, vector<1x24xf32>
    %cst_9 = arith.constant dense<0.000000e+00> : vector<32xf32>
    %8 = vector.multi_reduction <add>, %5, %cst_9 [1] : vector<32x24xf32> to vector<32xf32>
    %9 = vector.shape_cast %8 : vector<32xf32> to vector<32x1xf32>
    %cst_10 = arith.constant 2.400000e+01 : f32
    %10 = vector.broadcast %cst_10 : f32 to vector<32x1xf32>
    %11 = arith.divf %9, %10 : vector<32x1xf32>
    %12 = vector.broadcast %11 : vector<32x1xf32> to vector<32x24xf32>
    %13 = arith.subf %5, %12 : vector<32x24xf32>
    %14 = arith.mulf %13, %13 : vector<32x24xf32>
    %cst_11 = arith.constant dense<0.000000e+00> : vector<32xf32>
    %15 = vector.multi_reduction <add>, %14, %cst_11 [1] : vector<32x24xf32> to vector<32xf32>
    %16 = vector.shape_cast %15 : vector<32xf32> to vector<32x1xf32>
    %cst_12 = arith.constant 2.400000e+01 : f32
    %17 = vector.broadcast %cst_12 : f32 to vector<32x1xf32>
    %18 = arith.divf %16, %17 : vector<32x1xf32>
    %19 = vector.broadcast %11 : vector<32x1xf32> to vector<32x24xf32>
    %20 = arith.subf %5, %19 : vector<32x24xf32>
    %cst_13 = arith.constant 9.99999974E-6 : f32
    %21 = vector.broadcast %cst_13 : f32 to vector<32x1xf32>
    %22 = arith.addf %18, %21 : vector<32x1xf32>
    %23 = math.rsqrt %22 : vector<32x1xf32>
    %24 = vector.broadcast %23 : vector<32x1xf32> to vector<32x24xf32>
    %25 = arith.mulf %20, %24 : vector<32x24xf32>
    %26 = vector.broadcast %6 : vector<1x24xf32> to vector<32x24xf32>
    %27 = arith.mulf %25, %26 : vector<32x24xf32>
    %28 = vector.broadcast %7 : vector<1x24xf32> to vector<32x24xf32>
    %29 = arith.addf %27, %28 : vector<32x24xf32>
    %30 = arith.truncf %29 : vector<32x24xf32> to vector<32x24xbf16>
    %c0_14 = arith.constant 0 : index
    %c0_15 = arith.constant 0 : index
    %31 = vector.load %arg13[%c0_14, %c0_15] : memref<32x32xf32, #tpu.memory_space<vmem>>, vector<32x32xf32>
    %c0_16 = arith.constant 0 : index
    %c0_17 = arith.constant 0 : index
    %c0_18 = arith.constant 0 : index
    %32 = vector.load %arg5[%c0_16, %c0_17, %c0_18] : memref<3x24x8xbf16, #tpu.memory_space<vmem>>, vector<1x24x8xbf16>
    %33 = vector.shape_cast %32 : vector<1x24x8xbf16> to vector<24x8xbf16>
    %cst_19 = arith.constant dense<0.000000e+00> : vector<32x8xf32>
    %34 = tpu.matmul %30, %33, %cst_19 {dimension_numbers = #tpu.dot_dimension_numbers<[1], [0], [0], [1], [0, 0, 1, 1], [], []>} : vector<32x24xbf16>, vector<24x8xbf16>, vector<32x8xf32> -> vector<32x8xf32>
    %c0_20 = arith.constant 0 : index
    %c0_21 = arith.constant 0 : index
    %c0_22 = arith.constant 0 : index
    %35 = vector.load %arg8[%c0_20, %c0_21, %c0_22] : memref<3x1x8xf32, #tpu.memory_space<vmem>>, vector<1x1x8xf32>
    %36 = vector.shape_cast %35 : vector<1x1x8xf32> to vector<1x8xf32>
    %37 = vector.broadcast %36 : vector<1x8xf32> to vector<32x8xf32>
    %38 = arith.addf %34, %37 : vector<32x8xf32>
    %c0_23 = arith.constant 0 : index
    %c0_24 = arith.constant 0 : index
    %c0_25 = arith.constant 0 : index
    %39 = vector.load %arg6[%c0_23, %c0_24, %c0_25] : memref<3x24x8xbf16, #tpu.memory_space<vmem>>, vector<1x24x8xbf16>
    %40 = vector.shape_cast %39 : vector<1x24x8xbf16> to vector<24x8xbf16>
    %cst_26 = arith.constant dense<0.000000e+00> : vector<32x8xf32>
    %41 = tpu.matmul %30, %40, %cst_26 {dimension_numbers = #tpu.dot_dimension_numbers<[1], [0], [0], [1], [0, 0, 1, 1], [], []>} : vector<32x24xbf16>, vector<24x8xbf16>, vector<32x8xf32> -> vector<32x8xf32>
    %c0_27 = arith.constant 0 : index
    %c0_28 = arith.constant 0 : index
    %c0_29 = arith.constant 0 : index
    %42 = vector.load %arg9[%c0_27, %c0_28, %c0_29] : memref<3x1x8xf32, #tpu.memory_space<vmem>>, vector<1x1x8xf32>
    %43 = vector.shape_cast %42 : vector<1x1x8xf32> to vector<1x8xf32>
    %44 = vector.broadcast %43 : vector<1x8xf32> to vector<32x8xf32>
    %45 = arith.addf %41, %44 : vector<32x8xf32>
    %c0_30 = arith.constant 0 : index
    %c0_31 = arith.constant 0 : index
    %c0_32 = arith.constant 0 : index
    %46 = vector.load %arg7[%c0_30, %c0_31, %c0_32] : memref<3x24x8xbf16, #tpu.memory_space<vmem>>, vector<1x24x8xbf16>
    %47 = vector.shape_cast %46 : vector<1x24x8xbf16> to vector<24x8xbf16>
    %cst_33 = arith.constant dense<0.000000e+00> : vector<32x8xf32>
    %48 = tpu.matmul %30, %47, %cst_33 {dimension_numbers = #tpu.dot_dimension_numbers<[1], [0], [0], [1], [0, 0, 1, 1], [], []>} : vector<32x24xbf16>, vector<24x8xbf16>, vector<32x8xf32> -> vector<32x8xf32>
    %c0_34 = arith.constant 0 : index
    %c0_35 = arith.constant 0 : index
    %c0_36 = arith.constant 0 : index
    %49 = vector.load %arg10[%c0_34, %c0_35, %c0_36] : memref<3x1x8xf32, #tpu.memory_space<vmem>>, vector<1x1x8xf32>
    %50 = vector.shape_cast %49 : vector<1x1x8xf32> to vector<1x8xf32>
    %51 = vector.broadcast %50 : vector<1x8xf32> to vector<32x8xf32>
    %52 = arith.addf %48, %51 : vector<32x8xf32>
    %53 = arith.truncf %38 : vector<32x8xf32> to vector<32x8xbf16>
    %54 = arith.truncf %45 : vector<32x8xf32> to vector<32x8xbf16>
    %cst_37 = arith.constant dense<0.000000e+00> : vector<32x32xf32>
    %55 = tpu.matmul %53, %54, %cst_37 {dimension_numbers = #tpu.dot_dimension_numbers<[1], [1], [0], [0], [0, 0, 1, 0], [], []>} : vector<32x8xbf16>, vector<32x8xbf16>, vector<32x32xf32> -> vector<32x32xf32>
    %56 = arith.addf %55, %31 : vector<32x32xf32>
    %cst_38 = arith.constant dense<0xFF800000> : vector<32xf32>
    %57 = vector.multi_reduction <maximumf>, %56, %cst_38 [1] : vector<32x32xf32> to vector<32xf32>
    %58 = vector.shape_cast %57 : vector<32xf32> to vector<32x1xf32>
    %59 = vector.broadcast %58 : vector<32x1xf32> to vector<32x32xf32>
    %60 = arith.subf %56, %59 : vector<32x32xf32>
    %61 = math.exp %60 : vector<32x32xf32>
    %cst_39 = arith.constant dense<0.000000e+00> : vector<32xf32>
    %62 = vector.multi_reduction <add>, %61, %cst_39 [1] : vector<32x32xf32> to vector<32xf32>
    %63 = vector.shape_cast %62 : vector<32xf32> to vector<32x1xf32>
    %64 = tpu.reciprocal %63 {approx = true} : vector<32x1xf32> -> vector<32x1xf32>
    %65 = vector.broadcast %64 : vector<32x1xf32> to vector<32x32xf32>
    %66 = arith.mulf %61, %65 : vector<32x32xf32>
    %67 = arith.truncf %66 : vector<32x32xf32> to vector<32x32xbf16>
    %68 = arith.truncf %52 : vector<32x8xf32> to vector<32x8xbf16>
    %cst_40 = arith.constant dense<0.000000e+00> : vector<32x8xf32>
    %69 = tpu.matmul %67, %68, %cst_40 {dimension_numbers = #tpu.dot_dimension_numbers<[1], [0], [0], [1], [0, 0, 1, 1], [], []>} : vector<32x32xbf16>, vector<32x8xbf16>, vector<32x8xf32> -> vector<32x8xf32>
    %70 = arith.truncf %69 : vector<32x8xf32> to vector<32x8xbf16>
    %c0_41 = arith.constant 0 : index
    %c0_42 = arith.constant 0 : index
    %c0_43 = arith.constant 0 : index
    %71 = vector.load %arg11[%c0_41, %c0_42, %c0_43] : memref<3x8x24xbf16, #tpu.memory_space<vmem>>, vector<1x8x24xbf16>
    %72 = vector.shape_cast %71 : vector<1x8x24xbf16> to vector<8x24xbf16>
    %cst_44 = arith.constant dense<0.000000e+00> : vector<32x24xf32>
    %73 = tpu.matmul %70, %72, %cst_44 {dimension_numbers = #tpu.dot_dimension_numbers<[1], [0], [0], [1], [0, 0, 1, 1], [], []>} : vector<32x8xbf16>, vector<8x24xbf16>, vector<32x24xf32> -> vector<32x24xf32>
    %c1 = arith.constant 1 : index
    %c0_45 = arith.constant 0 : index
    %c0_46 = arith.constant 0 : index
    %74 = vector.load %arg5[%c1, %c0_45, %c0_46] : memref<3x24x8xbf16, #tpu.memory_space<vmem>>, vector<1x24x8xbf16>
    %75 = vector.shape_cast %74 : vector<1x24x8xbf16> to vector<24x8xbf16>
    %cst_47 = arith.constant dense<0.000000e+00> : vector<32x8xf32>
    %76 = tpu.matmul %30, %75, %cst_47 {dimension_numbers = #tpu.dot_dimension_numbers<[1], [0], [0], [1], [0, 0, 1, 1], [], []>} : vector<32x24xbf16>, vector<24x8xbf16>, vector<32x8xf32> -> vector<32x8xf32>
    %c1_48 = arith.constant 1 : index
    %c0_49 = arith.constant 0 : index
    %c0_50 = arith.constant 0 : index
    %77 = vector.load %arg8[%c1_48, %c0_49, %c0_50] : memref<3x1x8xf32, #tpu.memory_space<vmem>>, vector<1x1x8xf32>
    %78 = vector.shape_cast %77 : vector<1x1x8xf32> to vector<1x8xf32>
    %79 = vector.broadcast %78 : vector<1x8xf32> to vector<32x8xf32>
    %80 = arith.addf %76, %79 : vector<32x8xf32>
    %c1_51 = arith.constant 1 : index
    %c0_52 = arith.constant 0 : index
    %c0_53 = arith.constant 0 : index
    %81 = vector.load %arg6[%c1_51, %c0_52, %c0_53] : memref<3x24x8xbf16, #tpu.memory_space<vmem>>, vector<1x24x8xbf16>
    %82 = vector.shape_cast %81 : vector<1x24x8xbf16> to vector<24x8xbf16>
    %cst_54 = arith.constant dense<0.000000e+00> : vector<32x8xf32>
    %83 = tpu.matmul %30, %82, %cst_54 {dimension_numbers = #tpu.dot_dimension_numbers<[1], [0], [0], [1], [0, 0, 1, 1], [], []>} : vector<32x24xbf16>, vector<24x8xbf16>, vector<32x8xf32> -> vector<32x8xf32>
    %c1_55 = arith.constant 1 : index
    %c0_56 = arith.constant 0 : index
    %c0_57 = arith.constant 0 : index
    %84 = vector.load %arg9[%c1_55, %c0_56, %c0_57] : memref<3x1x8xf32, #tpu.memory_space<vmem>>, vector<1x1x8xf32>
    %85 = vector.shape_cast %84 : vector<1x1x8xf32> to vector<1x8xf32>
    %86 = vector.broadcast %85 : vector<1x8xf32> to vector<32x8xf32>
    %87 = arith.addf %83, %86 : vector<32x8xf32>
    %c1_58 = arith.constant 1 : index
    %c0_59 = arith.constant 0 : index
    %c0_60 = arith.constant 0 : index
    %88 = vector.load %arg7[%c1_58, %c0_59, %c0_60] : memref<3x24x8xbf16, #tpu.memory_space<vmem>>, vector<1x24x8xbf16>
    %89 = vector.shape_cast %88 : vector<1x24x8xbf16> to vector<24x8xbf16>
    %cst_61 = arith.constant dense<0.000000e+00> : vector<32x8xf32>
    %90 = tpu.matmul %30, %89, %cst_61 {dimension_numbers = #tpu.dot_dimension_numbers<[1], [0], [0], [1], [0, 0, 1, 1], [], []>} : vector<32x24xbf16>, vector<24x8xbf16>, vector<32x8xf32> -> vector<32x8xf32>
    %c1_62 = arith.constant 1 : index
    %c0_63 = arith.constant 0 : index
    %c0_64 = arith.constant 0 : index
    %91 = vector.load %arg10[%c1_62, %c0_63, %c0_64] : memref<3x1x8xf32, #tpu.memory_space<vmem>>, vector<1x1x8xf32>
    %92 = vector.shape_cast %91 : vector<1x1x8xf32> to vector<1x8xf32>
    %93 = vector.broadcast %92 : vector<1x8xf32> to vector<32x8xf32>
    %94 = arith.addf %90, %93 : vector<32x8xf32>
    %95 = arith.truncf %80 : vector<32x8xf32> to vector<32x8xbf16>
    %96 = arith.truncf %87 : vector<32x8xf32> to vector<32x8xbf16>
    %cst_65 = arith.constant dense<0.000000e+00> : vector<32x32xf32>
    %97 = tpu.matmul %95, %96, %cst_65 {dimension_numbers = #tpu.dot_dimension_numbers<[1], [1], [0], [0], [0, 0, 1, 0], [], []>} : vector<32x8xbf16>, vector<32x8xbf16>, vector<32x32xf32> -> vector<32x32xf32>
    %98 = arith.addf %97, %31 : vector<32x32xf32>
    %cst_66 = arith.constant dense<0xFF800000> : vector<32xf32>
    %99 = vector.multi_reduction <maximumf>, %98, %cst_66 [1] : vector<32x32xf32> to vector<32xf32>
    %100 = vector.shape_cast %99 : vector<32xf32> to vector<32x1xf32>
    %101 = vector.broadcast %100 : vector<32x1xf32> to vector<32x32xf32>
    %102 = arith.subf %98, %101 : vector<32x32xf32>
    %103 = math.exp %102 : vector<32x32xf32>
    %cst_67 = arith.constant dense<0.000000e+00> : vector<32xf32>
    %104 = vector.multi_reduction <add>, %103, %cst_67 [1] : vector<32x32xf32> to vector<32xf32>
    %105 = vector.shape_cast %104 : vector<32xf32> to vector<32x1xf32>
    %106 = tpu.reciprocal %105 {approx = true} : vector<32x1xf32> -> vector<32x1xf32>
    %107 = vector.broadcast %106 : vector<32x1xf32> to vector<32x32xf32>
    %108 = arith.mulf %103, %107 : vector<32x32xf32>
    %109 = arith.truncf %108 : vector<32x32xf32> to vector<32x32xbf16>
    %110 = arith.truncf %94 : vector<32x8xf32> to vector<32x8xbf16>
    %cst_68 = arith.constant dense<0.000000e+00> : vector<32x8xf32>
    %111 = tpu.matmul %109, %110, %cst_68 {dimension_numbers = #tpu.dot_dimension_numbers<[1], [0], [0], [1], [0, 0, 1, 1], [], []>} : vector<32x32xbf16>, vector<32x8xbf16>, vector<32x8xf32> -> vector<32x8xf32>
    %112 = arith.truncf %111 : vector<32x8xf32> to vector<32x8xbf16>
    %c1_69 = arith.constant 1 : index
    %c0_70 = arith.constant 0 : index
    %c0_71 = arith.constant 0 : index
    %113 = vector.load %arg11[%c1_69, %c0_70, %c0_71] : memref<3x8x24xbf16, #tpu.memory_space<vmem>>, vector<1x8x24xbf16>
    %114 = vector.shape_cast %113 : vector<1x8x24xbf16> to vector<8x24xbf16>
    %cst_72 = arith.constant dense<0.000000e+00> : vector<32x24xf32>
    %115 = tpu.matmul %112, %114, %cst_72 {dimension_numbers = #tpu.dot_dimension_numbers<[1], [0], [0], [1], [0, 0, 1, 1], [], []>} : vector<32x8xbf16>, vector<8x24xbf16>, vector<32x24xf32> -> vector<32x24xf32>
    %116 = arith.addf %73, %115 : vector<32x24xf32>
    %c2 = arith.constant 2 : index
    %c0_73 = arith.constant 0 : index
    %c0_74 = arith.constant 0 : index
    %117 = vector.load %arg5[%c2, %c0_73, %c0_74] : memref<3x24x8xbf16, #tpu.memory_space<vmem>>, vector<1x24x8xbf16>
    %118 = vector.shape_cast %117 : vector<1x24x8xbf16> to vector<24x8xbf16>
    %cst_75 = arith.constant dense<0.000000e+00> : vector<32x8xf32>
    %119 = tpu.matmul %30, %118, %cst_75 {dimension_numbers = #tpu.dot_dimension_numbers<[1], [0], [0], [1], [0, 0, 1, 1], [], []>} : vector<32x24xbf16>, vector<24x8xbf16>, vector<32x8xf32> -> vector<32x8xf32>
    %c2_76 = arith.constant 2 : index
    %c0_77 = arith.constant 0 : index
    %c0_78 = arith.constant 0 : index
    %120 = vector.load %arg8[%c2_76, %c0_77, %c0_78] : memref<3x1x8xf32, #tpu.memory_space<vmem>>, vector<1x1x8xf32>
    %121 = vector.shape_cast %120 : vector<1x1x8xf32> to vector<1x8xf32>
    %122 = vector.broadcast %121 : vector<1x8xf32> to vector<32x8xf32>
    %123 = arith.addf %119, %122 : vector<32x8xf32>
    %c2_79 = arith.constant 2 : index
    %c0_80 = arith.constant 0 : index
    %c0_81 = arith.constant 0 : index
    %124 = vector.load %arg6[%c2_79, %c0_80, %c0_81] : memref<3x24x8xbf16, #tpu.memory_space<vmem>>, vector<1x24x8xbf16>
    %125 = vector.shape_cast %124 : vector<1x24x8xbf16> to vector<24x8xbf16>
    %cst_82 = arith.constant dense<0.000000e+00> : vector<32x8xf32>
    %126 = tpu.matmul %30, %125, %cst_82 {dimension_numbers = #tpu.dot_dimension_numbers<[1], [0], [0], [1], [0, 0, 1, 1], [], []>} : vector<32x24xbf16>, vector<24x8xbf16>, vector<32x8xf32> -> vector<32x8xf32>
    %c2_83 = arith.constant 2 : index
    %c0_84 = arith.constant 0 : index
    %c0_85 = arith.constant 0 : index
    %127 = vector.load %arg9[%c2_83, %c0_84, %c0_85] : memref<3x1x8xf32, #tpu.memory_space<vmem>>, vector<1x1x8xf32>
    %128 = vector.shape_cast %127 : vector<1x1x8xf32> to vector<1x8xf32>
    %129 = vector.broadcast %128 : vector<1x8xf32> to vector<32x8xf32>
    %130 = arith.addf %126, %129 : vector<32x8xf32>
    %c2_86 = arith.constant 2 : index
    %c0_87 = arith.constant 0 : index
    %c0_88 = arith.constant 0 : index
    %131 = vector.load %arg7[%c2_86, %c0_87, %c0_88] : memref<3x24x8xbf16, #tpu.memory_space<vmem>>, vector<1x24x8xbf16>
    %132 = vector.shape_cast %131 : vector<1x24x8xbf16> to vector<24x8xbf16>
    %cst_89 = arith.constant dense<0.000000e+00> : vector<32x8xf32>
    %133 = tpu.matmul %30, %132, %cst_89 {dimension_numbers = #tpu.dot_dimension_numbers<[1], [0], [0], [1], [0, 0, 1, 1], [], []>} : vector<32x24xbf16>, vector<24x8xbf16>, vector<32x8xf32> -> vector<32x8xf32>
    %c2_90 = arith.constant 2 : index
    %c0_91 = arith.constant 0 : index
    %c0_92 = arith.constant 0 : index
    %134 = vector.load %arg10[%c2_90, %c0_91, %c0_92] : memref<3x1x8xf32, #tpu.memory_space<vmem>>, vector<1x1x8xf32>
    %135 = vector.shape_cast %134 : vector<1x1x8xf32> to vector<1x8xf32>
    %136 = vector.broadcast %135 : vector<1x8xf32> to vector<32x8xf32>
    %137 = arith.addf %133, %136 : vector<32x8xf32>
    %138 = arith.truncf %123 : vector<32x8xf32> to vector<32x8xbf16>
    %139 = arith.truncf %130 : vector<32x8xf32> to vector<32x8xbf16>
    %cst_93 = arith.constant dense<0.000000e+00> : vector<32x32xf32>
    %140 = tpu.matmul %138, %139, %cst_93 {dimension_numbers = #tpu.dot_dimension_numbers<[1], [1], [0], [0], [0, 0, 1, 0], [], []>} : vector<32x8xbf16>, vector<32x8xbf16>, vector<32x32xf32> -> vector<32x32xf32>
    %141 = arith.addf %140, %31 : vector<32x32xf32>
    %cst_94 = arith.constant dense<0xFF800000> : vector<32xf32>
    %142 = vector.multi_reduction <maximumf>, %141, %cst_94 [1] : vector<32x32xf32> to vector<32xf32>
    %143 = vector.shape_cast %142 : vector<32xf32> to vector<32x1xf32>
    %144 = vector.broadcast %143 : vector<32x1xf32> to vector<32x32xf32>
    %145 = arith.subf %141, %144 : vector<32x32xf32>
    %146 = math.exp %145 : vector<32x32xf32>
    %cst_95 = arith.constant dense<0.000000e+00> : vector<32xf32>
    %147 = vector.multi_reduction <add>, %146, %cst_95 [1] : vector<32x32xf32> to vector<32xf32>
    %148 = vector.shape_cast %147 : vector<32xf32> to vector<32x1xf32>
    %149 = tpu.reciprocal %148 {approx = true} : vector<32x1xf32> -> vector<32x1xf32>
    %150 = vector.broadcast %149 : vector<32x1xf32> to vector<32x32xf32>
    %151 = arith.mulf %146, %150 : vector<32x32xf32>
    %152 = arith.truncf %151 : vector<32x32xf32> to vector<32x32xbf16>
    %153 = arith.truncf %137 : vector<32x8xf32> to vector<32x8xbf16>
    %cst_96 = arith.constant dense<0.000000e+00> : vector<32x8xf32>
    %154 = tpu.matmul %152, %153, %cst_96 {dimension_numbers = #tpu.dot_dimension_numbers<[1], [0], [0], [1], [0, 0, 1, 1], [], []>} : vector<32x32xbf16>, vector<32x8xbf16>, vector<32x8xf32> -> vector<32x8xf32>
    %155 = arith.truncf %154 : vector<32x8xf32> to vector<32x8xbf16>
    %c2_97 = arith.constant 2 : index
    %c0_98 = arith.constant 0 : index
    %c0_99 = arith.constant 0 : index
    %156 = vector.load %arg11[%c2_97, %c0_98, %c0_99] : memref<3x8x24xbf16, #tpu.memory_space<vmem>>, vector<1x8x24xbf16>
    %157 = vector.shape_cast %156 : vector<1x8x24xbf16> to vector<8x24xbf16>
    %cst_100 = arith.constant dense<0.000000e+00> : vector<32x24xf32>
    %158 = tpu.matmul %155, %157, %cst_100 {dimension_numbers = #tpu.dot_dimension_numbers<[1], [0], [0], [1], [0, 0, 1, 1], [], []>} : vector<32x8xbf16>, vector<8x24xbf16>, vector<32x24xf32> -> vector<32x24xf32>
    %159 = arith.addf %116, %158 : vector<32x24xf32>
    %160 = arith.addf %5, %159 : vector<32x24xf32>
    %c0_101 = arith.constant 0 : index
    %c0_102 = arith.constant 0 : index
    %161 = vector.load %arg12[%c0_101, %c0_102] : memref<1x24xf32, #tpu.memory_space<vmem>>, vector<1x24xf32>
    %162 = vector.broadcast %161 : vector<1x24xf32> to vector<32x24xf32>
    %163 = arith.addf %160, %162 : vector<32x24xf32>
    %c0_103 = arith.constant 0 : index
    %c0_104 = arith.constant 0 : index
    %164 = vector.load %arg14[%c0_103, %c0_104] : memref<1x24xf32, #tpu.memory_space<vmem>>, vector<1x24xf32>
    %c0_105 = arith.constant 0 : index
    %c0_106 = arith.constant 0 : index
    %165 = vector.load %arg15[%c0_105, %c0_106] : memref<1x24xf32, #tpu.memory_space<vmem>>, vector<1x24xf32>
    %cst_107 = arith.constant dense<0.000000e+00> : vector<32xf32>
    %166 = vector.multi_reduction <add>, %163, %cst_107 [1] : vector<32x24xf32> to vector<32xf32>
    %167 = vector.shape_cast %166 : vector<32xf32> to vector<32x1xf32>
    %cst_108 = arith.constant 2.400000e+01 : f32
    %168 = vector.broadcast %cst_108 : f32 to vector<32x1xf32>
    %169 = arith.divf %167, %168 : vector<32x1xf32>
    %170 = vector.broadcast %169 : vector<32x1xf32> to vector<32x24xf32>
    %171 = arith.subf %163, %170 : vector<32x24xf32>
    %172 = arith.mulf %171, %171 : vector<32x24xf32>
    %cst_109 = arith.constant dense<0.000000e+00> : vector<32xf32>
    %173 = vector.multi_reduction <add>, %172, %cst_109 [1] : vector<32x24xf32> to vector<32xf32>
    %174 = vector.shape_cast %173 : vector<32xf32> to vector<32x1xf32>
    %cst_110 = arith.constant 2.400000e+01 : f32
    %175 = vector.broadcast %cst_110 : f32 to vector<32x1xf32>
    %176 = arith.divf %174, %175 : vector<32x1xf32>
    %177 = vector.broadcast %169 : vector<32x1xf32> to vector<32x24xf32>
    %178 = arith.subf %163, %177 : vector<32x24xf32>
    %cst_111 = arith.constant 9.99999974E-6 : f32
    %179 = vector.broadcast %cst_111 : f32 to vector<32x1xf32>
    %180 = arith.addf %176, %179 : vector<32x1xf32>
    %181 = math.rsqrt %180 : vector<32x1xf32>
    %182 = vector.broadcast %181 : vector<32x1xf32> to vector<32x24xf32>
    %183 = arith.mulf %178, %182 : vector<32x24xf32>
    %184 = vector.broadcast %164 : vector<1x24xf32> to vector<32x24xf32>
    %185 = arith.mulf %183, %184 : vector<32x24xf32>
    %186 = vector.broadcast %165 : vector<1x24xf32> to vector<32x24xf32>
    %187 = arith.addf %185, %186 : vector<32x24xf32>
    %188 = arith.truncf %187 : vector<32x24xf32> to vector<32x24xbf16>
    %c0_112 = arith.constant 0 : index
    %c0_113 = arith.constant 0 : index
    %189 = vector.load %arg16[%c0_112, %c0_113] : memref<24x96xbf16, #tpu.memory_space<vmem>>, vector<24x96xbf16>
    %cst_114 = arith.constant dense<0.000000e+00> : vector<32x96xf32>
    %190 = tpu.matmul %188, %189, %cst_114 {dimension_numbers = #tpu.dot_dimension_numbers<[1], [0], [0], [1], [0, 0, 1, 1], [], []>} : vector<32x24xbf16>, vector<24x96xbf16>, vector<32x96xf32> -> vector<32x96xf32>
    %c0_115 = arith.constant 0 : index
    %c0_116 = arith.constant 0 : index
    %191 = vector.load %arg17[%c0_115, %c0_116] : memref<1x96xf32, #tpu.memory_space<vmem>>, vector<1x96xf32>
    %192 = vector.broadcast %191 : vector<1x96xf32> to vector<32x96xf32>
    %193 = arith.addf %190, %192 : vector<32x96xf32>
    %cst_117 = arith.constant 5.000000e-01 : f32
    %194 = vector.broadcast %cst_117 : f32 to vector<32x96xf32>
    %195 = arith.mulf %194, %193 : vector<32x96xf32>
    %cst_118 = arith.constant 0.707106769 : f32
    %196 = vector.broadcast %cst_118 : f32 to vector<32x96xf32>
    %197 = arith.mulf %193, %196 : vector<32x96xf32>
    %cst_119 = arith.constant 0.000000e+00 : f32
    %198 = vector.broadcast %cst_119 : f32 to vector<32x96xf32>
    %199 = arith.cmpf oge, %197, %198 : vector<32x96xf32>
    %cst_120 = arith.constant 1.000000e+00 : f32
    %cst_121 = arith.constant -1.000000e+00 : f32
    %200 = vector.broadcast %cst_120 : f32 to vector<32x96xf32>
    %201 = vector.broadcast %cst_121 : f32 to vector<32x96xf32>
    %202 = arith.select %199, %200, %201 : vector<32x96xi1>, vector<32x96xf32>
    %203 = math.absf %197 : vector<32x96xf32>
    %cst_122 = arith.constant 0.327591091 : f32
    %204 = vector.broadcast %cst_122 : f32 to vector<32x96xf32>
    %205 = arith.mulf %204, %203 : vector<32x96xf32>
    %cst_123 = arith.constant 1.000000e+00 : f32
    %206 = vector.broadcast %cst_123 : f32 to vector<32x96xf32>
    %207 = arith.addf %206, %205 : vector<32x96xf32>
    %cst_124 = arith.constant 1.000000e+00 : f32
    %208 = vector.broadcast %cst_124 : f32 to vector<32x96xf32>
    %209 = arith.divf %208, %207 : vector<32x96xf32>
    %cst_125 = arith.constant 1.06140542 : f32
    %210 = vector.broadcast %cst_125 : f32 to vector<32x96xf32>
    %211 = arith.mulf %210, %209 : vector<32x96xf32>
    %cst_126 = arith.constant -1.45315206 : f32
    %212 = vector.broadcast %cst_126 : f32 to vector<32x96xf32>
    %213 = arith.addf %211, %212 : vector<32x96xf32>
    %214 = arith.mulf %213, %209 : vector<32x96xf32>
    %cst_127 = arith.constant 1.42141378 : f32
    %215 = vector.broadcast %cst_127 : f32 to vector<32x96xf32>
    %216 = arith.addf %214, %215 : vector<32x96xf32>
    %217 = arith.mulf %216, %209 : vector<32x96xf32>
    %cst_128 = arith.constant -0.284496725 : f32
    %218 = vector.broadcast %cst_128 : f32 to vector<32x96xf32>
    %219 = arith.addf %217, %218 : vector<32x96xf32>
    %220 = arith.mulf %219, %209 : vector<32x96xf32>
    %cst_129 = arith.constant 0.254829586 : f32
    %221 = vector.broadcast %cst_129 : f32 to vector<32x96xf32>
    %222 = arith.addf %220, %221 : vector<32x96xf32>
    %223 = arith.mulf %222, %209 : vector<32x96xf32>
    %cst_130 = arith.constant 0.000000e+00 : f32
    %224 = vector.broadcast %cst_130 : f32 to vector<32x96xf32>
    %225 = arith.subf %224, %203 : vector<32x96xf32>
    %226 = arith.mulf %225, %203 : vector<32x96xf32>
    %227 = math.exp %226 : vector<32x96xf32>
    %228 = arith.mulf %223, %227 : vector<32x96xf32>
    %cst_131 = arith.constant 1.000000e+00 : f32
    %229 = vector.broadcast %cst_131 : f32 to vector<32x96xf32>
    %230 = arith.subf %229, %228 : vector<32x96xf32>
    %231 = arith.mulf %202, %230 : vector<32x96xf32>
    %cst_132 = arith.constant 1.000000e+00 : f32
    %232 = vector.broadcast %cst_132 : f32 to vector<32x96xf32>
    %233 = arith.addf %232, %231 : vector<32x96xf32>
    %234 = arith.mulf %195, %233 : vector<32x96xf32>
    %235 = arith.truncf %234 : vector<32x96xf32> to vector<32x96xbf16>
    %c0_133 = arith.constant 0 : index
    %c0_134 = arith.constant 0 : index
    %236 = vector.load %arg18[%c0_133, %c0_134] : memref<96x24xbf16, #tpu.memory_space<vmem>>, vector<96x24xbf16>
    %cst_135 = arith.constant dense<0.000000e+00> : vector<32x24xf32>
    %237 = tpu.matmul %235, %236, %cst_135 {dimension_numbers = #tpu.dot_dimension_numbers<[1], [0], [0], [1], [0, 0, 1, 1], [], []>} : vector<32x96xbf16>, vector<96x24xbf16>, vector<32x24xf32> -> vector<32x24xf32>
    %c0_136 = arith.constant 0 : index
    %c0_137 = arith.constant 0 : index
    %238 = vector.load %arg19[%c0_136, %c0_137] : memref<1x24xf32, #tpu.memory_space<vmem>>, vector<1x24xf32>
    %239 = vector.broadcast %238 : vector<1x24xf32> to vector<32x24xf32>
    %240 = arith.addf %237, %239 : vector<32x24xf32>
    %241 = arith.addf %163, %240 : vector<32x24xf32>
    %c0_138 = arith.constant 0 : index
    %c0_139 = arith.constant 0 : index
    %c0_140 = arith.constant 0 : index
    %242 = vector.load %arg20[%c0_138, %c0_139, %c0_140] : memref<4x8x32xf32, #tpu.memory_space<vmem>>, vector<1x8x32xf32>
    %243 = vector.shape_cast %242 : vector<1x8x32xf32> to vector<8x32xf32>
    %cst_141 = arith.constant dense<0.000000e+00> : vector<8x24xf32>
    %244 = tpu.matmul %243, %241, %cst_141 {dimension_numbers = #tpu.dot_dimension_numbers<[1], [0], [0], [1], [0, 0, 1, 1], [], []>} : vector<8x32xf32>, vector<32x24xf32>, vector<8x24xf32> -> vector<8x24xf32>
    %245 = arith.truncf %244 : vector<8x24xf32> to vector<8x24xbf16>
    %c0_142 = arith.constant 0 : index
    %c0_143 = arith.constant 0 : index
    %c0_144 = arith.constant 0 : index
    %246 = vector.load %arg21[%c0_142, %c0_143, %c0_144] : memref<4x24x48xbf16, #tpu.memory_space<vmem>>, vector<1x24x48xbf16>
    %247 = vector.shape_cast %246 : vector<1x24x48xbf16> to vector<24x48xbf16>
    %cst_145 = arith.constant dense<0.000000e+00> : vector<8x48xf32>
    %248 = tpu.matmul %245, %247, %cst_145 {dimension_numbers = #tpu.dot_dimension_numbers<[1], [0], [0], [1], [0, 0, 1, 1], [], []>} : vector<8x24xbf16>, vector<24x48xbf16>, vector<8x48xf32> -> vector<8x48xf32>
    %c1_146 = arith.constant 1 : index
    %c0_147 = arith.constant 0 : index
    %c0_148 = arith.constant 0 : index
    %249 = vector.load %arg20[%c1_146, %c0_147, %c0_148] : memref<4x8x32xf32, #tpu.memory_space<vmem>>, vector<1x8x32xf32>
    %250 = vector.shape_cast %249 : vector<1x8x32xf32> to vector<8x32xf32>
    %cst_149 = arith.constant dense<0.000000e+00> : vector<8x24xf32>
    %251 = tpu.matmul %250, %241, %cst_149 {dimension_numbers = #tpu.dot_dimension_numbers<[1], [0], [0], [1], [0, 0, 1, 1], [], []>} : vector<8x32xf32>, vector<32x24xf32>, vector<8x24xf32> -> vector<8x24xf32>
    %252 = arith.truncf %251 : vector<8x24xf32> to vector<8x24xbf16>
    %c1_150 = arith.constant 1 : index
    %c0_151 = arith.constant 0 : index
    %c0_152 = arith.constant 0 : index
    %253 = vector.load %arg21[%c1_150, %c0_151, %c0_152] : memref<4x24x48xbf16, #tpu.memory_space<vmem>>, vector<1x24x48xbf16>
    %254 = vector.shape_cast %253 : vector<1x24x48xbf16> to vector<24x48xbf16>
    %cst_153 = arith.constant dense<0.000000e+00> : vector<8x48xf32>
    %255 = tpu.matmul %252, %254, %cst_153 {dimension_numbers = #tpu.dot_dimension_numbers<[1], [0], [0], [1], [0, 0, 1, 1], [], []>} : vector<8x24xbf16>, vector<24x48xbf16>, vector<8x48xf32> -> vector<8x48xf32>
    %256 = arith.addf %248, %255 : vector<8x48xf32>
    %c2_154 = arith.constant 2 : index
    %c0_155 = arith.constant 0 : index
    %c0_156 = arith.constant 0 : index
    %257 = vector.load %arg20[%c2_154, %c0_155, %c0_156] : memref<4x8x32xf32, #tpu.memory_space<vmem>>, vector<1x8x32xf32>
    %258 = vector.shape_cast %257 : vector<1x8x32xf32> to vector<8x32xf32>
    %cst_157 = arith.constant dense<0.000000e+00> : vector<8x24xf32>
    %259 = tpu.matmul %258, %241, %cst_157 {dimension_numbers = #tpu.dot_dimension_numbers<[1], [0], [0], [1], [0, 0, 1, 1], [], []>} : vector<8x32xf32>, vector<32x24xf32>, vector<8x24xf32> -> vector<8x24xf32>
    %260 = arith.truncf %259 : vector<8x24xf32> to vector<8x24xbf16>
    %c2_158 = arith.constant 2 : index
    %c0_159 = arith.constant 0 : index
    %c0_160 = arith.constant 0 : index
    %261 = vector.load %arg21[%c2_158, %c0_159, %c0_160] : memref<4x24x48xbf16, #tpu.memory_space<vmem>>, vector<1x24x48xbf16>
    %262 = vector.shape_cast %261 : vector<1x24x48xbf16> to vector<24x48xbf16>
    %cst_161 = arith.constant dense<0.000000e+00> : vector<8x48xf32>
    %263 = tpu.matmul %260, %262, %cst_161 {dimension_numbers = #tpu.dot_dimension_numbers<[1], [0], [0], [1], [0, 0, 1, 1], [], []>} : vector<8x24xbf16>, vector<24x48xbf16>, vector<8x48xf32> -> vector<8x48xf32>
    %264 = arith.addf %256, %263 : vector<8x48xf32>
    %c3 = arith.constant 3 : index
    %c0_162 = arith.constant 0 : index
    %c0_163 = arith.constant 0 : index
    %265 = vector.load %arg20[%c3, %c0_162, %c0_163] : memref<4x8x32xf32, #tpu.memory_space<vmem>>, vector<1x8x32xf32>
    %266 = vector.shape_cast %265 : vector<1x8x32xf32> to vector<8x32xf32>
    %cst_164 = arith.constant dense<0.000000e+00> : vector<8x24xf32>
    %267 = tpu.matmul %266, %241, %cst_164 {dimension_numbers = #tpu.dot_dimension_numbers<[1], [0], [0], [1], [0, 0, 1, 1], [], []>} : vector<8x32xf32>, vector<32x24xf32>, vector<8x24xf32> -> vector<8x24xf32>
    %268 = arith.truncf %267 : vector<8x24xf32> to vector<8x24xbf16>
    %c3_165 = arith.constant 3 : index
    %c0_166 = arith.constant 0 : index
    %c0_167 = arith.constant 0 : index
    %269 = vector.load %arg21[%c3_165, %c0_166, %c0_167] : memref<4x24x48xbf16, #tpu.memory_space<vmem>>, vector<1x24x48xbf16>
    %270 = vector.shape_cast %269 : vector<1x24x48xbf16> to vector<24x48xbf16>
    %cst_168 = arith.constant dense<0.000000e+00> : vector<8x48xf32>
    %271 = tpu.matmul %268, %270, %cst_168 {dimension_numbers = #tpu.dot_dimension_numbers<[1], [0], [0], [1], [0, 0, 1, 1], [], []>} : vector<8x24xbf16>, vector<24x48xbf16>, vector<8x48xf32> -> vector<8x48xf32>
    %272 = arith.addf %264, %271 : vector<8x48xf32>
    %c0_169 = arith.constant 0 : index
    %c0_170 = arith.constant 0 : index
    %273 = vector.load %arg22[%c0_169, %c0_170] : memref<1x48xf32, #tpu.memory_space<vmem>>, vector<1x48xf32>
    %274 = vector.broadcast %273 : vector<1x48xf32> to vector<8x48xf32>
    %275 = arith.addf %272, %274 : vector<8x48xf32>
    %c0_171 = arith.constant 0 : index
    %c0_172 = arith.constant 0 : index
    %276 = vector.load %arg23[%c0_171, %c0_172] : memref<1x48xf32, #tpu.memory_space<vmem>>, vector<1x48xf32>
    %c0_173 = arith.constant 0 : index
    %c0_174 = arith.constant 0 : index
    %277 = vector.load %arg24[%c0_173, %c0_174] : memref<1x48xf32, #tpu.memory_space<vmem>>, vector<1x48xf32>
    %cst_175 = arith.constant dense<0.000000e+00> : vector<8xf32>
    %278 = vector.multi_reduction <add>, %275, %cst_175 [1] : vector<8x48xf32> to vector<8xf32>
    %279 = vector.shape_cast %278 : vector<8xf32> to vector<8x1xf32>
    %cst_176 = arith.constant 4.800000e+01 : f32
    %280 = vector.broadcast %cst_176 : f32 to vector<8x1xf32>
    %281 = arith.divf %279, %280 : vector<8x1xf32>
    %282 = vector.broadcast %281 : vector<8x1xf32> to vector<8x48xf32>
    %283 = arith.subf %275, %282 : vector<8x48xf32>
    %284 = arith.mulf %283, %283 : vector<8x48xf32>
    %cst_177 = arith.constant dense<0.000000e+00> : vector<8xf32>
    %285 = vector.multi_reduction <add>, %284, %cst_177 [1] : vector<8x48xf32> to vector<8xf32>
    %286 = vector.shape_cast %285 : vector<8xf32> to vector<8x1xf32>
    %cst_178 = arith.constant 4.800000e+01 : f32
    %287 = vector.broadcast %cst_178 : f32 to vector<8x1xf32>
    %288 = arith.divf %286, %287 : vector<8x1xf32>
    %289 = vector.broadcast %281 : vector<8x1xf32> to vector<8x48xf32>
    %290 = arith.subf %275, %289 : vector<8x48xf32>
    %cst_179 = arith.constant 9.99999974E-6 : f32
    %291 = vector.broadcast %cst_179 : f32 to vector<8x1xf32>
    %292 = arith.addf %288, %291 : vector<8x1xf32>
    %293 = math.rsqrt %292 : vector<8x1xf32>
    %294 = vector.broadcast %293 : vector<8x1xf32> to vector<8x48xf32>
    %295 = arith.mulf %290, %294 : vector<8x48xf32>
    %296 = vector.broadcast %276 : vector<1x48xf32> to vector<8x48xf32>
    %297 = arith.mulf %295, %296 : vector<8x48xf32>
    %298 = vector.broadcast %277 : vector<1x48xf32> to vector<8x48xf32>
    %299 = arith.addf %297, %298 : vector<8x48xf32>
    %300 = arith.truncf %299 : vector<8x48xf32> to vector<8x48xbf16>
    %c0_180 = arith.constant 0 : index
    %c0_181 = arith.constant 0 : index
    %301 = vector.load %arg33[%c0_180, %c0_181] : memref<8x8xf32, #tpu.memory_space<vmem>>, vector<8x8xf32>
    %c0_182 = arith.constant 0 : index
    %c0_183 = arith.constant 0 : index
    %c0_184 = arith.constant 0 : index
    %302 = vector.load %arg25[%c0_182, %c0_183, %c0_184] : memref<6x48x8xbf16, #tpu.memory_space<vmem>>, vector<1x48x8xbf16>
    %303 = vector.shape_cast %302 : vector<1x48x8xbf16> to vector<48x8xbf16>
    %cst_185 = arith.constant dense<0.000000e+00> : vector<8x8xf32>
    %304 = tpu.matmul %300, %303, %cst_185 {dimension_numbers = #tpu.dot_dimension_numbers<[1], [0], [0], [1], [0, 0, 1, 1], [], []>} : vector<8x48xbf16>, vector<48x8xbf16>, vector<8x8xf32> -> vector<8x8xf32>
    %c0_186 = arith.constant 0 : index
    %c0_187 = arith.constant 0 : index
    %c0_188 = arith.constant 0 : index
    %305 = vector.load %arg28[%c0_186, %c0_187, %c0_188] : memref<6x1x8xf32, #tpu.memory_space<vmem>>, vector<1x1x8xf32>
    %306 = vector.shape_cast %305 : vector<1x1x8xf32> to vector<1x8xf32>
    %307 = vector.broadcast %306 : vector<1x8xf32> to vector<8x8xf32>
    %308 = arith.addf %304, %307 : vector<8x8xf32>
    %c0_189 = arith.constant 0 : index
    %c0_190 = arith.constant 0 : index
    %c0_191 = arith.constant 0 : index
    %309 = vector.load %arg26[%c0_189, %c0_190, %c0_191] : memref<6x48x8xbf16, #tpu.memory_space<vmem>>, vector<1x48x8xbf16>
    %310 = vector.shape_cast %309 : vector<1x48x8xbf16> to vector<48x8xbf16>
    %cst_192 = arith.constant dense<0.000000e+00> : vector<8x8xf32>
    %311 = tpu.matmul %300, %310, %cst_192 {dimension_numbers = #tpu.dot_dimension_numbers<[1], [0], [0], [1], [0, 0, 1, 1], [], []>} : vector<8x48xbf16>, vector<48x8xbf16>, vector<8x8xf32> -> vector<8x8xf32>
    %c0_193 = arith.constant 0 : index
    %c0_194 = arith.constant 0 : index
    %c0_195 = arith.constant 0 : index
    %312 = vector.load %arg29[%c0_193, %c0_194, %c0_195] : memref<6x1x8xf32, #tpu.memory_space<vmem>>, vector<1x1x8xf32>
    %313 = vector.shape_cast %312 : vector<1x1x8xf32> to vector<1x8xf32>
    %314 = vector.broadcast %313 : vector<1x8xf32> to vector<8x8xf32>
    %315 = arith.addf %311, %314 : vector<8x8xf32>
    %c0_196 = arith.constant 0 : index
    %c0_197 = arith.constant 0 : index
    %c0_198 = arith.constant 0 : index
    %316 = vector.load %arg27[%c0_196, %c0_197, %c0_198] : memref<6x48x8xbf16, #tpu.memory_space<vmem>>, vector<1x48x8xbf16>
    %317 = vector.shape_cast %316 : vector<1x48x8xbf16> to vector<48x8xbf16>
    %cst_199 = arith.constant dense<0.000000e+00> : vector<8x8xf32>
    %318 = tpu.matmul %300, %317, %cst_199 {dimension_numbers = #tpu.dot_dimension_numbers<[1], [0], [0], [1], [0, 0, 1, 1], [], []>} : vector<8x48xbf16>, vector<48x8xbf16>, vector<8x8xf32> -> vector<8x8xf32>
    %c0_200 = arith.constant 0 : index
    %c0_201 = arith.constant 0 : index
    %c0_202 = arith.constant 0 : index
    %319 = vector.load %arg30[%c0_200, %c0_201, %c0_202] : memref<6x1x8xf32, #tpu.memory_space<vmem>>, vector<1x1x8xf32>
    %320 = vector.shape_cast %319 : vector<1x1x8xf32> to vector<1x8xf32>
    %321 = vector.broadcast %320 : vector<1x8xf32> to vector<8x8xf32>
    %322 = arith.addf %318, %321 : vector<8x8xf32>
    %323 = arith.truncf %308 : vector<8x8xf32> to vector<8x8xbf16>
    %324 = arith.truncf %315 : vector<8x8xf32> to vector<8x8xbf16>
    %cst_203 = arith.constant dense<0.000000e+00> : vector<8x8xf32>
    %325 = tpu.matmul %323, %324, %cst_203 {dimension_numbers = #tpu.dot_dimension_numbers<[1], [1], [0], [0], [0, 0, 1, 0], [], []>} : vector<8x8xbf16>, vector<8x8xbf16>, vector<8x8xf32> -> vector<8x8xf32>
    %326 = arith.addf %325, %301 : vector<8x8xf32>
    %cst_204 = arith.constant dense<0xFF800000> : vector<8xf32>
    %327 = vector.multi_reduction <maximumf>, %326, %cst_204 [1] : vector<8x8xf32> to vector<8xf32>
    %328 = vector.shape_cast %327 : vector<8xf32> to vector<8x1xf32>
    %329 = vector.broadcast %328 : vector<8x1xf32> to vector<8x8xf32>
    %330 = arith.subf %326, %329 : vector<8x8xf32>
    %331 = math.exp %330 : vector<8x8xf32>
    %cst_205 = arith.constant dense<0.000000e+00> : vector<8xf32>
    %332 = vector.multi_reduction <add>, %331, %cst_205 [1] : vector<8x8xf32> to vector<8xf32>
    %333 = vector.shape_cast %332 : vector<8xf32> to vector<8x1xf32>
    %334 = tpu.reciprocal %333 {approx = true} : vector<8x1xf32> -> vector<8x1xf32>
    %335 = vector.broadcast %334 : vector<8x1xf32> to vector<8x8xf32>
    %336 = arith.mulf %331, %335 : vector<8x8xf32>
    %337 = arith.truncf %336 : vector<8x8xf32> to vector<8x8xbf16>
    %338 = arith.truncf %322 : vector<8x8xf32> to vector<8x8xbf16>
    %cst_206 = arith.constant dense<0.000000e+00> : vector<8x8xf32>
    %339 = tpu.matmul %337, %338, %cst_206 {dimension_numbers = #tpu.dot_dimension_numbers<[1], [0], [0], [1], [0, 0, 1, 1], [], []>} : vector<8x8xbf16>, vector<8x8xbf16>, vector<8x8xf32> -> vector<8x8xf32>
    %340 = arith.truncf %339 : vector<8x8xf32> to vector<8x8xbf16>
    %c0_207 = arith.constant 0 : index
    %c0_208 = arith.constant 0 : index
    %c0_209 = arith.constant 0 : index
    %341 = vector.load %arg31[%c0_207, %c0_208, %c0_209] : memref<6x8x48xbf16, #tpu.memory_space<vmem>>, vector<1x8x48xbf16>
    %342 = vector.shape_cast %341 : vector<1x8x48xbf16> to vector<8x48xbf16>
    %cst_210 = arith.constant dense<0.000000e+00> : vector<8x48xf32>
    %343 = tpu.matmul %340, %342, %cst_210 {dimension_numbers = #tpu.dot_dimension_numbers<[1], [0], [0], [1], [0, 0, 1, 1], [], []>} : vector<8x8xbf16>, vector<8x48xbf16>, vector<8x48xf32> -> vector<8x48xf32>
    %c1_211 = arith.constant 1 : index
    %c0_212 = arith.constant 0 : index
    %c0_213 = arith.constant 0 : index
    %344 = vector.load %arg25[%c1_211, %c0_212, %c0_213] : memref<6x48x8xbf16, #tpu.memory_space<vmem>>, vector<1x48x8xbf16>
    %345 = vector.shape_cast %344 : vector<1x48x8xbf16> to vector<48x8xbf16>
    %cst_214 = arith.constant dense<0.000000e+00> : vector<8x8xf32>
    %346 = tpu.matmul %300, %345, %cst_214 {dimension_numbers = #tpu.dot_dimension_numbers<[1], [0], [0], [1], [0, 0, 1, 1], [], []>} : vector<8x48xbf16>, vector<48x8xbf16>, vector<8x8xf32> -> vector<8x8xf32>
    %c1_215 = arith.constant 1 : index
    %c0_216 = arith.constant 0 : index
    %c0_217 = arith.constant 0 : index
    %347 = vector.load %arg28[%c1_215, %c0_216, %c0_217] : memref<6x1x8xf32, #tpu.memory_space<vmem>>, vector<1x1x8xf32>
    %348 = vector.shape_cast %347 : vector<1x1x8xf32> to vector<1x8xf32>
    %349 = vector.broadcast %348 : vector<1x8xf32> to vector<8x8xf32>
    %350 = arith.addf %346, %349 : vector<8x8xf32>
    %c1_218 = arith.constant 1 : index
    %c0_219 = arith.constant 0 : index
    %c0_220 = arith.constant 0 : index
    %351 = vector.load %arg26[%c1_218, %c0_219, %c0_220] : memref<6x48x8xbf16, #tpu.memory_space<vmem>>, vector<1x48x8xbf16>
    %352 = vector.shape_cast %351 : vector<1x48x8xbf16> to vector<48x8xbf16>
    %cst_221 = arith.constant dense<0.000000e+00> : vector<8x8xf32>
    %353 = tpu.matmul %300, %352, %cst_221 {dimension_numbers = #tpu.dot_dimension_numbers<[1], [0], [0], [1], [0, 0, 1, 1], [], []>} : vector<8x48xbf16>, vector<48x8xbf16>, vector<8x8xf32> -> vector<8x8xf32>
    %c1_222 = arith.constant 1 : index
    %c0_223 = arith.constant 0 : index
    %c0_224 = arith.constant 0 : index
    %354 = vector.load %arg29[%c1_222, %c0_223, %c0_224] : memref<6x1x8xf32, #tpu.memory_space<vmem>>, vector<1x1x8xf32>
    %355 = vector.shape_cast %354 : vector<1x1x8xf32> to vector<1x8xf32>
    %356 = vector.broadcast %355 : vector<1x8xf32> to vector<8x8xf32>
    %357 = arith.addf %353, %356 : vector<8x8xf32>
    %c1_225 = arith.constant 1 : index
    %c0_226 = arith.constant 0 : index
    %c0_227 = arith.constant 0 : index
    %358 = vector.load %arg27[%c1_225, %c0_226, %c0_227] : memref<6x48x8xbf16, #tpu.memory_space<vmem>>, vector<1x48x8xbf16>
    %359 = vector.shape_cast %358 : vector<1x48x8xbf16> to vector<48x8xbf16>
    %cst_228 = arith.constant dense<0.000000e+00> : vector<8x8xf32>
    %360 = tpu.matmul %300, %359, %cst_228 {dimension_numbers = #tpu.dot_dimension_numbers<[1], [0], [0], [1], [0, 0, 1, 1], [], []>} : vector<8x48xbf16>, vector<48x8xbf16>, vector<8x8xf32> -> vector<8x8xf32>
    %c1_229 = arith.constant 1 : index
    %c0_230 = arith.constant 0 : index
    %c0_231 = arith.constant 0 : index
    %361 = vector.load %arg30[%c1_229, %c0_230, %c0_231] : memref<6x1x8xf32, #tpu.memory_space<vmem>>, vector<1x1x8xf32>
    %362 = vector.shape_cast %361 : vector<1x1x8xf32> to vector<1x8xf32>
    %363 = vector.broadcast %362 : vector<1x8xf32> to vector<8x8xf32>
    %364 = arith.addf %360, %363 : vector<8x8xf32>
    %365 = arith.truncf %350 : vector<8x8xf32> to vector<8x8xbf16>
    %366 = arith.truncf %357 : vector<8x8xf32> to vector<8x8xbf16>
    %cst_232 = arith.constant dense<0.000000e+00> : vector<8x8xf32>
    %367 = tpu.matmul %365, %366, %cst_232 {dimension_numbers = #tpu.dot_dimension_numbers<[1], [1], [0], [0], [0, 0, 1, 0], [], []>} : vector<8x8xbf16>, vector<8x8xbf16>, vector<8x8xf32> -> vector<8x8xf32>
    %368 = arith.addf %367, %301 : vector<8x8xf32>
    %cst_233 = arith.constant dense<0xFF800000> : vector<8xf32>
    %369 = vector.multi_reduction <maximumf>, %368, %cst_233 [1] : vector<8x8xf32> to vector<8xf32>
    %370 = vector.shape_cast %369 : vector<8xf32> to vector<8x1xf32>
    %371 = vector.broadcast %370 : vector<8x1xf32> to vector<8x8xf32>
    %372 = arith.subf %368, %371 : vector<8x8xf32>
    %373 = math.exp %372 : vector<8x8xf32>
    %cst_234 = arith.constant dense<0.000000e+00> : vector<8xf32>
    %374 = vector.multi_reduction <add>, %373, %cst_234 [1] : vector<8x8xf32> to vector<8xf32>
    %375 = vector.shape_cast %374 : vector<8xf32> to vector<8x1xf32>
    %376 = tpu.reciprocal %375 {approx = true} : vector<8x1xf32> -> vector<8x1xf32>
    %377 = vector.broadcast %376 : vector<8x1xf32> to vector<8x8xf32>
    %378 = arith.mulf %373, %377 : vector<8x8xf32>
    %379 = arith.truncf %378 : vector<8x8xf32> to vector<8x8xbf16>
    %380 = arith.truncf %364 : vector<8x8xf32> to vector<8x8xbf16>
    %cst_235 = arith.constant dense<0.000000e+00> : vector<8x8xf32>
    %381 = tpu.matmul %379, %380, %cst_235 {dimension_numbers = #tpu.dot_dimension_numbers<[1], [0], [0], [1], [0, 0, 1, 1], [], []>} : vector<8x8xbf16>, vector<8x8xbf16>, vector<8x8xf32> -> vector<8x8xf32>
    %382 = arith.truncf %381 : vector<8x8xf32> to vector<8x8xbf16>
    %c1_236 = arith.constant 1 : index
    %c0_237 = arith.constant 0 : index
    %c0_238 = arith.constant 0 : index
    %383 = vector.load %arg31[%c1_236, %c0_237, %c0_238] : memref<6x8x48xbf16, #tpu.memory_space<vmem>>, vector<1x8x48xbf16>
    %384 = vector.shape_cast %383 : vector<1x8x48xbf16> to vector<8x48xbf16>
    %cst_239 = arith.constant dense<0.000000e+00> : vector<8x48xf32>
    %385 = tpu.matmul %382, %384, %cst_239 {dimension_numbers = #tpu.dot_dimension_numbers<[1], [0], [0], [1], [0, 0, 1, 1], [], []>} : vector<8x8xbf16>, vector<8x48xbf16>, vector<8x48xf32> -> vector<8x48xf32>
    %386 = arith.addf %343, %385 : vector<8x48xf32>
    %c2_240 = arith.constant 2 : index
    %c0_241 = arith.constant 0 : index
    %c0_242 = arith.constant 0 : index
    %387 = vector.load %arg25[%c2_240, %c0_241, %c0_242] : memref<6x48x8xbf16, #tpu.memory_space<vmem>>, vector<1x48x8xbf16>
    %388 = vector.shape_cast %387 : vector<1x48x8xbf16> to vector<48x8xbf16>
    %cst_243 = arith.constant dense<0.000000e+00> : vector<8x8xf32>
    %389 = tpu.matmul %300, %388, %cst_243 {dimension_numbers = #tpu.dot_dimension_numbers<[1], [0], [0], [1], [0, 0, 1, 1], [], []>} : vector<8x48xbf16>, vector<48x8xbf16>, vector<8x8xf32> -> vector<8x8xf32>
    %c2_244 = arith.constant 2 : index
    %c0_245 = arith.constant 0 : index
    %c0_246 = arith.constant 0 : index
    %390 = vector.load %arg28[%c2_244, %c0_245, %c0_246] : memref<6x1x8xf32, #tpu.memory_space<vmem>>, vector<1x1x8xf32>
    %391 = vector.shape_cast %390 : vector<1x1x8xf32> to vector<1x8xf32>
    %392 = vector.broadcast %391 : vector<1x8xf32> to vector<8x8xf32>
    %393 = arith.addf %389, %392 : vector<8x8xf32>
    %c2_247 = arith.constant 2 : index
    %c0_248 = arith.constant 0 : index
    %c0_249 = arith.constant 0 : index
    %394 = vector.load %arg26[%c2_247, %c0_248, %c0_249] : memref<6x48x8xbf16, #tpu.memory_space<vmem>>, vector<1x48x8xbf16>
    %395 = vector.shape_cast %394 : vector<1x48x8xbf16> to vector<48x8xbf16>
    %cst_250 = arith.constant dense<0.000000e+00> : vector<8x8xf32>
    %396 = tpu.matmul %300, %395, %cst_250 {dimension_numbers = #tpu.dot_dimension_numbers<[1], [0], [0], [1], [0, 0, 1, 1], [], []>} : vector<8x48xbf16>, vector<48x8xbf16>, vector<8x8xf32> -> vector<8x8xf32>
    %c2_251 = arith.constant 2 : index
    %c0_252 = arith.constant 0 : index
    %c0_253 = arith.constant 0 : index
    %397 = vector.load %arg29[%c2_251, %c0_252, %c0_253] : memref<6x1x8xf32, #tpu.memory_space<vmem>>, vector<1x1x8xf32>
    %398 = vector.shape_cast %397 : vector<1x1x8xf32> to vector<1x8xf32>
    %399 = vector.broadcast %398 : vector<1x8xf32> to vector<8x8xf32>
    %400 = arith.addf %396, %399 : vector<8x8xf32>
    %c2_254 = arith.constant 2 : index
    %c0_255 = arith.constant 0 : index
    %c0_256 = arith.constant 0 : index
    %401 = vector.load %arg27[%c2_254, %c0_255, %c0_256] : memref<6x48x8xbf16, #tpu.memory_space<vmem>>, vector<1x48x8xbf16>
    %402 = vector.shape_cast %401 : vector<1x48x8xbf16> to vector<48x8xbf16>
    %cst_257 = arith.constant dense<0.000000e+00> : vector<8x8xf32>
    %403 = tpu.matmul %300, %402, %cst_257 {dimension_numbers = #tpu.dot_dimension_numbers<[1], [0], [0], [1], [0, 0, 1, 1], [], []>} : vector<8x48xbf16>, vector<48x8xbf16>, vector<8x8xf32> -> vector<8x8xf32>
    %c2_258 = arith.constant 2 : index
    %c0_259 = arith.constant 0 : index
    %c0_260 = arith.constant 0 : index
    %404 = vector.load %arg30[%c2_258, %c0_259, %c0_260] : memref<6x1x8xf32, #tpu.memory_space<vmem>>, vector<1x1x8xf32>
    %405 = vector.shape_cast %404 : vector<1x1x8xf32> to vector<1x8xf32>
    %406 = vector.broadcast %405 : vector<1x8xf32> to vector<8x8xf32>
    %407 = arith.addf %403, %406 : vector<8x8xf32>
    %408 = arith.truncf %393 : vector<8x8xf32> to vector<8x8xbf16>
    %409 = arith.truncf %400 : vector<8x8xf32> to vector<8x8xbf16>
    %cst_261 = arith.constant dense<0.000000e+00> : vector<8x8xf32>
    %410 = tpu.matmul %408, %409, %cst_261 {dimension_numbers = #tpu.dot_dimension_numbers<[1], [1], [0], [0], [0, 0, 1, 0], [], []>} : vector<8x8xbf16>, vector<8x8xbf16>, vector<8x8xf32> -> vector<8x8xf32>
    %411 = arith.addf %410, %301 : vector<8x8xf32>
    %cst_262 = arith.constant dense<0xFF800000> : vector<8xf32>
    %412 = vector.multi_reduction <maximumf>, %411, %cst_262 [1] : vector<8x8xf32> to vector<8xf32>
    %413 = vector.shape_cast %412 : vector<8xf32> to vector<8x1xf32>
    %414 = vector.broadcast %413 : vector<8x1xf32> to vector<8x8xf32>
    %415 = arith.subf %411, %414 : vector<8x8xf32>
    %416 = math.exp %415 : vector<8x8xf32>
    %cst_263 = arith.constant dense<0.000000e+00> : vector<8xf32>
    %417 = vector.multi_reduction <add>, %416, %cst_263 [1] : vector<8x8xf32> to vector<8xf32>
    %418 = vector.shape_cast %417 : vector<8xf32> to vector<8x1xf32>
    %419 = tpu.reciprocal %418 {approx = true} : vector<8x1xf32> -> vector<8x1xf32>
    %420 = vector.broadcast %419 : vector<8x1xf32> to vector<8x8xf32>
    %421 = arith.mulf %416, %420 : vector<8x8xf32>
    %422 = arith.truncf %421 : vector<8x8xf32> to vector<8x8xbf16>
    %423 = arith.truncf %407 : vector<8x8xf32> to vector<8x8xbf16>
    %cst_264 = arith.constant dense<0.000000e+00> : vector<8x8xf32>
    %424 = tpu.matmul %422, %423, %cst_264 {dimension_numbers = #tpu.dot_dimension_numbers<[1], [0], [0], [1], [0, 0, 1, 1], [], []>} : vector<8x8xbf16>, vector<8x8xbf16>, vector<8x8xf32> -> vector<8x8xf32>
    %425 = arith.truncf %424 : vector<8x8xf32> to vector<8x8xbf16>
    %c2_265 = arith.constant 2 : index
    %c0_266 = arith.constant 0 : index
    %c0_267 = arith.constant 0 : index
    %426 = vector.load %arg31[%c2_265, %c0_266, %c0_267] : memref<6x8x48xbf16, #tpu.memory_space<vmem>>, vector<1x8x48xbf16>
    %427 = vector.shape_cast %426 : vector<1x8x48xbf16> to vector<8x48xbf16>
    %cst_268 = arith.constant dense<0.000000e+00> : vector<8x48xf32>
    %428 = tpu.matmul %425, %427, %cst_268 {dimension_numbers = #tpu.dot_dimension_numbers<[1], [0], [0], [1], [0, 0, 1, 1], [], []>} : vector<8x8xbf16>, vector<8x48xbf16>, vector<8x48xf32> -> vector<8x48xf32>
    %429 = arith.addf %386, %428 : vector<8x48xf32>
    %c3_269 = arith.constant 3 : index
    %c0_270 = arith.constant 0 : index
    %c0_271 = arith.constant 0 : index
    %430 = vector.load %arg25[%c3_269, %c0_270, %c0_271] : memref<6x48x8xbf16, #tpu.memory_space<vmem>>, vector<1x48x8xbf16>
    %431 = vector.shape_cast %430 : vector<1x48x8xbf16> to vector<48x8xbf16>
    %cst_272 = arith.constant dense<0.000000e+00> : vector<8x8xf32>
    %432 = tpu.matmul %300, %431, %cst_272 {dimension_numbers = #tpu.dot_dimension_numbers<[1], [0], [0], [1], [0, 0, 1, 1], [], []>} : vector<8x48xbf16>, vector<48x8xbf16>, vector<8x8xf32> -> vector<8x8xf32>
    %c3_273 = arith.constant 3 : index
    %c0_274 = arith.constant 0 : index
    %c0_275 = arith.constant 0 : index
    %433 = vector.load %arg28[%c3_273, %c0_274, %c0_275] : memref<6x1x8xf32, #tpu.memory_space<vmem>>, vector<1x1x8xf32>
    %434 = vector.shape_cast %433 : vector<1x1x8xf32> to vector<1x8xf32>
    %435 = vector.broadcast %434 : vector<1x8xf32> to vector<8x8xf32>
    %436 = arith.addf %432, %435 : vector<8x8xf32>
    %c3_276 = arith.constant 3 : index
    %c0_277 = arith.constant 0 : index
    %c0_278 = arith.constant 0 : index
    %437 = vector.load %arg26[%c3_276, %c0_277, %c0_278] : memref<6x48x8xbf16, #tpu.memory_space<vmem>>, vector<1x48x8xbf16>
    %438 = vector.shape_cast %437 : vector<1x48x8xbf16> to vector<48x8xbf16>
    %cst_279 = arith.constant dense<0.000000e+00> : vector<8x8xf32>
    %439 = tpu.matmul %300, %438, %cst_279 {dimension_numbers = #tpu.dot_dimension_numbers<[1], [0], [0], [1], [0, 0, 1, 1], [], []>} : vector<8x48xbf16>, vector<48x8xbf16>, vector<8x8xf32> -> vector<8x8xf32>
    %c3_280 = arith.constant 3 : index
    %c0_281 = arith.constant 0 : index
    %c0_282 = arith.constant 0 : index
    %440 = vector.load %arg29[%c3_280, %c0_281, %c0_282] : memref<6x1x8xf32, #tpu.memory_space<vmem>>, vector<1x1x8xf32>
    %441 = vector.shape_cast %440 : vector<1x1x8xf32> to vector<1x8xf32>
    %442 = vector.broadcast %441 : vector<1x8xf32> to vector<8x8xf32>
    %443 = arith.addf %439, %442 : vector<8x8xf32>
    %c3_283 = arith.constant 3 : index
    %c0_284 = arith.constant 0 : index
    %c0_285 = arith.constant 0 : index
    %444 = vector.load %arg27[%c3_283, %c0_284, %c0_285] : memref<6x48x8xbf16, #tpu.memory_space<vmem>>, vector<1x48x8xbf16>
    %445 = vector.shape_cast %444 : vector<1x48x8xbf16> to vector<48x8xbf16>
    %cst_286 = arith.constant dense<0.000000e+00> : vector<8x8xf32>
    %446 = tpu.matmul %300, %445, %cst_286 {dimension_numbers = #tpu.dot_dimension_numbers<[1], [0], [0], [1], [0, 0, 1, 1], [], []>} : vector<8x48xbf16>, vector<48x8xbf16>, vector<8x8xf32> -> vector<8x8xf32>
    %c3_287 = arith.constant 3 : index
    %c0_288 = arith.constant 0 : index
    %c0_289 = arith.constant 0 : index
    %447 = vector.load %arg30[%c3_287, %c0_288, %c0_289] : memref<6x1x8xf32, #tpu.memory_space<vmem>>, vector<1x1x8xf32>
    %448 = vector.shape_cast %447 : vector<1x1x8xf32> to vector<1x8xf32>
    %449 = vector.broadcast %448 : vector<1x8xf32> to vector<8x8xf32>
    %450 = arith.addf %446, %449 : vector<8x8xf32>
    %451 = arith.truncf %436 : vector<8x8xf32> to vector<8x8xbf16>
    %452 = arith.truncf %443 : vector<8x8xf32> to vector<8x8xbf16>
    %cst_290 = arith.constant dense<0.000000e+00> : vector<8x8xf32>
    %453 = tpu.matmul %451, %452, %cst_290 {dimension_numbers = #tpu.dot_dimension_numbers<[1], [1], [0], [0], [0, 0, 1, 0], [], []>} : vector<8x8xbf16>, vector<8x8xbf16>, vector<8x8xf32> -> vector<8x8xf32>
    %454 = arith.addf %453, %301 : vector<8x8xf32>
    %cst_291 = arith.constant dense<0xFF800000> : vector<8xf32>
    %455 = vector.multi_reduction <maximumf>, %454, %cst_291 [1] : vector<8x8xf32> to vector<8xf32>
    %456 = vector.shape_cast %455 : vector<8xf32> to vector<8x1xf32>
    %457 = vector.broadcast %456 : vector<8x1xf32> to vector<8x8xf32>
    %458 = arith.subf %454, %457 : vector<8x8xf32>
    %459 = math.exp %458 : vector<8x8xf32>
    %cst_292 = arith.constant dense<0.000000e+00> : vector<8xf32>
    %460 = vector.multi_reduction <add>, %459, %cst_292 [1] : vector<8x8xf32> to vector<8xf32>
    %461 = vector.shape_cast %460 : vector<8xf32> to vector<8x1xf32>
    %462 = tpu.reciprocal %461 {approx = true} : vector<8x1xf32> -> vector<8x1xf32>
    %463 = vector.broadcast %462 : vector<8x1xf32> to vector<8x8xf32>
    %464 = arith.mulf %459, %463 : vector<8x8xf32>
    %465 = arith.truncf %464 : vector<8x8xf32> to vector<8x8xbf16>
    %466 = arith.truncf %450 : vector<8x8xf32> to vector<8x8xbf16>
    %cst_293 = arith.constant dense<0.000000e+00> : vector<8x8xf32>
    %467 = tpu.matmul %465, %466, %cst_293 {dimension_numbers = #tpu.dot_dimension_numbers<[1], [0], [0], [1], [0, 0, 1, 1], [], []>} : vector<8x8xbf16>, vector<8x8xbf16>, vector<8x8xf32> -> vector<8x8xf32>
    %468 = arith.truncf %467 : vector<8x8xf32> to vector<8x8xbf16>
    %c3_294 = arith.constant 3 : index
    %c0_295 = arith.constant 0 : index
    %c0_296 = arith.constant 0 : index
    %469 = vector.load %arg31[%c3_294, %c0_295, %c0_296] : memref<6x8x48xbf16, #tpu.memory_space<vmem>>, vector<1x8x48xbf16>
    %470 = vector.shape_cast %469 : vector<1x8x48xbf16> to vector<8x48xbf16>
    %cst_297 = arith.constant dense<0.000000e+00> : vector<8x48xf32>
    %471 = tpu.matmul %468, %470, %cst_297 {dimension_numbers = #tpu.dot_dimension_numbers<[1], [0], [0], [1], [0, 0, 1, 1], [], []>} : vector<8x8xbf16>, vector<8x48xbf16>, vector<8x48xf32> -> vector<8x48xf32>
    %472 = arith.addf %429, %471 : vector<8x48xf32>
    %c4 = arith.constant 4 : index
    %c0_298 = arith.constant 0 : index
    %c0_299 = arith.constant 0 : index
    %473 = vector.load %arg25[%c4, %c0_298, %c0_299] : memref<6x48x8xbf16, #tpu.memory_space<vmem>>, vector<1x48x8xbf16>
    %474 = vector.shape_cast %473 : vector<1x48x8xbf16> to vector<48x8xbf16>
    %cst_300 = arith.constant dense<0.000000e+00> : vector<8x8xf32>
    %475 = tpu.matmul %300, %474, %cst_300 {dimension_numbers = #tpu.dot_dimension_numbers<[1], [0], [0], [1], [0, 0, 1, 1], [], []>} : vector<8x48xbf16>, vector<48x8xbf16>, vector<8x8xf32> -> vector<8x8xf32>
    %c4_301 = arith.constant 4 : index
    %c0_302 = arith.constant 0 : index
    %c0_303 = arith.constant 0 : index
    %476 = vector.load %arg28[%c4_301, %c0_302, %c0_303] : memref<6x1x8xf32, #tpu.memory_space<vmem>>, vector<1x1x8xf32>
    %477 = vector.shape_cast %476 : vector<1x1x8xf32> to vector<1x8xf32>
    %478 = vector.broadcast %477 : vector<1x8xf32> to vector<8x8xf32>
    %479 = arith.addf %475, %478 : vector<8x8xf32>
    %c4_304 = arith.constant 4 : index
    %c0_305 = arith.constant 0 : index
    %c0_306 = arith.constant 0 : index
    %480 = vector.load %arg26[%c4_304, %c0_305, %c0_306] : memref<6x48x8xbf16, #tpu.memory_space<vmem>>, vector<1x48x8xbf16>
    %481 = vector.shape_cast %480 : vector<1x48x8xbf16> to vector<48x8xbf16>
    %cst_307 = arith.constant dense<0.000000e+00> : vector<8x8xf32>
    %482 = tpu.matmul %300, %481, %cst_307 {dimension_numbers = #tpu.dot_dimension_numbers<[1], [0], [0], [1], [0, 0, 1, 1], [], []>} : vector<8x48xbf16>, vector<48x8xbf16>, vector<8x8xf32> -> vector<8x8xf32>
    %c4_308 = arith.constant 4 : index
    %c0_309 = arith.constant 0 : index
    %c0_310 = arith.constant 0 : index
    %483 = vector.load %arg29[%c4_308, %c0_309, %c0_310] : memref<6x1x8xf32, #tpu.memory_space<vmem>>, vector<1x1x8xf32>
    %484 = vector.shape_cast %483 : vector<1x1x8xf32> to vector<1x8xf32>
    %485 = vector.broadcast %484 : vector<1x8xf32> to vector<8x8xf32>
    %486 = arith.addf %482, %485 : vector<8x8xf32>
    %c4_311 = arith.constant 4 : index
    %c0_312 = arith.constant 0 : index
    %c0_313 = arith.constant 0 : index
    %487 = vector.load %arg27[%c4_311, %c0_312, %c0_313] : memref<6x48x8xbf16, #tpu.memory_space<vmem>>, vector<1x48x8xbf16>
    %488 = vector.shape_cast %487 : vector<1x48x8xbf16> to vector<48x8xbf16>
    %cst_314 = arith.constant dense<0.000000e+00> : vector<8x8xf32>
    %489 = tpu.matmul %300, %488, %cst_314 {dimension_numbers = #tpu.dot_dimension_numbers<[1], [0], [0], [1], [0, 0, 1, 1], [], []>} : vector<8x48xbf16>, vector<48x8xbf16>, vector<8x8xf32> -> vector<8x8xf32>
    %c4_315 = arith.constant 4 : index
    %c0_316 = arith.constant 0 : index
    %c0_317 = arith.constant 0 : index
    %490 = vector.load %arg30[%c4_315, %c0_316, %c0_317] : memref<6x1x8xf32, #tpu.memory_space<vmem>>, vector<1x1x8xf32>
    %491 = vector.shape_cast %490 : vector<1x1x8xf32> to vector<1x8xf32>
    %492 = vector.broadcast %491 : vector<1x8xf32> to vector<8x8xf32>
    %493 = arith.addf %489, %492 : vector<8x8xf32>
    %494 = arith.truncf %479 : vector<8x8xf32> to vector<8x8xbf16>
    %495 = arith.truncf %486 : vector<8x8xf32> to vector<8x8xbf16>
    %cst_318 = arith.constant dense<0.000000e+00> : vector<8x8xf32>
    %496 = tpu.matmul %494, %495, %cst_318 {dimension_numbers = #tpu.dot_dimension_numbers<[1], [1], [0], [0], [0, 0, 1, 0], [], []>} : vector<8x8xbf16>, vector<8x8xbf16>, vector<8x8xf32> -> vector<8x8xf32>
    %497 = arith.addf %496, %301 : vector<8x8xf32>
    %cst_319 = arith.constant dense<0xFF800000> : vector<8xf32>
    %498 = vector.multi_reduction <maximumf>, %497, %cst_319 [1] : vector<8x8xf32> to vector<8xf32>
    %499 = vector.shape_cast %498 : vector<8xf32> to vector<8x1xf32>
    %500 = vector.broadcast %499 : vector<8x1xf32> to vector<8x8xf32>
    %501 = arith.subf %497, %500 : vector<8x8xf32>
    %502 = math.exp %501 : vector<8x8xf32>
    %cst_320 = arith.constant dense<0.000000e+00> : vector<8xf32>
    %503 = vector.multi_reduction <add>, %502, %cst_320 [1] : vector<8x8xf32> to vector<8xf32>
    %504 = vector.shape_cast %503 : vector<8xf32> to vector<8x1xf32>
    %505 = tpu.reciprocal %504 {approx = true} : vector<8x1xf32> -> vector<8x1xf32>
    %506 = vector.broadcast %505 : vector<8x1xf32> to vector<8x8xf32>
    %507 = arith.mulf %502, %506 : vector<8x8xf32>
    %508 = arith.truncf %507 : vector<8x8xf32> to vector<8x8xbf16>
    %509 = arith.truncf %493 : vector<8x8xf32> to vector<8x8xbf16>
    %cst_321 = arith.constant dense<0.000000e+00> : vector<8x8xf32>
    %510 = tpu.matmul %508, %509, %cst_321 {dimension_numbers = #tpu.dot_dimension_numbers<[1], [0], [0], [1], [0, 0, 1, 1], [], []>} : vector<8x8xbf16>, vector<8x8xbf16>, vector<8x8xf32> -> vector<8x8xf32>
    %511 = arith.truncf %510 : vector<8x8xf32> to vector<8x8xbf16>
    %c4_322 = arith.constant 4 : index
    %c0_323 = arith.constant 0 : index
    %c0_324 = arith.constant 0 : index
    %512 = vector.load %arg31[%c4_322, %c0_323, %c0_324] : memref<6x8x48xbf16, #tpu.memory_space<vmem>>, vector<1x8x48xbf16>
    %513 = vector.shape_cast %512 : vector<1x8x48xbf16> to vector<8x48xbf16>
    %cst_325 = arith.constant dense<0.000000e+00> : vector<8x48xf32>
    %514 = tpu.matmul %511, %513, %cst_325 {dimension_numbers = #tpu.dot_dimension_numbers<[1], [0], [0], [1], [0, 0, 1, 1], [], []>} : vector<8x8xbf16>, vector<8x48xbf16>, vector<8x48xf32> -> vector<8x48xf32>
    %515 = arith.addf %472, %514 : vector<8x48xf32>
    %c5 = arith.constant 5 : index
    %c0_326 = arith.constant 0 : index
    %c0_327 = arith.constant 0 : index
    %516 = vector.load %arg25[%c5, %c0_326, %c0_327] : memref<6x48x8xbf16, #tpu.memory_space<vmem>>, vector<1x48x8xbf16>
    %517 = vector.shape_cast %516 : vector<1x48x8xbf16> to vector<48x8xbf16>
    %cst_328 = arith.constant dense<0.000000e+00> : vector<8x8xf32>
    %518 = tpu.matmul %300, %517, %cst_328 {dimension_numbers = #tpu.dot_dimension_numbers<[1], [0], [0], [1], [0, 0, 1, 1], [], []>} : vector<8x48xbf16>, vector<48x8xbf16>, vector<8x8xf32> -> vector<8x8xf32>
    %c5_329 = arith.constant 5 : index
    %c0_330 = arith.constant 0 : index
    %c0_331 = arith.constant 0 : index
    %519 = vector.load %arg28[%c5_329, %c0_330, %c0_331] : memref<6x1x8xf32, #tpu.memory_space<vmem>>, vector<1x1x8xf32>
    %520 = vector.shape_cast %519 : vector<1x1x8xf32> to vector<1x8xf32>
    %521 = vector.broadcast %520 : vector<1x8xf32> to vector<8x8xf32>
    %522 = arith.addf %518, %521 : vector<8x8xf32>
    %c5_332 = arith.constant 5 : index
    %c0_333 = arith.constant 0 : index
    %c0_334 = arith.constant 0 : index
    %523 = vector.load %arg26[%c5_332, %c0_333, %c0_334] : memref<6x48x8xbf16, #tpu.memory_space<vmem>>, vector<1x48x8xbf16>
    %524 = vector.shape_cast %523 : vector<1x48x8xbf16> to vector<48x8xbf16>
    %cst_335 = arith.constant dense<0.000000e+00> : vector<8x8xf32>
    %525 = tpu.matmul %300, %524, %cst_335 {dimension_numbers = #tpu.dot_dimension_numbers<[1], [0], [0], [1], [0, 0, 1, 1], [], []>} : vector<8x48xbf16>, vector<48x8xbf16>, vector<8x8xf32> -> vector<8x8xf32>
    %c5_336 = arith.constant 5 : index
    %c0_337 = arith.constant 0 : index
    %c0_338 = arith.constant 0 : index
    %526 = vector.load %arg29[%c5_336, %c0_337, %c0_338] : memref<6x1x8xf32, #tpu.memory_space<vmem>>, vector<1x1x8xf32>
    %527 = vector.shape_cast %526 : vector<1x1x8xf32> to vector<1x8xf32>
    %528 = vector.broadcast %527 : vector<1x8xf32> to vector<8x8xf32>
    %529 = arith.addf %525, %528 : vector<8x8xf32>
    %c5_339 = arith.constant 5 : index
    %c0_340 = arith.constant 0 : index
    %c0_341 = arith.constant 0 : index
    %530 = vector.load %arg27[%c5_339, %c0_340, %c0_341] : memref<6x48x8xbf16, #tpu.memory_space<vmem>>, vector<1x48x8xbf16>
    %531 = vector.shape_cast %530 : vector<1x48x8xbf16> to vector<48x8xbf16>
    %cst_342 = arith.constant dense<0.000000e+00> : vector<8x8xf32>
    %532 = tpu.matmul %300, %531, %cst_342 {dimension_numbers = #tpu.dot_dimension_numbers<[1], [0], [0], [1], [0, 0, 1, 1], [], []>} : vector<8x48xbf16>, vector<48x8xbf16>, vector<8x8xf32> -> vector<8x8xf32>
    %c5_343 = arith.constant 5 : index
    %c0_344 = arith.constant 0 : index
    %c0_345 = arith.constant 0 : index
    %533 = vector.load %arg30[%c5_343, %c0_344, %c0_345] : memref<6x1x8xf32, #tpu.memory_space<vmem>>, vector<1x1x8xf32>
    %534 = vector.shape_cast %533 : vector<1x1x8xf32> to vector<1x8xf32>
    %535 = vector.broadcast %534 : vector<1x8xf32> to vector<8x8xf32>
    %536 = arith.addf %532, %535 : vector<8x8xf32>
    %537 = arith.truncf %522 : vector<8x8xf32> to vector<8x8xbf16>
    %538 = arith.truncf %529 : vector<8x8xf32> to vector<8x8xbf16>
    %cst_346 = arith.constant dense<0.000000e+00> : vector<8x8xf32>
    %539 = tpu.matmul %537, %538, %cst_346 {dimension_numbers = #tpu.dot_dimension_numbers<[1], [1], [0], [0], [0, 0, 1, 0], [], []>} : vector<8x8xbf16>, vector<8x8xbf16>, vector<8x8xf32> -> vector<8x8xf32>
    %540 = arith.addf %539, %301 : vector<8x8xf32>
    %cst_347 = arith.constant dense<0xFF800000> : vector<8xf32>
    %541 = vector.multi_reduction <maximumf>, %540, %cst_347 [1] : vector<8x8xf32> to vector<8xf32>
    %542 = vector.shape_cast %541 : vector<8xf32> to vector<8x1xf32>
    %543 = vector.broadcast %542 : vector<8x1xf32> to vector<8x8xf32>
    %544 = arith.subf %540, %543 : vector<8x8xf32>
    %545 = math.exp %544 : vector<8x8xf32>
    %cst_348 = arith.constant dense<0.000000e+00> : vector<8xf32>
    %546 = vector.multi_reduction <add>, %545, %cst_348 [1] : vector<8x8xf32> to vector<8xf32>
    %547 = vector.shape_cast %546 : vector<8xf32> to vector<8x1xf32>
    %548 = tpu.reciprocal %547 {approx = true} : vector<8x1xf32> -> vector<8x1xf32>
    %549 = vector.broadcast %548 : vector<8x1xf32> to vector<8x8xf32>
    %550 = arith.mulf %545, %549 : vector<8x8xf32>
    %551 = arith.truncf %550 : vector<8x8xf32> to vector<8x8xbf16>
    %552 = arith.truncf %536 : vector<8x8xf32> to vector<8x8xbf16>
    %cst_349 = arith.constant dense<0.000000e+00> : vector<8x8xf32>
    %553 = tpu.matmul %551, %552, %cst_349 {dimension_numbers = #tpu.dot_dimension_numbers<[1], [0], [0], [1], [0, 0, 1, 1], [], []>} : vector<8x8xbf16>, vector<8x8xbf16>, vector<8x8xf32> -> vector<8x8xf32>
    %554 = arith.truncf %553 : vector<8x8xf32> to vector<8x8xbf16>
    %c5_350 = arith.constant 5 : index
    %c0_351 = arith.constant 0 : index
    %c0_352 = arith.constant 0 : index
    %555 = vector.load %arg31[%c5_350, %c0_351, %c0_352] : memref<6x8x48xbf16, #tpu.memory_space<vmem>>, vector<1x8x48xbf16>
    %556 = vector.shape_cast %555 : vector<1x8x48xbf16> to vector<8x48xbf16>
    %cst_353 = arith.constant dense<0.000000e+00> : vector<8x48xf32>
    %557 = tpu.matmul %554, %556, %cst_353 {dimension_numbers = #tpu.dot_dimension_numbers<[1], [0], [0], [1], [0, 0, 1, 1], [], []>} : vector<8x8xbf16>, vector<8x48xbf16>, vector<8x48xf32> -> vector<8x48xf32>
    %558 = arith.addf %515, %557 : vector<8x48xf32>
    %559 = arith.addf %275, %558 : vector<8x48xf32>
    %c0_354 = arith.constant 0 : index
    %c0_355 = arith.constant 0 : index
    %560 = vector.load %arg32[%c0_354, %c0_355] : memref<1x48xf32, #tpu.memory_space<vmem>>, vector<1x48xf32>
    %561 = vector.broadcast %560 : vector<1x48xf32> to vector<8x48xf32>
    %562 = arith.addf %559, %561 : vector<8x48xf32>
    %c0_356 = arith.constant 0 : index
    %c0_357 = arith.constant 0 : index
    %563 = vector.load %arg34[%c0_356, %c0_357] : memref<1x48xf32, #tpu.memory_space<vmem>>, vector<1x48xf32>
    %c0_358 = arith.constant 0 : index
    %c0_359 = arith.constant 0 : index
    %564 = vector.load %arg35[%c0_358, %c0_359] : memref<1x48xf32, #tpu.memory_space<vmem>>, vector<1x48xf32>
    %cst_360 = arith.constant dense<0.000000e+00> : vector<8xf32>
    %565 = vector.multi_reduction <add>, %562, %cst_360 [1] : vector<8x48xf32> to vector<8xf32>
    %566 = vector.shape_cast %565 : vector<8xf32> to vector<8x1xf32>
    %cst_361 = arith.constant 4.800000e+01 : f32
    %567 = vector.broadcast %cst_361 : f32 to vector<8x1xf32>
    %568 = arith.divf %566, %567 : vector<8x1xf32>
    %569 = vector.broadcast %568 : vector<8x1xf32> to vector<8x48xf32>
    %570 = arith.subf %562, %569 : vector<8x48xf32>
    %571 = arith.mulf %570, %570 : vector<8x48xf32>
    %cst_362 = arith.constant dense<0.000000e+00> : vector<8xf32>
    %572 = vector.multi_reduction <add>, %571, %cst_362 [1] : vector<8x48xf32> to vector<8xf32>
    %573 = vector.shape_cast %572 : vector<8xf32> to vector<8x1xf32>
    %cst_363 = arith.constant 4.800000e+01 : f32
    %574 = vector.broadcast %cst_363 : f32 to vector<8x1xf32>
    %575 = arith.divf %573, %574 : vector<8x1xf32>
    %576 = vector.broadcast %568 : vector<8x1xf32> to vector<8x48xf32>
    %577 = arith.subf %562, %576 : vector<8x48xf32>
    %cst_364 = arith.constant 9.99999974E-6 : f32
    %578 = vector.broadcast %cst_364 : f32 to vector<8x1xf32>
    %579 = arith.addf %575, %578 : vector<8x1xf32>
    %580 = math.rsqrt %579 : vector<8x1xf32>
    %581 = vector.broadcast %580 : vector<8x1xf32> to vector<8x48xf32>
    %582 = arith.mulf %577, %581 : vector<8x48xf32>
    %583 = vector.broadcast %563 : vector<1x48xf32> to vector<8x48xf32>
    %584 = arith.mulf %582, %583 : vector<8x48xf32>
    %585 = vector.broadcast %564 : vector<1x48xf32> to vector<8x48xf32>
    %586 = arith.addf %584, %585 : vector<8x48xf32>
    %587 = arith.truncf %586 : vector<8x48xf32> to vector<8x48xbf16>
    %c0_365 = arith.constant 0 : index
    %c0_366 = arith.constant 0 : index
    %588 = vector.load %arg36[%c0_365, %c0_366] : memref<48x192xbf16, #tpu.memory_space<vmem>>, vector<48x192xbf16>
    %cst_367 = arith.constant dense<0.000000e+00> : vector<8x192xf32>
    %589 = tpu.matmul %587, %588, %cst_367 {dimension_numbers = #tpu.dot_dimension_numbers<[1], [0], [0], [1], [0, 0, 1, 1], [], []>} : vector<8x48xbf16>, vector<48x192xbf16>, vector<8x192xf32> -> vector<8x192xf32>
    %c0_368 = arith.constant 0 : index
    %c0_369 = arith.constant 0 : index
    %590 = vector.load %arg37[%c0_368, %c0_369] : memref<1x192xf32, #tpu.memory_space<vmem>>, vector<1x192xf32>
    %591 = vector.broadcast %590 : vector<1x192xf32> to vector<8x192xf32>
    %592 = arith.addf %589, %591 : vector<8x192xf32>
    %cst_370 = arith.constant 5.000000e-01 : f32
    %593 = vector.broadcast %cst_370 : f32 to vector<8x192xf32>
    %594 = arith.mulf %593, %592 : vector<8x192xf32>
    %cst_371 = arith.constant 0.707106769 : f32
    %595 = vector.broadcast %cst_371 : f32 to vector<8x192xf32>
    %596 = arith.mulf %592, %595 : vector<8x192xf32>
    %cst_372 = arith.constant 0.000000e+00 : f32
    %597 = vector.broadcast %cst_372 : f32 to vector<8x192xf32>
    %598 = arith.cmpf oge, %596, %597 : vector<8x192xf32>
    %cst_373 = arith.constant 1.000000e+00 : f32
    %cst_374 = arith.constant -1.000000e+00 : f32
    %599 = vector.broadcast %cst_373 : f32 to vector<8x192xf32>
    %600 = vector.broadcast %cst_374 : f32 to vector<8x192xf32>
    %601 = arith.select %598, %599, %600 : vector<8x192xi1>, vector<8x192xf32>
    %602 = math.absf %596 : vector<8x192xf32>
    %cst_375 = arith.constant 0.327591091 : f32
    %603 = vector.broadcast %cst_375 : f32 to vector<8x192xf32>
    %604 = arith.mulf %603, %602 : vector<8x192xf32>
    %cst_376 = arith.constant 1.000000e+00 : f32
    %605 = vector.broadcast %cst_376 : f32 to vector<8x192xf32>
    %606 = arith.addf %605, %604 : vector<8x192xf32>
    %cst_377 = arith.constant 1.000000e+00 : f32
    %607 = vector.broadcast %cst_377 : f32 to vector<8x192xf32>
    %608 = arith.divf %607, %606 : vector<8x192xf32>
    %cst_378 = arith.constant 1.06140542 : f32
    %609 = vector.broadcast %cst_378 : f32 to vector<8x192xf32>
    %610 = arith.mulf %609, %608 : vector<8x192xf32>
    %cst_379 = arith.constant -1.45315206 : f32
    %611 = vector.broadcast %cst_379 : f32 to vector<8x192xf32>
    %612 = arith.addf %610, %611 : vector<8x192xf32>
    %613 = arith.mulf %612, %608 : vector<8x192xf32>
    %cst_380 = arith.constant 1.42141378 : f32
    %614 = vector.broadcast %cst_380 : f32 to vector<8x192xf32>
    %615 = arith.addf %613, %614 : vector<8x192xf32>
    %616 = arith.mulf %615, %608 : vector<8x192xf32>
    %cst_381 = arith.constant -0.284496725 : f32
    %617 = vector.broadcast %cst_381 : f32 to vector<8x192xf32>
    %618 = arith.addf %616, %617 : vector<8x192xf32>
    %619 = arith.mulf %618, %608 : vector<8x192xf32>
    %cst_382 = arith.constant 0.254829586 : f32
    %620 = vector.broadcast %cst_382 : f32 to vector<8x192xf32>
    %621 = arith.addf %619, %620 : vector<8x192xf32>
    %622 = arith.mulf %621, %608 : vector<8x192xf32>
    %cst_383 = arith.constant 0.000000e+00 : f32
    %623 = vector.broadcast %cst_383 : f32 to vector<8x192xf32>
    %624 = arith.subf %623, %602 : vector<8x192xf32>
    %625 = arith.mulf %624, %602 : vector<8x192xf32>
    %626 = math.exp %625 : vector<8x192xf32>
    %627 = arith.mulf %622, %626 : vector<8x192xf32>
    %cst_384 = arith.constant 1.000000e+00 : f32
    %628 = vector.broadcast %cst_384 : f32 to vector<8x192xf32>
    %629 = arith.subf %628, %627 : vector<8x192xf32>
    %630 = arith.mulf %601, %629 : vector<8x192xf32>
    %cst_385 = arith.constant 1.000000e+00 : f32
    %631 = vector.broadcast %cst_385 : f32 to vector<8x192xf32>
    %632 = arith.addf %631, %630 : vector<8x192xf32>
    %633 = arith.mulf %594, %632 : vector<8x192xf32>
    %634 = arith.truncf %633 : vector<8x192xf32> to vector<8x192xbf16>
    %c0_386 = arith.constant 0 : index
    %c0_387 = arith.constant 0 : index
    %635 = vector.load %arg38[%c0_386, %c0_387] : memref<192x48xbf16, #tpu.memory_space<vmem>>, vector<192x48xbf16>
    %cst_388 = arith.constant dense<0.000000e+00> : vector<8x48xf32>
    %636 = tpu.matmul %634, %635, %cst_388 {dimension_numbers = #tpu.dot_dimension_numbers<[1], [0], [0], [1], [0, 0, 1, 1], [], []>} : vector<8x192xbf16>, vector<192x48xbf16>, vector<8x48xf32> -> vector<8x48xf32>
    %c0_389 = arith.constant 0 : index
    %c0_390 = arith.constant 0 : index
    %637 = vector.load %arg39[%c0_389, %c0_390] : memref<1x48xf32, #tpu.memory_space<vmem>>, vector<1x48xf32>
    %638 = vector.broadcast %637 : vector<1x48xf32> to vector<8x48xf32>
    %639 = arith.addf %636, %638 : vector<8x48xf32>
    %640 = arith.addf %562, %639 : vector<8x48xf32>
    %c0_391 = arith.constant 0 : index
    %c0_392 = arith.constant 0 : index
    %641 = vector.load %arg40[%c0_391, %c0_392] : memref<2x8xf32, #tpu.memory_space<vmem>>, vector<2x8xf32>
    %cst_393 = arith.constant dense<0.000000e+00> : vector<2x48xf32>
    %642 = tpu.matmul %641, %640, %cst_393 {dimension_numbers = #tpu.dot_dimension_numbers<[1], [0], [0], [1], [0, 0, 1, 1], [], []>} : vector<2x8xf32>, vector<8x48xf32>, vector<2x48xf32> -> vector<2x48xf32>
    %643 = arith.truncf %642 : vector<2x48xf32> to vector<2x48xbf16>
    %c0_394 = arith.constant 0 : index
    %c0_395 = arith.constant 0 : index
    %644 = vector.load %arg41[%c0_394, %c0_395] : memref<48x2xbf16, #tpu.memory_space<vmem>>, vector<48x2xbf16>
    %cst_396 = arith.constant dense<0.000000e+00> : vector<2x2xf32>
    %645 = tpu.matmul %643, %644, %cst_396 {dimension_numbers = #tpu.dot_dimension_numbers<[1], [0], [0], [1], [0, 0, 1, 1], [], []>} : vector<2x48xbf16>, vector<48x2xbf16>, vector<2x2xf32> -> vector<2x2xf32>
    %c0_397 = arith.constant 0 : index
    %c0_398 = arith.constant 0 : index
    %646 = vector.load %arg42[%c0_397, %c0_398] : memref<1x2xf32, #tpu.memory_space<vmem>>, vector<1x2xf32>
    %647 = vector.broadcast %646 : vector<1x2xf32> to vector<2x2xf32>
    %648 = arith.addf %645, %647 : vector<2x2xf32>
    %c0_399 = arith.constant 0 : index
    %c0_400 = arith.constant 0 : index
    %649 = vector.load %arg43[%c0_399, %c0_400] : memref<2x2xf32, #tpu.memory_space<vmem>>, vector<2x2xf32>
    tpu.vector_store %arg43[%c0_399, %c0_400], %648 {strides = array<i32>} : memref<2x2xf32, #tpu.memory_space<vmem>>, vector<2x2xf32>,
    return
  }
}

</mosaic_0001>

<bundles_post_ra>
// kernel: swin_forward.1
= control target key start
LH: loop header
LB: loop body
LE: loop exit
PB: predicated region body
PF: predicated region fallthrough
CT: control target
= control target key end

     0   :  { %s4469_s6 = smov 1   ;;  %s4470_s10 = smov 2   ;;  %s5405_s0 = inlined_call_operand.smem [shape: u32[44], index: -1, kind: input, shape index: {}] }
   0x1   :  { %s4524_s5 = sld [smem:[%s5405_s0]]   ;;  %s4471_s14 = smov 3  }
   0x2   :  { %s4529_s9 = sld [smem:[%s5405_s0 + %s4469_s6]]   ;;  %s4472_s18 = smov 4  }
   0x3   :  { %s4534_s13 = sld [smem:[%s5405_s0 + %s4470_s10]]   ;;  %s4473_s22 = smov 5  }
   0x4   :  { %s4539_s17 = sld [smem:[%s5405_s0 + %s4471_s14]]   ;;  %s4474_s26 = smov 6  }
   0x5   :  { %s4544_s21 = sld [smem:[%s5405_s0 + %s4472_s18]]   ;;  %s4475_s30 = smov 7  }
   0x6   :  { %s4549_s25 = sld [smem:[%s5405_s0 + %s4473_s22]]   ;;  %s4476_s4 = smov 8  }
   0x7   :  { %s4554_s29 = sld [smem:[%s5405_s0 + %s4474_s26]]   ;;  %s4477_s10 = smov 9  }
   0x8   :  { %s4559_s3 = sld [smem:[%s5405_s0 + %s4475_s30]]   ;;  %s4478_s15 = smov 10  }
   0x9   :  { %s4564_s8 = sld [smem:[%s5405_s0 + %s4476_s4]]   ;;  %s4479_s20 = smov 11  }
   0xa   :  { %s4569_s14 = sld [smem:[%s5405_s0 + %s4477_s10]]   ;;  %s4480_s26 = smov 12  }
   0xb   :  { %s4574_s19 = sld [smem:[%s5405_s0 + %s4478_s15]]   ;;  %s4481_s1 = smov 13  }
   0xc   :  { %s4579_s24 = sld [smem:[%s5405_s0 + %s4479_s20]]   ;;  %s4482_s7 = smov 14  }
   0xd   :  { %s4584_s30 = sld [smem:[%s5405_s0 + %s4480_s26]]   ;;  %s4483_s15 = smov 15  }
   0xe   :  { %s4589_s6 = sld [smem:[%s5405_s0 + %s4481_s1]]   ;;  %s4484_s22 = smov 16  }
   0xf   :  { %s4594_s12 = sld [smem:[%s5405_s0 + %s4482_s7]]   ;;  %s4485_s28 = smov 17  }
  0x10   :  { %s4599_s20 = sld [smem:[%s5405_s0 + %s4483_s15]]   ;;  %s4486_s7 = smov 18  }
  0x11   :  { %s4604_s27 = sld [smem:[%s5405_s0 + %s4484_s22]]   ;;  %s4487_s15 = smov 19  }
  0x12   :  { %s4609_s4 = sld [smem:[%s5405_s0 + %s4485_s28]]   ;;  %s4488_s22 = smov 20  }
  0x13   :  { %s4489_s28 = smov 21  }
  0x15   :  { %5419 = sst [smem:[#allocation5_spill]] %s4594_s12 }
  0x16   :  { %5420 = sst [smem:[#allocation6_spill]] %s4599_s20 }
  0x17   :  { %5421 = sst [smem:[#allocation7_spill]] %s4604_s27 }
  0x18   :  { %5422 = sst [smem:[#allocation8_spill]] %s4609_s4 }
  0x19   :  { %s4614_s12 = sld [smem:[%s5405_s0 + %s4486_s7]]   ;;  %s4490_s7 = smov 22  }
  0x1a   :  { %s4619_s20 = sld [smem:[%s5405_s0 + %s4487_s15]]   ;;  %s4491_s15 = smov 23  }
  0x1b   :  { %s4624_s27 = sld [smem:[%s5405_s0 + %s4488_s22]]   ;;  %s4492_s22 = smov 24  }
  0x1c   :  { %s4629_s4 = sld [smem:[%s5405_s0 + %s4489_s28]]   ;;  %s4493_s28 = smov 25  }
  0x1f   :  { %5423 = sst [smem:[#allocation9_spill]] %s4614_s12 }
  0x20   :  { %5424 = sst [smem:[#allocation10_spill]] %s4619_s20 }
  0x21   :  { %5425 = sst [smem:[#allocation11_spill]] %s4624_s27 }
  0x22   :  { %5426 = sst [smem:[#allocation12_spill]] %s4629_s4 }
  0x23   :  { %s4634_s12 = sld [smem:[%s5405_s0 + %s4490_s7]]   ;;  %s4494_s7 = smov 26  }
  0x24   :  { %s4639_s20 = sld [smem:[%s5405_s0 + %s4491_s15]]   ;;  %s4495_s15 = smov 27  }
  0x25   :  { %s4644_s27 = sld [smem:[%s5405_s0 + %s4492_s22]]   ;;  %s4496_s22 = smov 28  }
  0x26   :  { %s4649_s4 = sld [smem:[%s5405_s0 + %s4493_s28]]   ;;  %s4497_s28 = smov 29  }
  0x29   :  { %5427 = sst [smem:[#allocation13_spill]] %s4634_s12 }
  0x2a   :  { %5428 = sst [smem:[#allocation14_spill]] %s4639_s20 }
  0x2b   :  { %5429 = sst [smem:[#allocation15_spill]] %s4644_s27 }
  0x2c   :  { %5430 = sst [smem:[#allocation16_spill]] %s4649_s4 }
  0x2d   :  { %s4654_s12 = sld [smem:[%s5405_s0 + %s4494_s7]]   ;;  %s4498_s7 = smov 30  }
  0x2e   :  { %s4659_s20 = sld [smem:[%s5405_s0 + %s4495_s15]]   ;;  %s4499_s15 = smov 31  }
  0x2f   :  { %s4664_s27 = sld [smem:[%s5405_s0 + %s4496_s22]]   ;;  %s4500_s22 = smov 32  }
  0x30   :  { %s4669_s4 = sld [smem:[%s5405_s0 + %s4497_s28]]   ;;  %s4501_s28 = smov 33  }
  0x33   :  { %5431 = sst [smem:[#allocation17_spill]] %s4654_s12 }
  0x34   :  { %5432 = sst [smem:[#allocation18_spill]] %s4659_s20 }
  0x35   :  { %5433 = sst [smem:[#allocation19_spill]] %s4664_s27 }
  0x36   :  { %5434 = sst [smem:[#allocation20_spill]] %s4669_s4 }
  0x37   :  { %s4674_s12 = sld [smem:[%s5405_s0 + %s4498_s7]]   ;;  %s4502_s7 = smov 34  }
  0x38   :  { %s4679_s20 = sld [smem:[%s5405_s0 + %s4499_s15]]   ;;  %s4503_s15 = smov 35  }
  0x39   :  { %s4684_s27 = sld [smem:[%s5405_s0 + %s4500_s22]]   ;;  %s4504_s22 = smov 36  }
  0x3a   :  { %s4689_s4 = sld [smem:[%s5405_s0 + %s4501_s28]]   ;;  %s4505_s28 = smov 37  }
  0x3d   :  { %5435 = sst [smem:[#allocation21_spill]] %s4674_s12 }
  0x3e   :  { %5436 = sst [smem:[#allocation22_spill]] %s4679_s20 }
  0x3f   :  { %5437 = sst [smem:[#allocation23_spill]] %s4684_s27 }
  0x40   :  { %5438 = sst [smem:[#allocation24_spill]] %s4689_s4 }
  0x41   :  { %s4694_s12 = sld [smem:[%s5405_s0 + %s4502_s7]]   ;;  %s4506_s7 = smov 38  }
  0x42   :  { %s4699_s20 = sld [smem:[%s5405_s0 + %s4503_s15]]   ;;  %s4507_s15 = smov 39  }
  0x43   :  { %s4704_s27 = sld [smem:[%s5405_s0 + %s4504_s22]]   ;;  %s4508_s22 = smov 40  }
  0x44   :  { %s4709_s4 = sld [smem:[%s5405_s0 + %s4505_s28]]   ;;  %s4509_s28 = smov 41  }
  0x47   :  { %5439 = sst [smem:[#allocation25_spill]] %s4694_s12 }
  0x48   :  { %5440 = sst [smem:[#allocation26_spill]] %s4699_s20 }
  0x49   :  { %5441 = sst [smem:[#allocation27_spill]] %s4704_s27 }
  0x4a   :  { %5442 = sst [smem:[#allocation28_spill]] %s4709_s4 }
  0x4b   :  { %s4714_s12 = sld [smem:[%s5405_s0 + %s4506_s7]]   ;;  %s4510_s7 = smov 42  }
  0x4c   :  { %s4719_s20 = sld [smem:[%s5405_s0 + %s4507_s15]]   ;;  %s4511_s15 = smov 43  }
  0x4d   :  { %s4724_s27 = sld [smem:[%s5405_s0 + %s4508_s22]]  }
  0x4e   :  { %s4729_s4 = sld [smem:[%s5405_s0 + %s4509_s28]]  }
  0x51   :  { %5443 = sst [smem:[#allocation29_spill]] %s4714_s12 }
  0x52   :  { %5444 = sst [smem:[#allocation30_spill]] %s4719_s20 }
  0x53   :  { %s4734_s12 = sld [smem:[%s5405_s0 + %s4510_s7]]  }
  0x54   :  { %s4739_s20 = sld [smem:[%s5405_s0 + %s4511_s15]]  }
  0x55   :  { %v4138_v0 = vld [vmem:[%s4529_s9 + $0x10] sm:$0xff]  ;;  %v4137_v1 = vld [vmem:[%s4529_s9 + $0x8] sm:$0xff]  ;;  %vm214_vm0 = vcmask 392192   ;;  %v4136_v2 = vld [vmem:[%s4529_s9] sm:$0xff] }
  0x56   :  { %226 = vmatpush.bf16.msra.mxu0 %v4138_v0  ;;  %v180_v3 = vld [vmem:[%s4524_s5] sm:$0xff]  ;;  %v181_v4 = vld [vmem:[%s4524_s5 + $0x8] sm:$0xff] }
  0x57   :  { %v184_v5 = vpack.c.bf16 %v181_v4, %v180_v3 }
  0x5a   :  { %227 = vmatpush.bf16.msra.mxu0 %v4137_v1 }
  0x5e   :  { %228 = vmatpush.bf16.msra.mxu0 %v4136_v2 }
  0x61   :  { %3517 = vmatmul.msk.bf16.vlgmr.msra.gmra.mxu0 %vm214_vm0, %v184_v5 }
  0x62   :  { %92 = vsyncpa [#allocation3], 0  ;;  %v182_v6 = vld [vmem:[%s4524_s5 + $0x10] sm:$0xff]  ;;  %v183_v7 = vld [vmem:[%s4524_s5 + $0x18] sm:$0xff]  ;;  %vm242_vm1 = vcmask 195584   ;;  %v4512_v25 = vmov 24.0  }
  0x63   :  { %v185_v8 = vpack.c.bf16 %v183_v7, %v182_v6  ;;  %v192_v9 = vld [vmem:[%s4534_s13] sm:$0xff]  ;;  %v193_v13 = vld [vmem:[%s4534_s13 + $0x8] sm:$0xff]  ;;  %v194_v17 = vld [vmem:[%s4534_s13 + $0x10] sm:$0xff]  ;;  %4323 = vrcp.f32 %v4512_v25  ;;  %vm380_vm3 = vcmask 1043456   ;;  %s5445_s0 = sld [smem:[#allocation7_spill]]  ;;  %s4515_s18 = smov [#allocation2]  }
  0x64   :  { %v195_v21 = vld [vmem:[%s4534_s13 + $0x18] sm:$0xff]  ;;  %v360_v52 = vld [vmem:[%s4549_s25 + $0x8] sm:$0xf]  ;;  %v3553_v58 = vld [vmem:[%s4554_s29 + $0x14] sm:$0xf]  ;;  %s5446_s5 = sld [smem:[#allocation5_spill]] }
  0x65   :  { %v405_v53 = vld [vmem:[%s4554_s29 + $0x8] sm:$0xf]  ;;  %v370_v55 = vunpack.c.l.b16 %v360_v52  ;;  %v646_v59 = vunpack.c.l.b16 %v3553_v58  ;;  %v4139_v6 = vld [vmem:[%s4549_s25] sm:$0xff]  ;;  %v4142_v52 = vld [vmem:[%s4549_s25 + $0xc] sm:$0xff]  ;;  %s5447_s9 = sld [smem:[#allocation6_spill]] }
  0x66   :  { %v443_v54 = vld [vmem:[%s4559_s3 + $0x8] sm:$0xf]  ;;  %v415_v56 = vunpack.c.l.b16 %v405_v53  ;;  %v4140_v7 = vld [vmem:[%s4554_s29] sm:$0xff]  ;;  %s5448_s13 = sld [smem:[#allocation8_spill]] }
  0x67   :  { %v453_v57 = vunpack.c.l.b16 %v443_v54  ;;  %v372_v60 = vpack.c.b16 %v370_v55, %v370_v55  ;;  %v648_v63 = vpack.c.b16 %v646_v59, %v646_v59  ;;  %v4282_v53 = vld [vmem:[%s4544_s21] ss:$0 sm:$0xff]  ;;  %s5450_s21 = sld [smem:[#allocation12_spill]] }
  0x68   :  { %v417_v61 = vpack.c.b16 %v415_v56, %v415_v56  ;;  %s5460_s22 = sld [smem:[#allocation19_spill]] }
  0x69   :  { %v4324_v26 = vpop.eup %4323  ;;  %v455_v62 = vpack.c.b16 %v453_v57, %v453_v57  ;;  %v382_v0 = vsel %vm380_vm3, %v372_v60, 0  ;;  %v651_v4 = vsel %vm380_vm3, %v648_v63, 0  ;;  %s5461_s23 = sld [smem:[#allocation21_spill]] }
  0x6a   :  { %v256_v27 = vmul.f32 24.0, %v4324_v26  ;;  %vm260_vm2 = vweird.f32 %v4324_v26  ;;  %v420_v1 = vsel %vm380_vm3, %v417_v61, 0  ;;  %390 = vmatpush.bf16.msra.mxu1 %v382_v0  ;;  %659 = vmatpush.bf16.msrb.mxu0 %v651_v4  ;;  %s5462_s26 = sld [smem:[#allocation24_spill]] }
  0x6b   :  { %v458_v2 = vsel %vm380_vm3, %v455_v62, 0  ;;  %428 = vmatpush.bf16.msra.mxu2 %v420_v1  ;;  %s5463_s28 = sld [smem:[#allocation22_spill]] }
  0x6c   :  { %v257_v28 = vsub.f32 1.0, %v256_v27  ;;  %466 = vmatpush.bf16.msra.mxu3 %v458_v2  ;;  %s5464_s1 = sld [smem:[#allocation23_spill]] }
  0x6d   :  { %s5465_s2 = sld [smem:[#allocation27_spill]] }
  0x6e   :  { %v258_v29 = vmul.f32 %v4324_v26, %v257_v28  ;;  %391 = vmatpush.bf16.msra.mxu1 %v4139_v6  ;;  %s5466_s7 = sld [smem:[#allocation25_spill]] }
  0x6f   :  { %429 = vmatpush.bf16.msra.mxu2 %v4140_v7  ;;  %s5467_s10 = sld [smem:[#allocation26_spill]] }
  0x70   :  { %v259_v30 = vadd.f32 %v4324_v26, %v258_v29  ;;  %s5468_s11 = sld [smem:[#allocation28_spill]] }
  0x71   :  { %3518 = vmatmul.msk.bf16.gmra.mxu0 %vm214_vm0, %v185_v8  ;;  %v4141_v8 = vld [vmem:[%s4559_s3] sm:$0xff]  ;;  %s5469_s15 = sld [smem:[#allocation29_spill]] }
  0x72   :  { %v4770_v31 = vsel %vm260_vm2, %v4324_v26, %v259_v30  ;;  %467 = vmatpush.bf16.msra.mxu3 %v4141_v8  ;;  %vm483_vm2 = vcmask 64512   ;;  %s5470_s16 = sld [smem:[#allocation30_spill]] }
  0xde   :  { %v230_v10 = vpop.f32.mrf.mxu0 }
  0xdf   :  { %v4751_v11 = vadd.f32 %v230_v10, %v192_v9  ;;  %v4143_v10 = vld [vmem:[%s4554_s29 + $0xc] sm:$0xff] }
  0xe0   :  { %660 = vmatpush.bf16.msrb.mxu0 %v4143_v10 }
  0xe1   :  { %v243_v12 = vsel %vm242_vm1, %v4751_v11, 0.0 }
  0xe2   :  { %244 = vadd.xlane.f32.xlu0 %v243_v12 }
  0xe6   :  { %v232_v14 = vpop.f32.mrf.mxu0 }
  0xe7   :  { %v4756_v15 = vadd.f32 %v232_v14, %v193_v13 }
  0xe9   :  { %v246_v16 = vsel %vm242_vm1, %v4756_v15, 0.0 }
  0xea   :  { %247 = vadd.xlane.f32.xlu0 %v246_v16 }
  0xee   :  { %v235_v18 = vpop.f32.mrf.mxu0 }
  0xef   :  { %v4761_v19 = vadd.f32 %v235_v18, %v194_v17 }
  0xf1   :  { %v249_v20 = vsel %vm242_vm1, %v4761_v19, 0.0 }
  0xf2   :  { %250 = vadd.xlane.f32.xlu1 %v249_v20 }
  0xf6   :  { %v237_v22 = vpop.f32.mrf.mxu0 }
  0xf7   :  { %v4766_v23 = vadd.f32 %v237_v22, %v195_v21 }
  0xf9   :  { %v252_v24 = vsel %vm242_vm1, %v4766_v23, 0.0 }
  0xfa   :  { %253 = vadd.xlane.f32.xlu1 %v252_v24 }
 0x155   :  { %v245_v32 = vpop.xlane.xlu0 %244 }
 0x156   :  { %v262_v33 = vmul.f32 %v4770_v31, %v245_v32 }
 0x158   :  { %v4774_v34 = vsub.f32 %v4751_v11, %v262_v33 }
 0x15a   :  { %v270_v35 = vmul.f32 %v4774_v34, %v4774_v34 }
 0x15c   :  { %v274_v36 = vsel %vm242_vm1, %v270_v35, 0.0  ;;  %v3543_v35 = vld [vmem:[%s4549_s25 + $0x14] sm:$0xf] }
 0x15d   :  { %275 = vadd.xlane.f32.xlu2 %v274_v36  ;;  %v248_v37 = vpop.xlane.xlu0 %247 }
 0x15e   :  { %v263_v38 = vmul.f32 %v4770_v31, %v248_v37  ;;  %v606_v37 = vunpack.c.l.b16 %v3543_v35 }
 0x160   :  { %v4781_v39 = vsub.f32 %v4756_v15, %v263_v38 }
 0x162   :  { %v271_v40 = vmul.f32 %v4781_v39, %v4781_v39 }
 0x164   :  { %v277_v41 = vsel %vm242_vm1, %v271_v40, 0.0 }
 0x165   :  { %v251_v42 = vpop.xlane.xlu1 %250  ;;  %278 = vadd.xlane.f32.xlu2 %v277_v41  ;;  %v4281_v41 = vld [vmem:[%s4539_s17] ss:$0 sm:$0xff]  ;;  %s5449_s17 = sld [smem:[#allocation9_spill]] }
 0x166   :  { %v264_v43 = vmul.f32 %v4770_v31, %v251_v42 }
 0x168   :  { %v4788_v44 = vsub.f32 %v4761_v19, %v264_v43 }
 0x16a   :  { %v272_v45 = vmul.f32 %v4788_v44, %v4788_v44 }
 0x16c   :  { %v280_v46 = vsel %vm242_vm1, %v272_v45, 0.0  ;;  %v608_v45 = vpack.c.b16 %v606_v37, %v606_v37 }
 0x16d   :  { %v254_v47 = vpop.xlane.xlu1 %253  ;;  %281 = vadd.xlane.f32.xlu0 %v280_v46 }
 0x16e   :  { %v265_v48 = vmul.f32 %v4770_v31, %v254_v47 }
 0x170   :  { %v4795_v49 = vsub.f32 %v4766_v23, %v265_v48  ;;  %v611_v48 = vsel %vm380_vm3, %v608_v45, 0  ;;  %v3563_v45 = vld [vmem:[%s4559_s3 + $0x14] sm:$0xf] }
 0x171   :  { %619 = vmatpush.bf16.msrb.mxu3 %v611_v48  ;;  %v686_v48 = vunpack.c.l.b16 %v3563_v45 }
 0x172   :  { %v273_v50 = vmul.f32 %v4795_v49, %v4795_v49 }
 0x174   :  { %v283_v51 = vsel %vm242_vm1, %v273_v50, 0.0 }
 0x175   :  { %284 = vadd.xlane.f32.xlu1 %v283_v51  ;;  %620 = vmatpush.bf16.msrb.mxu3 %v4142_v52 }
 0x1d0   :  { %v276_v3 = vpop.xlane.xlu2 %275 }
 0x1d1   :  { %v286_v5 = vmul.f32 %v276_v3, %v4770_v31 }
 0x1d3   :  { %v290_v9 = vadd.f32 1e-05, %v286_v5 }
 0x1d5   :  { %4325 = vrsqrt.f32 %v290_v9  ;;  %vm300_vm5 = vweird.f32 %v290_v9 }
 0x1d8   :  { %v279_v12 = vpop.xlane.xlu2 %278 }
 0x1d9   :  { %v287_v13 = vmul.f32 %v279_v12, %v4770_v31 }
 0x1db   :  { %v4326_v14 = vpop.eup %4325  ;;  %v291_v16 = vadd.f32 1e-05, %v287_v13 }
 0x1dc   :  { %v295_v17 = vmul.f32 %v4326_v14, %v290_v9  ;;  %vm301_vm4 = vweird.f32 %v4326_v14 }
 0x1dd   :  { %4327 = vrsqrt.f32 %v291_v16  ;;  %vm302_vm6 = vmor %vm300_vm5, %vm301_vm4  ;;  %vm310_vm8 = vweird.f32 %v291_v16  ;;  %vm515_vm4 = vcmask 261120  }
 0x1de   :  { %v296_v18 = vmul.f32 %v4326_v14, %v295_v17 }
 0x1e0   :  { %v297_v20 = vmul.f32 0.5, %v296_v18  ;;  %v282_v21 = vpop.xlane.xlu0 %281 }
 0x1e1   :  { %v288_v22 = vmul.f32 %v282_v21, %v4770_v31 }
 0x1e2   :  { %v298_v24 = vsub.f32 1.5, %v297_v20 }
 0x1e3   :  { %v4328_v25 = vpop.eup %4327  ;;  %v292_v26 = vadd.f32 1e-05, %v288_v22 }
 0x1e4   :  { %v299_v27 = vmul.f32 %v4326_v14, %v298_v24  ;;  %v305_v28 = vmul.f32 %v4328_v25, %v291_v16  ;;  %vm311_vm7 = vweird.f32 %v4328_v25  ;;  %v4285_v24 = vld [vmem:[%s4569_s14] ss:$0 sm:$0xff] }
 0x1e5   :  { %4329 = vrsqrt.f32 %v292_v26  ;;  %vm312_vm9 = vmor %vm310_vm8, %vm311_vm7  ;;  %vm320_vm11 = vweird.f32 %v292_v26 }
 0x1e6   :  { %v306_v29 = vmul.f32 %v4328_v25, %v305_v28  ;;  %v303_v30 = vsel %vm302_vm6, %v4326_v14, %v299_v27  ;;  %v4286_v27 = vld [vmem:[%s4574_s19] ss:$0 sm:$0xff] }
 0x1e7   :  { %v334_v42 = vmul.f32 %v303_v30, %v4774_v34 }
 0x1e8   :  { %v307_v32 = vmul.f32 0.5, %v306_v29  ;;  %v285_v33 = vpop.xlane.xlu1 %284 }
 0x1e9   :  { %v289_v36 = vmul.f32 %v285_v33, %v4770_v31  ;;  %v341_v54 = vmul.f32 %v4281_v41, %v334_v42 }
 0x1ea   :  { %v308_v38 = vsub.f32 1.5, %v307_v32 }
 0x1eb   :  { %v4330_v40 = vpop.eup %4329  ;;  %v293_v43 = vadd.f32 1e-05, %v289_v36  ;;  %v348_v59 = vadd.f32 %v4282_v53, %v341_v54 }
 0x1ec   :  { %v309_v46 = vmul.f32 %v4328_v25, %v308_v38  ;;  %v315_v47 = vmul.f32 %v4330_v40, %v292_v26  ;;  %vm321_vm10 = vweird.f32 %v4330_v40  ;;  %v4284_v26 = vld [vmem:[%s4569_s14 + $0x1] ss:$0 sm:$0xff] }
 0x1ed   :  { %4331 = vrsqrt.f32 %v293_v43  ;;  %vm322_vm12 = vmor %vm320_vm11, %vm321_vm10  ;;  %vm330_vm14 = vweird.f32 %v293_v43 }
 0x1ee   :  { %v313_v50 = vsel %vm312_vm9, %v4328_v25, %v309_v46  ;;  %v316_v51 = vmul.f32 %v4330_v40, %v315_v47 }
 0x1ef   :  { %v335_v55 = vmul.f32 %v313_v50, %v4781_v39 }
 0x1f0   :  { %v317_v56 = vmul.f32 0.5, %v316_v51 }
 0x1f1   :  { %v342_v57 = vmul.f32 %v4281_v41, %v335_v55 }
 0x1f2   :  { %v318_v34 = vsub.f32 1.5, %v317_v56 }
 0x1f3   :  { %v4332_v58 = vpop.eup %4331  ;;  %v349_v60 = vadd.f32 %v4282_v53, %v342_v57 }
 0x1f4   :  { %v319_v61 = vmul.f32 %v4330_v40, %v318_v34  ;;  %v325_v62 = vmul.f32 %v4332_v58, %v293_v43  ;;  %vm331_vm13 = vweird.f32 %v4332_v58 }
 0x1f5   :  { %v4823_v63 = vpack.c.bf16 %v349_v60, %v348_v59  ;;  %vm332_vm15 = vmor %vm330_vm14, %vm331_vm13 }
 0x1f6   :  { %v326_v0 = vmul.f32 %v4332_v58, %v325_v62  ;;  %v323_v39 = vsel %vm322_vm12, %v4330_v40, %v319_v61  ;;  %v4144_v62 = vld [vmem:[%s4559_s3 + $0xc] sm:$0xff] }
 0x1f7   :  { %3523 = vmatmul.msk.bf16.vlgmr.msra.gmra.mxu1 %vm242_vm1, %v4823_v63  ;;  %3529 = vmatmul.msk.bf16.vlgmr.msra.gmra.mxu2 %vm242_vm1, %v4823_v63  ;;  %v336_v3 = vmul.f32 %v323_v39, %v4788_v44 }
 0x1f8   :  { %v327_v1 = vmul.f32 0.5, %v326_v0  ;;  %3535 = vmatmul.msk.bf16.vlgmr.msra.gmra.mxu3 %vm242_vm1, %v4823_v63  ;;  %3559 = vmatmul.msk.bf16.vlgmr.msrb.gmra.mxu0 %vm242_vm1, %v4823_v63 }
 0x1f9   :  { %v343_v6 = vmul.f32 %v4281_v41, %v336_v3 }
 0x1fa   :  { %v328_v2 = vsub.f32 1.5, %v327_v1 }
 0x1fb   :  { %v350_v9 = vadd.f32 %v4282_v53, %v343_v6 }
 0x1fc   :  { %v329_v4 = vmul.f32 %v4332_v58, %v328_v2 }
 0x1fe   :  { %v333_v5 = vsel %vm332_vm15, %v4332_v58, %v329_v4  ;;  %v4283_v58 = vld [vmem:[%s4564_s8] ss:$0 sm:$0xff] }
 0x1ff   :  { %v337_v7 = vmul.f32 %v333_v5, %v4795_v49 }
 0x201   :  { %v344_v8 = vmul.f32 %v4281_v41, %v337_v7  ;;  %v4867_v7 = vld [vmem:[%s4589_s6] sm:$0xff] }
 0x203   :  { %v351_v10 = vadd.f32 %v4282_v53, %v344_v8  ;;  %v688_v53 = vpack.c.b16 %v686_v48, %v686_v48 }
 0x205   :  { %v4835_v12 = vpack.c.bf16 %v351_v10, %v350_v9  ;;  %v691_v34 = vsel %vm380_vm3, %v688_v53, 0 }
 0x207   :  { %3524 = vmatmul.msk.bf16.gmra.mxu1 %vm242_vm1, %v4835_v12  ;;  %3530 = vmatmul.msk.bf16.gmra.mxu2 %vm242_vm1, %v4835_v12 }
 0x208   :  { %3536 = vmatmul.msk.bf16.gmra.mxu3 %vm242_vm1, %v4835_v12  ;;  %3560 = vmatmul.msk.bf16.gmra.mxu0 %vm242_vm1, %v4835_v12 }
 0x218   :  { %3549 = vmatmul.msk.bf16.vlgmr.msrb.gmra.mxu3 %vm242_vm1, %v4823_v63 }
 0x228   :  { %3550 = vmatmul.msk.bf16.gmra.mxu3 %vm242_vm1, %v4835_v12 }
 0x274   :  { %v393_v22 = vpop.f32.mrf.mxu1 }
 0x275   :  { %v662_v44 = vpop.f32.mrf.mxu0  ;;  %v394_v0 = vadd.f32 %v4283_v58, %v393_v22 }
 0x276   :  { %v663_v57 = vadd.f32 %v4284_v26, %v662_v44  ;;  %v4872_v44 = vld [vmem:[%s4589_s6 + $0x8] sm:$0xff] }
 0x27a   :  { %v431_v49 = vpop.f32.mrf.mxu2 }
 0x27b   :  { %v469_v13 = vpop.f32.mrf.mxu3  ;;  %v432_v50 = vadd.f32 %v4285_v24, %v431_v49 }
 0x27c   :  { %v470_v46 = vadd.f32 %v4286_v27, %v469_v13  ;;  %v395_v51 = vpop.f32.mrf.mxu1 }
 0x27d   :  { %v664_v14 = vpop.f32.mrf.mxu0  ;;  %v396_v61 = vadd.f32 %v4283_v58, %v395_v51 }
 0x27e   :  { %v665_v55 = vadd.f32 %v4284_v26, %v664_v14 }
 0x27f   :  { %v479_v2 = vpack.c.bf16 %v396_v61, %v394_v0 }
 0x280   :  { %v714_v60 = vpack.c.bf16 %v665_v55, %v663_v57 }
 0x282   :  { %v433_v16 = vpop.f32.mrf.mxu2  ;;  %v723_v1 = vsel %vm483_vm2, %v714_v60, 0 }
 0x283   :  { %v471_v17 = vpop.f32.mrf.mxu3  ;;  %v434_v42 = vadd.f32 %v4285_v24, %v433_v16  ;;  %v4877_v16 = vld [vmem:[%s4589_s6 + $0x10] sm:$0xff] }
 0x284   :  { %v472_v38 = vadd.f32 %v4286_v27, %v471_v17  ;;  %v398_v39 = vpop.f32.mrf.mxu1 }
 0x285   :  { %v667_v18 = vpop.f32.mrf.mxu0  ;;  %v481_v54 = vpack.c.bf16 %v434_v42, %v432_v50  ;;  %v399_v5 = vadd.f32 %v4283_v58, %v398_v39 }
 0x286   :  { %v668_v40 = vadd.f32 %v4284_v26, %v667_v18  ;;  %v562_v52 = vpack.c.bf16 %v472_v38, %v470_v46 }
 0x287   :  { %v491_v59 = vsel %vm483_vm2, %v481_v54, 0 }
 0x28a   :  { %v436_v20 = vpop.f32.mrf.mxu2 }
 0x28b   :  { %v474_v21 = vpop.f32.mrf.mxu3  ;;  %v437_v29 = vadd.f32 %v4285_v24, %v436_v20 }
 0x28c   :  { %v475_v33 = vadd.f32 %v4286_v27, %v474_v21  ;;  %v400_v3 = vpop.f32.mrf.mxu1  ;;  %v4882_v21 = vld [vmem:[%s4589_s6 + $0x18] sm:$0xff]  ;;  %s5459_s6 = sld [smem:[#allocation20_spill]] }
 0x28d   :  { %v669_v25 = vpop.f32.mrf.mxu0  ;;  %v401_v4 = vadd.f32 %v4283_v58, %v400_v3 }
 0x28e   :  { %v670_v35 = vadd.f32 %v4284_v26, %v669_v25 }
 0x28f   :  { %v480_v6 = vpack.c.bf16 %v401_v4, %v399_v5 }
 0x290   :  { %v715_v47 = vpack.c.bf16 %v670_v35, %v668_v40 }
 0x292   :  { %v438_v28 = vpop.f32.mrf.mxu2  ;;  %v726_v56 = vsel %vm483_vm2, %v715_v47, 0 }
 0x293   :  { %v439_v30 = vadd.f32 %v4285_v24, %v438_v28  ;;  %v476_v32 = vpop.f32.mrf.mxu3 }
 0x294   :  { %v477_v36 = vadd.f32 %v4286_v27, %v476_v32 }
 0x295   :  { %v482_v37 = vpack.c.bf16 %v439_v30, %v437_v29  ;;  %v4288_v29 = vld [vmem:[%s4574_s19 + $0x1] ss:$0 sm:$0xff] }
 0x296   :  { %v563_v41 = vpack.c.bf16 %v477_v36, %v475_v33 }
 0x297   :  { %v494_v43 = vsel %vm483_vm2, %v482_v37, 0 }
 0x298   :  { %576 = vmatpush.bf16.msrb.mxu2 %v563_v41  ;;  %502 = vmatpush.bf16.xpose.msrb.mxu1 %v494_v43 }
 0x29c   :  { %577 = vmatpush.bf16.msrb.mxu2 %v562_v52 }
 0x2a0   :  { %734 = vmatpush.bf16.xpose.msra.mxu2 %v726_v56  ;;  %503 = vmatpush.bf16.xpose.msrb.mxu1 %v491_v59 }
 0x2a7   :  { %3537 = vmatmul.msk.bf16.vlgmr.msrb.gmra.mxu1 %vm483_vm2, %v479_v2 }
 0x2a8   :  { %699 = vmatpush.bf16.msra.mxu1 %v691_v34  ;;  %735 = vmatpush.bf16.xpose.msra.mxu2 %v723_v1 }
 0x2ac   :  { %700 = vmatpush.bf16.msra.mxu1 %v4144_v62 }
 0x2b7   :  { %3538 = vmatmul.msk.bf16.gmra.mxu1 %vm483_vm2, %v480_v6 }
 0x2c7   :  { %3569 = vmatmul.msk.bf16.vlgmr.msra.gmra.mxu1 %vm242_vm1, %v4823_v63 }
 0x2d7   :  { %3570 = vmatmul.msk.bf16.gmra.mxu1 %vm242_vm1, %v4835_v12 }
 0x324   :  { %v505_v8 = vpop.f32.mrf.mxu1 }
 0x325   :  { %v506_v9 = vadd.f32 %v505_v8, %v4867_v7  ;;  %v622_v8 = vpop.f32.mrf.mxu3 }
 0x327   :  { %v516_v10 = vsel %vm515_vm4, %v506_v9, -inf }
 0x328   :  { %517 = vmax.xlane.f32.xlu2 %v516_v10 }
 0x32c   :  { %v507_v49 = vpop.f32.mrf.mxu1 }
 0x32d   :  { %v508_v13 = vadd.f32 %v507_v49, %v4872_v44 }
 0x32f   :  { %v519_v14 = vsel %vm515_vm4, %v508_v13, -inf }
 0x330   :  { %520 = vmax.xlane.f32.xlu0 %v519_v14  ;;  %v3582_v14 = vld [vmem:[%s4549_s25 + $0x20] sm:$0xf] }
 0x334   :  { %v510_v17 = vpop.f32.mrf.mxu1 }
 0x335   :  { %v511_v18 = vadd.f32 %v510_v17, %v4877_v16  ;;  %v894_v17 = vunpack.c.l.b16 %v3582_v14 }
 0x337   :  { %v522_v20 = vsel %vm515_vm4, %v511_v18, -inf }
 0x338   :  { %523 = vmax.xlane.f32.xlu1 %v522_v20  ;;  %v896_v20 = vpack.c.b16 %v894_v17, %v894_v17 }
 0x33c   :  { %v512_v22 = vpop.f32.mrf.mxu1 }
 0x33d   :  { %v513_v24 = vadd.f32 %v512_v22, %v4882_v21  ;;  %v899_v22 = vsel %vm380_vm3, %v896_v20, 0  ;;  %v3592_v20 = vld [vmem:[%s4554_s29 + $0x20] sm:$0xf] }
 0x33f   :  { %v525_v25 = vsel %vm515_vm4, %v513_v24, -inf }
 0x340   :  { %526 = vmax.xlane.f32.xlu2 %v525_v25  ;;  %v4287_v25 = vld [vmem:[%s4564_s8 + $0x1] ss:$0 sm:$0xff] }
 0x344   :  { %v702_v26 = vpop.f32.mrf.mxu1 }
 0x345   :  { %v703_v37 = vadd.f32 %v4288_v29, %v702_v26 }
 0x34c   :  { %v704_v27 = vpop.f32.mrf.mxu1 }
 0x34d   :  { %v705_v35 = vadd.f32 %v4288_v29, %v704_v27  ;;  %v623_v27 = vadd.f32 %v4287_v25, %v622_v8 }
 0x34f   :  { %v793_v38 = vpack.c.bf16 %v705_v35, %v703_v37 }
 0x354   :  { %v707_v28 = vpop.f32.mrf.mxu1 }
 0x355   :  { %v708_v32 = vadd.f32 %v4288_v29, %v707_v28 }
 0x35c   :  { %v709_v30 = vpop.f32.mrf.mxu1 }
 0x35d   :  { %v710_v33 = vadd.f32 %v4288_v29, %v709_v30 }
 0x35f   :  { %v794_v36 = vpack.c.bf16 %v710_v33, %v708_v32 }
 0x361   :  { %807 = vmatpush.bf16.msra.mxu3 %v794_v36  ;;  %v591_v36 = vld [vmem:[%s4579_s24] sm:$0xf] }
 0x362   :  { %v859_v37 = vsel %vm380_vm3, %v591_v36, 0 }
 0x363   :  { %868 = vmatpush.bf16.msrb.mxu1 %v859_v37 }
 0x365   :  { %808 = vmatpush.bf16.msra.mxu3 %v793_v38 }
 0x39b   :  { %v518_v40 = vpop.xlane.xlu2 %517 }
 0x39c   :  { %v528_v41 = vsub.f32 %v506_v9, %v518_v40 }
 0x39e   :  { %v532_v42 = vmul.f32 1.442695, %v528_v41 }
 0x3a0   :  { %4333 = vpow2.f32 %v532_v42 }
 0x3a3   :  { %v521_v43 = vpop.xlane.xlu0 %520 }
 0x3a4   :  { %v529_v45 = vsub.f32 %v508_v13, %v521_v43 }
 0x3a6   :  { %v4334_v46 = vpop.eup %4333  ;;  %v534_v47 = vmul.f32 1.442695, %v529_v45 }
 0x3a7   :  { %v540_v48 = vsel %vm515_vm4, %v4334_v46, 0.0 }
 0x3a8   :  { %4335 = vpow2.f32 %v534_v47  ;;  %541 = vadd.xlane.f32.xlu0 %v540_v48 }
 0x3ab   :  { %v524_v50 = vpop.xlane.xlu1 %523 }
 0x3ac   :  { %v530_v51 = vsub.f32 %v511_v18, %v524_v50  ;;  %v624_v18 = vpop.f32.mrf.mxu3 }
 0x3ad   :  { %v625_v26 = vadd.f32 %v4287_v25, %v624_v18 }
 0x3ae   :  { %v4336_v52 = vpop.eup %4335  ;;  %v536_v53 = vmul.f32 1.442695, %v530_v51 }
 0x3af   :  { %v543_v54 = vsel %vm515_vm4, %v4336_v52, 0.0  ;;  %v712_v29 = vpack.c.bf16 %v625_v26, %v623_v27  ;;  %v4146_v27 = vld [vmem:[%s4554_s29 + $0x18] sm:$0xff]  ;;  %s5452_s29 = sld [smem:[#allocation11_spill]] }
 0x3b0   :  { %4337 = vpow2.f32 %v536_v53  ;;  %544 = vadd.xlane.f32.xlu1 %v543_v54 }
 0x3b3   :  { %v527_v55 = vpop.xlane.xlu2 %526 }
 0x3b4   :  { %v531_v56 = vsub.f32 %v513_v24, %v527_v55  ;;  %v4145_v24 = vld [vmem:[%s4549_s25 + $0x18] sm:$0xff]  ;;  %v627_v28 = vpop.f32.mrf.mxu3  ;;  %s5451_s25 = sld [smem:[#allocation10_spill]] }
 0x3b5   :  { %v628_v33 = vadd.f32 %v4287_v25, %v627_v28 }
 0x3b6   :  { %v4338_v57 = vpop.eup %4337  ;;  %v538_v34 = vmul.f32 1.442695, %v531_v56 }
 0x3b7   :  { %v546_v58 = vsel %vm515_vm4, %v4338_v57, 0.0 }
 0x3b8   :  { %4339 = vpow2.f32 %v538_v34  ;;  %547 = vadd.xlane.f32.xlu2 %v546_v58 }
 0x3bc   :  { %v629_v30 = vpop.f32.mrf.mxu3 }
 0x3bd   :  { %v630_v32 = vadd.f32 %v4287_v25, %v629_v30 }
 0x3be   :  { %v4340_v59 = vpop.eup %4339 }
 0x3bf   :  { %v549_v60 = vsel %vm515_vm4, %v4340_v59, 0.0  ;;  %v713_v35 = vpack.c.bf16 %v630_v32, %v628_v33 }
 0x3c0   :  { %550 = vadd.xlane.f32.xlu0 %v549_v60 }
 0x41b   :  { %v542_v61 = vpop.xlane.xlu0 %541 }
 0x41c   :  { %4341 = vrcp.f32 %v542_v61 }
 0x422   :  { %v4342_v0 = vpop.eup %4341 }
 0x423   :  { %v545_v62 = vpop.xlane.xlu1 %544  ;;  %v556_v1 = vmul.f32 %v4342_v0, %v4334_v46 }
 0x424   :  { %4343 = vrcp.f32 %v545_v62 }
 0x42a   :  { %v4344_v39 = vpop.eup %4343 }
 0x42b   :  { %v557_v2 = vmul.f32 %v4344_v39, %v4336_v52  ;;  %v548_v4 = vpop.xlane.xlu2 %547 }
 0x42c   :  { %4345 = vrcp.f32 %v548_v4 }
 0x42d   :  { %v560_v3 = vpack.c.bf16 %v557_v2, %v556_v1 }
 0x42f   :  { %3539 = vmatmul.msk.bf16.vlgmr.msrb.gmra.mxu2 %vm515_vm4, %v560_v3 }
 0x430   :  { %907 = vmatpush.bf16.msrb.mxu2 %v899_v22  ;;  %v934_v22 = vunpack.c.l.b16 %v3592_v20 }
 0x432   :  { %v4346_v6 = vpop.eup %4345 }
 0x433   :  { %v551_v5 = vpop.xlane.xlu0 %550  ;;  %v558_v10 = vmul.f32 %v4346_v6, %v4338_v57 }
 0x434   :  { %4347 = vrcp.f32 %v551_v5  ;;  %908 = vmatpush.bf16.msrb.mxu2 %v4145_v24  ;;  %v936_v24 = vpack.c.b16 %v934_v22, %v934_v22 }
 0x436   :  { %v939_v26 = vsel %vm380_vm3, %v936_v24, 0 }
 0x437   :  { %947 = vmatpush.bf16.msrb.mxu3 %v939_v26 }
 0x43a   :  { %v4348_v9 = vpop.eup %4347 }
 0x43b   :  { %v559_v49 = vmul.f32 %v4348_v9, %v4340_v59  ;;  %948 = vmatpush.bf16.msrb.mxu3 %v4146_v27 }
 0x43d   :  { %v561_v13 = vpack.c.bf16 %v559_v49, %v558_v10 }
 0x43f   :  { %3540 = vmatmul.msk.bf16.gmra.mxu2 %vm515_vm4, %v561_v13 }
 0x44f   :  { %3571 = vmatmul.msk.bf16.vlgmr.msra.gmra.mxu2 %vm483_vm2, %v712_v29 }
 0x45f   :  { %3572 = vmatmul.msk.bf16.gmra.mxu2 %vm483_vm2, %v713_v35 }
 0x46f   :  { %3588 = vmatmul.msk.bf16.vlgmr.msrb.gmra.mxu2 %vm242_vm1, %v4823_v63 }
 0x47f   :  { %3589 = vmatmul.msk.bf16.gmra.mxu2 %vm242_vm1, %v4835_v12 }
 0x4b2   :  { %v579_v38 = vpop.f32.mrf.mxu2 }
 0x4ba   :  { %v581_v40 = vpop.f32.mrf.mxu2 }
 0x4bb   :  { %v589_v41 = vpack.c.bf16 %v581_v40, %v579_v38 }
 0x4bd   :  { %3578 = vmatmul.msk.bf16.vlgmr.msrb.gmra.mxu1 %vm483_vm2, %v589_v41 }
 0x4c2   :  { %v584_v42 = vpop.f32.mrf.mxu2 }
 0x4ca   :  { %v586_v43 = vpop.f32.mrf.mxu2 }
 0x4cb   :  { %v590_v45 = vpack.c.bf16 %v586_v43, %v584_v42  ;;  %v3575_v43 = vld [vmem:[%s4579_s24 + $0x4] sm:$0xf] }
 0x4cd   :  { %3579 = vmatmul.msk.bf16.gmra.mxu1 %vm483_vm2, %v590_v45  ;;  %v831_v45 = vsel %vm380_vm3, %v3575_v43, 0 }
 0x4ce   :  { %840 = vmatpush.bf16.msra.mxu0 %v831_v45 }
 0x4d2   :  { %v737_v46 = vpop.f32.mrf.mxu2 }
 0x4d3   :  { %v738_v47 = vadd.f32 %v737_v46, %v4867_v7  ;;  %v3602_v46 = vld [vmem:[%s4559_s3 + $0x20] sm:$0xf] }
 0x4d5   :  { %v747_v48 = vsel %vm515_vm4, %v738_v47, -inf }
 0x4d6   :  { %748 = vmax.xlane.f32.xlu1 %v747_v48  ;;  %v974_v48 = vunpack.c.l.b16 %v3602_v46 }
 0x4da   :  { %v739_v50 = vpop.f32.mrf.mxu2 }
 0x4db   :  { %v740_v51 = vadd.f32 %v739_v50, %v4872_v44  ;;  %v976_v50 = vpack.c.b16 %v974_v48, %v974_v48 }
 0x4dd   :  { %v750_v52 = vsel %vm515_vm4, %v740_v51, -inf }
 0x4de   :  { %751 = vmax.xlane.f32.xlu2 %v750_v52  ;;  %v4147_v52 = vld [vmem:[%s4559_s3 + $0x18] sm:$0xff]  ;;  %s5453_s3 = sld [smem:[#allocation13_spill]] }
 0x4e2   :  { %v742_v53 = vpop.f32.mrf.mxu2 }
 0x4e3   :  { %v743_v54 = vadd.f32 %v742_v53, %v4877_v16 }
 0x4e5   :  { %v753_v55 = vsel %vm515_vm4, %v743_v54, -inf }
 0x4e6   :  { %754 = vmax.xlane.f32.xlu0 %v753_v55 }
 0x4ea   :  { %v744_v56 = vpop.f32.mrf.mxu2 }
 0x4eb   :  { %v745_v57 = vadd.f32 %v744_v56, %v4882_v21 }
 0x4ed   :  { %v756_v34 = vsel %vm515_vm4, %v745_v57, -inf }
 0x4ee   :  { %757 = vmax.xlane.f32.xlu1 %v756_v34 }
 0x53a   :  { %v4953_v26 = vpop.f32.mrf.mxu1 }
 0x549   :  { %v749_v58 = vpop.xlane.xlu1 %748 }
 0x54a   :  { %v759_v59 = vsub.f32 %v738_v47, %v749_v58 }
 0x54c   :  { %v763_v60 = vmul.f32 1.442695, %v759_v59 }
 0x54e   :  { %4349 = vpow2.f32 %v763_v60  ;;  %v910_v60 = vpop.f32.mrf.mxu2 }
 0x551   :  { %v752_v61 = vpop.xlane.xlu2 %751 }
 0x552   :  { %v760_v62 = vsub.f32 %v740_v51, %v752_v61  ;;  %v979_v51 = vsel %vm380_vm3, %v976_v50, 0  ;;  %v4290_v61 = vld [vmem:[%s4569_s14 + $0x2] ss:$0 sm:$0xff]  ;;  %s5455_s14 = sld [smem:[#allocation17_spill]] }
 0x553   :  { %987 = vmatpush.bf16.msrb.mxu0 %v979_v51 }
 0x554   :  { %v4350_v0 = vpop.eup %4349  ;;  %v765_v39 = vmul.f32 1.442695, %v760_v62 }
 0x555   :  { %v771_v1 = vsel %vm515_vm4, %v4350_v0, 0.0 }
 0x556   :  { %4351 = vpow2.f32 %v765_v39  ;;  %772 = vadd.xlane.f32.xlu2 %v771_v1 }
 0x557   :  { %988 = vmatpush.bf16.msrb.mxu0 %v4147_v52 }
 0x559   :  { %v755_v2 = vpop.xlane.xlu0 %754 }
 0x55a   :  { %v761_v3 = vsub.f32 %v743_v54, %v755_v2 }
 0x55c   :  { %v4352_v4 = vpop.eup %4351  ;;  %v767_v5 = vmul.f32 1.442695, %v761_v3 }
 0x55d   :  { %v774_v6 = vsel %vm515_vm4, %v4352_v4, 0.0 }
 0x55e   :  { %4353 = vpow2.f32 %v767_v5  ;;  %775 = vadd.xlane.f32.xlu0 %v774_v6  ;;  %v912_v5 = vpop.f32.mrf.mxu2 }
 0x561   :  { %v758_v8 = vpop.xlane.xlu1 %757 }
 0x562   :  { %v762_v9 = vsub.f32 %v745_v57, %v758_v8  ;;  %v4289_v8 = vld [vmem:[%s4564_s8 + $0x2] ss:$0 sm:$0xff]  ;;  %s5454_s8 = sld [smem:[#allocation16_spill]] }
 0x564   :  { %v4354_v10 = vpop.eup %4353  ;;  %v769_v49 = vmul.f32 1.442695, %v762_v9  ;;  %v913_v9 = vadd.f32 %v4289_v8, %v912_v5 }
 0x565   :  { %v777_v13 = vsel %vm515_vm4, %v4354_v10, 0.0 }
 0x566   :  { %4355 = vpow2.f32 %v769_v49  ;;  %778 = vadd.xlane.f32.xlu1 %v777_v13  ;;  %v915_v49 = vpop.f32.mrf.mxu2 }
 0x56c   :  { %v4356_v14 = vpop.eup %4355 }
 0x56d   :  { %v780_v17 = vsel %vm515_vm4, %v4356_v14, 0.0 }
 0x56e   :  { %781 = vadd.xlane.f32.xlu2 %v780_v17  ;;  %v916_v17 = vadd.f32 %v4289_v8, %v915_v49 }
 0x5c9   :  { %v773_v18 = vpop.xlane.xlu2 %772 }
 0x5ca   :  { %4357 = vrcp.f32 %v773_v18 }
 0x5d0   :  { %v4358_v28 = vpop.eup %4357 }
 0x5d1   :  { %v776_v25 = vpop.xlane.xlu0 %775  ;;  %v787_v30 = vmul.f32 %v4358_v28, %v4350_v0  ;;  %v4955_v28 = vpop.f32.mrf.mxu1 }
 0x5d2   :  { %4359 = vrcp.f32 %v776_v25 }
 0x5d8   :  { %v4360_v29 = vpop.eup %4359 }
 0x5d9   :  { %v788_v32 = vmul.f32 %v4360_v29, %v4352_v4  ;;  %v779_v35 = vpop.xlane.xlu1 %778 }
 0x5da   :  { %4361 = vrcp.f32 %v779_v35 }
 0x5db   :  { %v791_v33 = vpack.c.bf16 %v788_v32, %v787_v30  ;;  %v4957_v30 = vpop.f32.mrf.mxu1 }
 0x5dd   :  { %3573 = vmatmul.msk.bf16.vlgmr.msra.gmra.mxu3 %vm515_vm4, %v791_v33  ;;  %v4291_v33 = vld [vmem:[%s4574_s19 + $0x2] ss:$0 sm:$0xff]  ;;  %s5456_s19 = sld [smem:[#allocation18_spill]] }
 0x5e0   :  { %v4362_v37 = vpop.eup %4361 }
 0x5e1   :  { %v782_v36 = vpop.xlane.xlu2 %781  ;;  %v789_v40 = vmul.f32 %v4362_v37, %v4354_v10  ;;  %v911_v10 = vadd.f32 %v4289_v8, %v910_v60 }
 0x5e2   :  { %4363 = vrcp.f32 %v782_v36 }
 0x5e3   :  { %v1000_v13 = vpack.c.bf16 %v913_v9, %v911_v10 }
 0x5e8   :  { %v4364_v38 = vpop.eup %4363 }
 0x5e9   :  { %v790_v41 = vmul.f32 %v4364_v38, %v4356_v14  ;;  %v917_v14 = vpop.f32.mrf.mxu2  ;;  %v4960_v38 = vpop.f32.mrf.mxu1 }
 0x5eb   :  { %v792_v42 = vpack.c.bf16 %v790_v41, %v789_v40 }
 0x5ed   :  { %3574 = vmatmul.msk.bf16.gmra.mxu3 %vm515_vm4, %v792_v42 }
 0x5fd   :  { %3598 = vmatmul.msk.bf16.vlgmr.msrb.gmra.mxu3 %vm242_vm1, %v4823_v63 }
 0x60d   :  { %3599 = vmatmul.msk.bf16.gmra.mxu3 %vm242_vm1, %v4835_v12 }
 0x660   :  { %v810_v47 = vpop.f32.mrf.mxu3 }
 0x668   :  { %v812_v53 = vpop.f32.mrf.mxu3 }
 0x669   :  { %v820_v54 = vpack.c.bf16 %v812_v53, %v810_v47 }
 0x66b   :  { %3576 = vmatmul.msk.bf16.vlgmr.msra.gmra.mxu0 %vm483_vm2, %v820_v54 }
 0x670   :  { %v815_v55 = vpop.f32.mrf.mxu3 }
 0x678   :  { %v817_v56 = vpop.f32.mrf.mxu3 }
 0x679   :  { %v821_v57 = vpack.c.bf16 %v817_v56, %v815_v55 }
 0x67b   :  { %3577 = vmatmul.msk.bf16.gmra.mxu0 %vm483_vm2, %v821_v57 }
 0x680   :  { %v950_v34 = vpop.f32.mrf.mxu3 }
 0x681   :  { %v951_v4 = vadd.f32 %v4290_v61, %v950_v34 }
 0x688   :  { %v952_v58 = vpop.f32.mrf.mxu3 }
 0x689   :  { %v953_v2 = vadd.f32 %v4290_v61, %v952_v58 }
 0x68b   :  { %3608 = vmatmul.msk.bf16.vlgmr.msrb.gmra.mxu0 %vm242_vm1, %v4823_v63  ;;  %v1002_v6 = vpack.c.bf16 %v953_v2, %v951_v4 }
 0x68d   :  { %v1011_v63 = vsel %vm483_vm2, %v1002_v6, 0 }
 0x690   :  { %v955_v59 = vpop.f32.mrf.mxu3 }
 0x691   :  { %v956_v0 = vadd.f32 %v4290_v61, %v955_v59 }
 0x698   :  { %v957_v62 = vpop.f32.mrf.mxu3 }
 0x699   :  { %v958_v39 = vadd.f32 %v4290_v61, %v957_v62 }
 0x69b   :  { %v1003_v1 = vpack.c.bf16 %v958_v39, %v956_v0  ;;  %3609 = vmatmul.msk.bf16.gmra.mxu0 %vm242_vm1, %v4835_v12  ;;  %v918_v12 = vadd.f32 %v4289_v8, %v917_v14 }
 0x69d   :  { %v1014_v3 = vsel %vm483_vm2, %v1003_v1, 0  ;;  %v1001_v18 = vpack.c.bf16 %v918_v12, %v916_v17 }
 0x69e   :  { %1022 = vmatpush.bf16.xpose.msra.mxu1 %v1014_v3 }
 0x6a6   :  { %1023 = vmatpush.bf16.xpose.msra.mxu1 %v1011_v63 }
 0x6ad   :  { %3610 = vmatmul.msk.bf16.vlgmr.msra.gmra.mxu1 %vm483_vm2, %v1000_v13 }
 0x6bd   :  { %3611 = vmatmul.msk.bf16.gmra.mxu1 %vm483_vm2, %v1001_v18 }
 0x6e8   :  { %v4945_v20 = vpop.f32.mrf.mxu0 }
 0x6f0   :  { %v4947_v22 = vpop.f32.mrf.mxu0 }
 0x6f8   :  { %v4949_v24 = vpop.f32.mrf.mxu0 }
 0x700   :  { %v4951_v25 = vpop.f32.mrf.mxu0 }
 0x708   :  { %v990_v27 = vpop.f32.mrf.mxu0 }
 0x709   :  { %v991_v42 = vadd.f32 %v4291_v33, %v990_v27 }
 0x710   :  { %v992_v29 = vpop.f32.mrf.mxu0 }
 0x711   :  { %v993_v40 = vadd.f32 %v4291_v33, %v992_v29 }
 0x713   :  { %v1081_v43 = vpack.c.bf16 %v993_v40, %v991_v42 }
 0x718   :  { %v995_v32 = vpop.f32.mrf.mxu0 }
 0x719   :  { %v996_v36 = vadd.f32 %v4291_v33, %v995_v32 }
 0x720   :  { %v997_v35 = vpop.f32.mrf.mxu0 }
 0x721   :  { %v998_v37 = vadd.f32 %v4291_v33, %v997_v35 }
 0x723   :  { %v1082_v41 = vpack.c.bf16 %v998_v37, %v996_v36  ;;  %v3614_v37 = vld [vmem:[%s4579_s24 + $0x8] sm:$0xf]  ;;  %s5457_s24 = sld [smem:[#allocation14_spill]] }
 0x724   :  { %v1119_v40 = vsel %vm380_vm3, %v3614_v37, 0 }
 0x725   :  { %1095 = vmatpush.bf16.msra.mxu2 %v1082_v41  ;;  %1128 = vmatpush.bf16.msra.mxu3 %v1119_v40 }
 0x729   :  { %1096 = vmatpush.bf16.msra.mxu2 %v1081_v43 }
 0x72a   :  { %v1025_v45 = vpop.f32.mrf.mxu1 }
 0x72b   :  { %v1026_v46 = vadd.f32 %v1025_v45, %v4867_v7 }
 0x72d   :  { %v1035_v47 = vsel %vm515_vm4, %v1026_v46, -inf }
 0x72e   :  { %1036 = vmax.xlane.f32.xlu0 %v1035_v47 }
 0x732   :  { %v1027_v48 = vpop.f32.mrf.mxu1 }
 0x733   :  { %v1028_v50 = vadd.f32 %v1027_v48, %v4872_v44  ;;  %v871_v48 = vadd.f32 %v4953_v26, %v4945_v20  ;;  %v876_v20 = vadd.f32 %v4957_v30, %v4949_v24 }
 0x735   :  { %v1038_v51 = vsel %vm515_vm4, %v1028_v50, -inf }
 0x736   :  { %1039 = vmax.xlane.f32.xlu1 %v1038_v51 }
 0x73a   :  { %v1030_v52 = vpop.f32.mrf.mxu1 }
 0x73b   :  { %v1031_v53 = vadd.f32 %v1030_v52, %v4877_v16  ;;  %v4292_v52 = vld [vmem:[%s4584_s30] ss:$0 sm:$0xff]  ;;  %s5458_s30 = sld [smem:[#allocation15_spill]] }
 0x73d   :  { %v1041_v54 = vsel %vm515_vm4, %v1031_v53, -inf }
 0x73e   :  { %1042 = vmax.xlane.f32.xlu2 %v1041_v54 }
 0x742   :  { %v1032_v55 = vpop.f32.mrf.mxu1 }
 0x743   :  { %v1033_v56 = vadd.f32 %v1032_v55, %v4882_v21  ;;  %v873_v55 = vadd.f32 %v4955_v28, %v4947_v22 }
 0x745   :  { %v1044_v7 = vsel %vm515_vm4, %v1033_v56, -inf }
 0x746   :  { %1045 = vmax.xlane.f32.xlu0 %v1044_v7 }
 0x7a1   :  { %v1037_v57 = vpop.xlane.xlu0 %1036 }
 0x7a2   :  { %v1047_v34 = vsub.f32 %v1026_v46, %v1037_v57 }
 0x7a4   :  { %v1051_v58 = vmul.f32 1.442695, %v1047_v34 }
 0x7a6   :  { %4365 = vpow2.f32 %v1051_v58 }
 0x7a9   :  { %v1040_v44 = vpop.xlane.xlu1 %1039 }
 0x7aa   :  { %v1048_v59 = vsub.f32 %v1028_v50, %v1040_v44 }
 0x7ac   :  { %v4366_v60 = vpop.eup %4365  ;;  %v1053_v61 = vmul.f32 1.442695, %v1048_v59  ;;  %v878_v59 = vadd.f32 %v4960_v38, %v4951_v25 }
 0x7ad   :  { %v1059_v62 = vsel %vm515_vm4, %v4366_v60, 0.0 }
 0x7ae   :  { %4367 = vpow2.f32 %v1053_v61  ;;  %1060 = vadd.xlane.f32.xlu1 %v1059_v62 }
 0x7b1   :  { %v1043_v16 = vpop.xlane.xlu2 %1042 }
 0x7b2   :  { %v1049_v0 = vsub.f32 %v1031_v53, %v1043_v16 }
 0x7b4   :  { %v4368_v39 = vpop.eup %4367  ;;  %v1055_v1 = vmul.f32 1.442695, %v1049_v0 }
 0x7b5   :  { %v1062_v21 = vsel %vm515_vm4, %v4368_v39, 0.0 }
 0x7b6   :  { %4369 = vpow2.f32 %v1055_v1  ;;  %1063 = vadd.xlane.f32.xlu2 %v1062_v21 }
 0x7b9   :  { %v1046_v2 = vpop.xlane.xlu0 %1045 }
 0x7ba   :  { %v1050_v3 = vsub.f32 %v1033_v56, %v1046_v2 }
 0x7bc   :  { %v4370_v4 = vpop.eup %4369  ;;  %v1057_v5 = vmul.f32 1.442695, %v1050_v3 }
 0x7bd   :  { %v1065_v6 = vsel %vm515_vm4, %v4370_v4, 0.0 }
 0x7be   :  { %4371 = vpow2.f32 %v1057_v5  ;;  %1066 = vadd.xlane.f32.xlu0 %v1065_v6 }
 0x7c4   :  { %v4372_v8 = vpop.eup %4371 }
 0x7c5   :  { %v1068_v63 = vsel %vm515_vm4, %v4372_v8, 0.0 }
 0x7c6   :  { %1069 = vadd.xlane.f32.xlu1 %v1068_v63 }
 0x821   :  { %v1061_v9 = vpop.xlane.xlu1 %1060 }
 0x822   :  { %4373 = vrcp.f32 %v1061_v9 }
 0x828   :  { %v4374_v49 = vpop.eup %4373 }
 0x829   :  { %v1064_v10 = vpop.xlane.xlu2 %1063  ;;  %v1075_v14 = vmul.f32 %v4374_v49, %v4366_v60 }
 0x82a   :  { %4375 = vrcp.f32 %v1064_v10 }
 0x830   :  { %v4376_v13 = vpop.eup %4375 }
 0x831   :  { %v1076_v12 = vmul.f32 %v4376_v13, %v4368_v39  ;;  %v1067_v18 = vpop.xlane.xlu0 %1066 }
 0x832   :  { %4377 = vrcp.f32 %v1067_v18 }
 0x833   :  { %v1079_v17 = vpack.c.bf16 %v1076_v12, %v1075_v14  ;;  %v1264_v14 = vld [vmem:[%s5445_s0 + $0x8] sm:$0xf] }
 0x834   :  { %v1274_v12 = vunpack.c.l.b16 %v1264_v14 }
 0x835   :  { %3612 = vmatmul.msk.bf16.vlgmr.msra.gmra.mxu2 %vm515_vm4, %v1079_v17 }
 0x836   :  { %v1276_v17 = vpack.c.b16 %v1274_v12, %v1274_v12 }
 0x838   :  { %v4378_v29 = vpop.eup %4377 }
 0x839   :  { %v1070_v27 = vpop.xlane.xlu1 %1069  ;;  %v1077_v33 = vmul.f32 %v4378_v29, %v4370_v4 }
 0x83a   :  { %4379 = vrcp.f32 %v1070_v27  ;;  %v1285_v27 = vsel %vm380_vm3, %v1276_v17, 0 }
 0x83b   :  { %1293 = vmatpush.bf16.msra.mxu0 %v1285_v27 }
 0x840   :  { %v4380_v32 = vpop.eup %4379 }
 0x841   :  { %v1078_v35 = vmul.f32 %v4380_v32, %v4372_v8 }
 0x843   :  { %v1080_v36 = vpack.c.bf16 %v1078_v35, %v1077_v33  ;;  %v4148_v33 = vld [vmem:[%s5445_s0] sm:$0xff]  ;;  %s3451_s0 = sshll.u32 %s4515_s18, 4  ;;  %s3452_s0 = int_to_ptr.vmem [resolvable:$true] %s3451_s0 }
 0x844   :  { %1294 = vmatpush.bf16.msra.mxu0 %v4148_v33 }
 0x845   :  { %3613 = vmatmul.msk.bf16.gmra.mxu2 %vm515_vm4, %v1080_v36 }
 0x8b8   :  { %v1098_v41 = vpop.f32.mrf.mxu2 }
 0x8c0   :  { %v1100_v42 = vpop.f32.mrf.mxu2 }
 0x8c1   :  { %v1108_v43 = vpack.c.bf16 %v1100_v42, %v1098_v41 }
 0x8c3   :  { %3615 = vmatmul.msk.bf16.vlgmr.msra.gmra.mxu3 %vm483_vm2, %v1108_v43 }
 0x8c8   :  { %v1103_v45 = vpop.f32.mrf.mxu2 }
 0x8d0   :  { %v1105_v46 = vpop.f32.mrf.mxu2 }
 0x8d1   :  { %v1109_v47 = vpack.c.bf16 %v1105_v46, %v1103_v45 }
 0x8d3   :  { %3616 = vmatmul.msk.bf16.gmra.mxu3 %vm483_vm2, %v1109_v47 }
 0x946   :  { %v1130_v50 = vpop.f32.mrf.mxu3 }
 0x947   :  { %v1140_v51 = vadd.f32 %v1130_v50, %v871_v48 }
 0x949   :  { %v1144_v53 = vadd.f32 %v1140_v51, %v4751_v11 }
 0x94b   :  { %v4984_v54 = vadd.f32 %v4292_v52, %v1144_v53 }
 0x94d   :  { %v1158_v56 = vsel %vm242_vm1, %v4984_v54, 0.0 }
 0x94e   :  { %1159 = vadd.xlane.f32.xlu2 %v1158_v56  ;;  %v1132_v7 = vpop.f32.mrf.mxu3 }
 0x94f   :  { %v1141_v57 = vadd.f32 %v1132_v7, %v873_v55 }
 0x951   :  { %v1145_v34 = vadd.f32 %v1141_v57, %v4756_v15 }
 0x953   :  { %v4991_v58 = vadd.f32 %v4292_v52, %v1145_v34 }
 0x955   :  { %v1161_v11 = vsel %vm242_vm1, %v4991_v58, 0.0 }
 0x956   :  { %1162 = vadd.xlane.f32.xlu0 %v1161_v11  ;;  %v1135_v26 = vpop.f32.mrf.mxu3  ;;  %v4293_v11 = vld [vmem:[%s5446_s5] ss:$0 sm:$0xff]  ;;  %s3453_s5 = sshll.u32 %s4739_s20, 4  ;;  %s3454_s5 = int_to_ptr.hbm [resolvable:$true] %s3453_s5 }
 0x957   :  { %v1142_v44 = vadd.f32 %v1135_v26, %v876_v20 }
 0x959   :  { %v1146_v22 = vadd.f32 %v1142_v44, %v4761_v19 }
 0x95b   :  { %v4998_v28 = vadd.f32 %v4292_v52, %v1146_v22 }
 0x95d   :  { %v1164_v15 = vsel %vm242_vm1, %v4998_v28, 0.0 }
 0x95e   :  { %v1137_v60 = vpop.f32.mrf.mxu3  ;;  %1165 = vadd.xlane.f32.xlu1 %v1164_v15 }
 0x95f   :  { %v1143_v61 = vadd.f32 %v1137_v60, %v878_v59 }
 0x961   :  { %v1147_v24 = vadd.f32 %v1143_v61, %v4766_v23  ;;  %v4294_v61 = vld [vmem:[%s5447_s9] ss:$0 sm:$0xff]  ;;  %s4459_s9 = scalar_lea.hbm %s4739_s20, 2 }
 0x963   :  { %v5005_v30 = vadd.f32 %v4292_v52, %v1147_v24 }
 0x965   :  { %v1167_v62 = vsel %vm242_vm1, %v5005_v30, 0.0 }
 0x966   :  { %1168 = vadd.xlane.f32.xlu2 %v1167_v62 }
 0x9c1   :  { %v1160_v19 = vpop.xlane.xlu2 %1159 }
 0x9c2   :  { %v1170_v16 = vmul.f32 %v1160_v19, %v4770_v31 }
 0x9c4   :  { %v1174_v0 = vsub.f32 %v4984_v54, %v1170_v16 }
 0x9c6   :  { %v1178_v25 = vmul.f32 %v1174_v0, %v1174_v0 }
 0x9c8   :  { %v1182_v38 = vsel %vm242_vm1, %v1178_v25, 0.0 }
 0x9c9   :  { %1183 = vadd.xlane.f32.xlu0 %v1182_v38  ;;  %v1163_v39 = vpop.xlane.xlu0 %1162 }
 0x9ca   :  { %v1171_v1 = vmul.f32 %v1163_v39, %v4770_v31 }
 0x9cc   :  { %v5014_v23 = vsub.f32 %v4991_v58, %v1171_v1 }
 0x9ce   :  { %v1179_v21 = vmul.f32 %v5014_v23, %v5014_v23 }
 0x9d0   :  { %v1185_v2 = vsel %vm242_vm1, %v1179_v21, 0.0 }
 0x9d1   :  { %1186 = vadd.xlane.f32.xlu1 %v1185_v2  ;;  %v1166_v3 = vpop.xlane.xlu1 %1165 }
 0x9d2   :  { %v1172_v4 = vmul.f32 %v1166_v3, %v4770_v31 }
 0x9d4   :  { %v5021_v5 = vsub.f32 %v4998_v28, %v1172_v4 }
 0x9d6   :  { %v1180_v6 = vmul.f32 %v5021_v5, %v5021_v5 }
 0x9d8   :  { %v1188_v8 = vsel %vm242_vm1, %v1180_v6, 0.0 }
 0x9d9   :  { %v1169_v63 = vpop.xlane.xlu2 %1168  ;;  %1189 = vadd.xlane.f32.xlu2 %v1188_v8 }
 0x9da   :  { %v1173_v9 = vmul.f32 %v1169_v63, %v4770_v31 }
 0x9dc   :  { %v5028_v10 = vsub.f32 %v5005_v30, %v1173_v9 }
 0x9de   :  { %v1181_v49 = vmul.f32 %v5028_v10, %v5028_v10 }
 0x9e0   :  { %v1191_v13 = vsel %vm242_vm1, %v1181_v49, 0.0 }
 0x9e1   :  { %1192 = vadd.xlane.f32.xlu0 %v1191_v13 }
 0xa3c   :  { %v1184_v18 = vpop.xlane.xlu0 %1183 }
 0xa3d   :  { %v1194_v29 = vmul.f32 %v1184_v18, %v4770_v31  ;;  %v4295_v18 = vld [vmem:[%s5448_s13] ss:$0 sm:$0xff] }
 0xa3f   :  { %v1198_v32 = vadd.f32 1e-05, %v1194_v29 }
 0xa41   :  { %4381 = vrsqrt.f32 %v1198_v32  ;;  %vm1208_vm6 = vweird.f32 %v1198_v32 }
 0xa44   :  { %v1187_v35 = vpop.xlane.xlu1 %1186 }
 0xa45   :  { %v1195_v36 = vmul.f32 %v1187_v35, %v4770_v31 }
 0xa47   :  { %v4382_v37 = vpop.eup %4381  ;;  %v1199_v40 = vadd.f32 1e-05, %v1195_v36 }
 0xa48   :  { %v1203_v41 = vmul.f32 %v4382_v37, %v1198_v32  ;;  %vm1209_vm5 = vweird.f32 %v4382_v37 }
 0xa49   :  { %4383 = vrsqrt.f32 %v1199_v40  ;;  %vm1210_vm7 = vmor %vm1208_vm6, %vm1209_vm5  ;;  %vm1218_vm9 = vweird.f32 %v1199_v40 }
 0xa4a   :  { %v1204_v42 = vmul.f32 %v4382_v37, %v1203_v41 }
 0xa4c   :  { %v1205_v43 = vmul.f32 0.5, %v1204_v42  ;;  %v1190_v45 = vpop.xlane.xlu2 %1189 }
 0xa4d   :  { %v1196_v46 = vmul.f32 %v1190_v45, %v4770_v31  ;;  %v4153_v45 = vld [vmem:[%s5449_s17 + $0x20] sm:$0xff] }
 0xa4e   :  { %v1206_v47 = vsub.f32 1.5, %v1205_v43 }
 0xa4f   :  { %v4384_v48 = vpop.eup %4383  ;;  %v1200_v50 = vadd.f32 1e-05, %v1196_v46 }
 0xa50   :  { %v1207_v51 = vmul.f32 %v4382_v37, %v1206_v47  ;;  %v1213_v52 = vmul.f32 %v4384_v48, %v1199_v40  ;;  %vm1219_vm8 = vweird.f32 %v4384_v48  ;;  %v4154_v40 = vld [vmem:[%s5449_s17 + $0x28] sm:$0xff] }
 0xa51   :  { %4385 = vrsqrt.f32 %v1200_v50  ;;  %vm1220_vm10 = vmor %vm1218_vm9, %vm1219_vm8  ;;  %vm1228_vm12 = vweird.f32 %v1200_v50  ;;  %1529 = vmatpush.bf16.msrb.mxu1 %v4154_v40 }
 0xa52   :  { %v1214_v53 = vmul.f32 %v4384_v48, %v1213_v52  ;;  %v1211_v55 = vsel %vm1210_vm7, %v4382_v37, %v1207_v51 }
 0xa53   :  { %v1242_v26 = vmul.f32 %v1211_v55, %v1174_v0 }
 0xa54   :  { %v1215_v56 = vmul.f32 0.5, %v1214_v53  ;;  %v1193_v7 = vpop.xlane.xlu0 %1192  ;;  %v4152_v53 = vld [vmem:[%s5449_s17 + $0x18] sm:$0xff] }
 0xa55   :  { %v1197_v57 = vmul.f32 %v1193_v7, %v4770_v31  ;;  %v1249_v24 = vmul.f32 %v4293_v11, %v1242_v26  ;;  %1530 = vmatpush.bf16.msrb.mxu1 %v4153_v45  ;;  %v4151_v26 = vld [vmem:[%s5449_s17 + $0x10] sm:$0xff] }
 0xa56   :  { %v1216_v34 = vsub.f32 1.5, %v1215_v56 }
 0xa57   :  { %v4386_v20 = vpop.eup %4385  ;;  %v1201_v44 = vadd.f32 1e-05, %v1197_v57  ;;  %v1256_v38 = vadd.f32 %v4294_v61, %v1249_v24 }
 0xa58   :  { %v1217_v22 = vmul.f32 %v4384_v48, %v1216_v34  ;;  %v1223_v59 = vmul.f32 %v4386_v20, %v1200_v50  ;;  %vm1229_vm11 = vweird.f32 %v4386_v20 }
 0xa59   :  { %4387 = vrsqrt.f32 %v1201_v44  ;;  %vm1230_vm13 = vmor %vm1228_vm12, %vm1229_vm11  ;;  %vm1238_vm15 = vweird.f32 %v1201_v44  ;;  %1531 = vmatpush.bf16.msrb.mxu1 %v4152_v53 }
 0xa5a   :  { %v1221_v15 = vsel %vm1220_vm10, %v4384_v48, %v1217_v22  ;;  %v1224_v60 = vmul.f32 %v4386_v20, %v1223_v59 }
 0xa5b   :  { %v1243_v62 = vmul.f32 %v1221_v15, %v5014_v23 }
 0xa5c   :  { %v1225_v19 = vmul.f32 0.5, %v1224_v60 }
 0xa5d   :  { %v1250_v16 = vmul.f32 %v4293_v11, %v1243_v62  ;;  %1532 = vmatpush.bf16.msrb.mxu1 %v4151_v26 }
 0xa5e   :  { %v1226_v31 = vsub.f32 1.5, %v1225_v19 }
 0xa5f   :  { %v4388_v25 = vpop.eup %4387  ;;  %v1257_v39 = vadd.f32 %v4294_v61, %v1250_v16  ;;  %v4150_v16 = vld [vmem:[%s5449_s17 + $0x8] sm:$0xff] }
 0xa60   :  { %v1227_v1 = vmul.f32 %v4386_v20, %v1226_v31  ;;  %v1233_v0 = vmul.f32 %v4388_v25, %v1201_v44  ;;  %vm1239_vm14 = vweird.f32 %v4388_v25 }
 0xa61   :  { %v1260_v21 = vpack.c.bf16 %v1257_v39, %v1256_v38  ;;  %vm1240_vm5 = vmor %vm1238_vm15, %vm1239_vm14  ;;  %1533 = vmatpush.bf16.msrb.mxu1 %v4150_v16 }
 0xa62   :  { %v1234_v2 = vmul.f32 %v4388_v25, %v1233_v0  ;;  %v1231_v3 = vsel %vm1230_vm13, %v4386_v20, %v1227_v1 }
 0xa63   :  { %3621 = vmatmul.msk.bf16.vlgmr.msra.gmra.mxu0 %vm242_vm1, %v1260_v21  ;;  %v1244_v23 = vmul.f32 %v1231_v3, %v5021_v5 }
 0xa64   :  { %v1235_v4 = vmul.f32 0.5, %v1234_v2 }
 0xa65   :  { %v1251_v49 = vmul.f32 %v4293_v11, %v1244_v23 }
 0xa66   :  { %v1236_v6 = vsub.f32 1.5, %v1235_v4  ;;  %v4149_v4 = vld [vmem:[%s5449_s17] sm:$0xff] }
 0xa67   :  { %v1258_v14 = vadd.f32 %v4294_v61, %v1251_v49  ;;  %1534 = vmatpush.bf16.msrb.mxu1 %v4149_v4 }
 0xa68   :  { %v1237_v8 = vmul.f32 %v4388_v25, %v1236_v6 }
 0xa6a   :  { %v1241_v63 = vsel %vm1240_vm5, %v4388_v25, %v1237_v8 }
 0xa6b   :  { %v1245_v9 = vmul.f32 %v1241_v63, %v5028_v10 }
 0xa6d   :  { %v1252_v13 = vmul.f32 %v4293_v11, %v1245_v9 }
 0xa6f   :  { %v1259_v12 = vadd.f32 %v4294_v61, %v1252_v13 }
 0xa71   :  { %v1261_v17 = vpack.c.bf16 %v1259_v12, %v1258_v14 }
 0xa73   :  { %3622 = vmatmul.msk.bf16.gmra.mxu0 %vm242_vm1, %v1261_v17 }
 0xae0   :  { %v1296_v27 = vpop.f32.mrf.mxu0 }
 0xae1   :  { %v5048_v29 = vadd.f32 %v4295_v18, %v1296_v27 }
 0xae3   :  { %v5051_v5 = vmul.f32 0.70710677, %v5048_v29 }
 0xae5   :  { %v1322_v32 = vand.u32 2147483647, %v5051_v5 }
 0xae7   :  { %v1326_v33 = vmul.f32 0.3275911, %v1322_v32  ;;  %v1430_v19 = vsub.f32 0.0, %v1322_v32 }
 0xae8   :  { %v1298_v10 = vpop.f32.mrf.mxu0 }
 0xae9   :  { %v1330_v35 = vadd.f32 1.0, %v1326_v33  ;;  %v5054_v36 = vadd.f32 %v4295_v18, %v1298_v10  ;;  %v1434_v3 = vmul.f32 %v1430_v19, %v1322_v32 }
 0xaeb   :  { %4389 = vrcp.f32 %v1330_v35  ;;  %v5057_v37 = vmul.f32 0.70710677, %v5054_v36  ;;  %v1345_v55 = vand.u32 2147483648, %v1330_v35  ;;  %v1343_v57 = vand.u32 2147483647, %v1330_v35 }
 0xaec   :  { %vm1339_vm7 = vweird.f32 %v1330_v35 }
 0xaed   :  { %v5061_v41 = vand.u32 2147483647, %v5057_v37  ;;  %v1346_v44 = vor.u32 1.1754944e-38, %v1345_v55  ;;  %vm1344_vm9 = vcmp.eq.f32.partialorder %v1343_v57, 8.507059e+37 }
 0xaef   :  { %v1327_v42 = vmul.f32 0.3275911, %v5061_v41  ;;  %v1431_v14 = vsub.f32 0.0, %v5061_v41 }
 0xaf0   :  { %v1301_v43 = vpop.f32.mrf.mxu0 }
 0xaf1   :  { %v4390_v46 = vpop.eup %4389  ;;  %v5065_v47 = vadd.f32 %v4295_v18, %v1301_v43  ;;  %v1331_v50 = vadd.f32 1.0, %v1327_v42  ;;  %v1435_v45 = vmul.f32 %v1431_v14, %v5061_v41 }
 0xaf2   :  { %v1335_v48 = vmul.f32 %v4390_v46, %v1330_v35  ;;  %vm1340_vm6 = vweird.f32 %v4390_v46 }
 0xaf3   :  { %v5068_v51 = vmul.f32 0.70710677, %v5065_v47  ;;  %4391 = vrcp.f32 %v1331_v50  ;;  %vm1341_vm8 = vmor %vm1339_vm7, %vm1340_vm6  ;;  %v1360_v39 = vand.u32 2147483648, %v1331_v50  ;;  %v1358_v0 = vand.u32 2147483647, %v1331_v50 }
 0xaf4   :  { %v1336_v52 = vsub.f32 1.0, %v1335_v48  ;;  %vm1354_vm11 = vweird.f32 %v1331_v50 }
 0xaf5   :  { %v5072_v56 = vand.u32 2147483647, %v5068_v51  ;;  %v1361_v9 = vor.u32 1.1754944e-38, %v1360_v39  ;;  %vm1359_vm13 = vcmp.eq.f32.partialorder %v1358_v0, 8.507059e+37 }
 0xaf6   :  { %v1337_v7 = vmul.f32 %v4390_v46, %v1336_v52 }
 0xaf7   :  { %v1328_v34 = vmul.f32 0.3275911, %v5072_v56  ;;  %v1432_v41 = vsub.f32 0.0, %v5072_v56 }
 0xaf8   :  { %v1338_v20 = vadd.f32 %v4390_v46, %v1337_v7  ;;  %v1303_v11 = vpop.f32.mrf.mxu0 }
 0xaf9   :  { %v1332_v22 = vadd.f32 1.0, %v1328_v34  ;;  %v5076_v59 = vadd.f32 %v4295_v18, %v1303_v11  ;;  %v4392_v15 = vpop.eup %4391  ;;  %v1438_v18 = vmul.f32 1.442695, %v1434_v3  ;;  %v1440_v34 = vmul.f32 1.442695, %v1435_v45 }
 0xafa   :  { %v1342_v60 = vsel %vm1341_vm8, %v4390_v46, %v1338_v20  ;;  %v1350_v24 = vmul.f32 %v4392_v15, %v1331_v50  ;;  %vm1355_vm10 = vweird.f32 %v4392_v15  ;;  %v1436_v0 = vmul.f32 %v1432_v41, %v5072_v56 }
 0xafb   :  { %v1347_v61 = vsel %vm1344_vm9, %v1346_v44, %v1342_v60  ;;  %4393 = vrcp.f32 %v1332_v22  ;;  %v5080_v25 = vmul.f32 0.70710677, %v5076_v59  ;;  %vm1356_vm12 = vmor %vm1354_vm11, %vm1355_vm10  ;;  %v1375_v10 = vand.u32 2147483648, %v1332_v22 }
 0xafc   :  { %v1394_v62 = vmul.f32 1.0614054, %v1347_v61  ;;  %v1351_v31 = vsub.f32 1.0, %v1350_v24  ;;  %v1373_v42 = vand.u32 2147483647, %v1332_v22  ;;  %vm1369_vm15 = vweird.f32 %v1332_v22 }
 0xafd   :  { %v5083_v21 = vand.u32 2147483647, %v5080_v25  ;;  %v1376_v52 = vor.u32 1.1754944e-38, %v1375_v10  ;;  %vm1314_vm9 = vcmp.ge.f32.partialorder %v5051_v5, 0.0 }
 0xafe   :  { %v1398_v38 = vadd.f32 -1.4531521, %v1394_v62  ;;  %v1352_v1 = vmul.f32 %v4392_v15, %v1351_v31  ;;  %vm1374_vm6 = vcmp.eq.f32.partialorder %v1373_v42, 8.507059e+37 }
 0xaff   :  { %v1329_v8 = vmul.f32 0.3275911, %v5083_v21  ;;  %v1433_v14 = vsub.f32 0.0, %v5083_v21 }
 0xb00   :  { %v1402_v2 = vmul.f32 %v1398_v38, %v1347_v61  ;;  %v1353_v23 = vadd.f32 %v4392_v15, %v1352_v1 }
 0xb01   :  { %v4394_v6 = vpop.eup %4393  ;;  %v1333_v12 = vadd.f32 1.0, %v1329_v8 }
 0xb02   :  { %v1406_v63 = vadd.f32 1.4214138, %v1402_v2  ;;  %v1365_v49 = vmul.f32 %v4394_v6, %v1332_v22  ;;  %v1357_v13 = vsel %vm1356_vm12, %v4392_v15, %v1353_v23  ;;  %vm1370_vm14 = vweird.f32 %v4394_v6 }
 0xb03   :  { %v1362_v27 = vsel %vm1359_vm13, %v1361_v9, %v1357_v13  ;;  %4395 = vrcp.f32 %v1333_v12  ;;  %vm1371_vm5 = vmor %vm1369_vm15, %vm1370_vm14  ;;  %v1390_v16 = vand.u32 2147483648, %v1333_v12  ;;  %v1388_v39 = vand.u32 2147483647, %v1333_v12 }
 0xb04   :  { %v1410_v17 = vmul.f32 %v1406_v63, %v1347_v61  ;;  %v1366_v32 = vsub.f32 1.0, %v1365_v49  ;;  %v1395_v33 = vmul.f32 1.0614054, %v1362_v27  ;;  %4397 = vpow2.f32 %v1438_v18 }
 0xb05   :  { %4399 = vpow2.f32 %v1440_v34  ;;  %vm1384_vm8 = vweird.f32 %v1333_v12  ;;  %vm1389_vm11 = vcmp.eq.f32.partialorder %v1388_v39, 8.507059e+37  ;;  %v1442_v49 = vmul.f32 1.442695, %v1436_v0 }
 0xb06   :  { %v1414_v35 = vadd.f32 -0.28449672, %v1410_v17  ;;  %v1367_v40 = vmul.f32 %v4394_v6, %v1366_v32  ;;  %v1399_v43 = vadd.f32 -1.4531521, %v1395_v33  ;;  %v4513_v17 = vmov -1.0  }
 0xb07   :  { %v1318_v56 = vsel %vm1314_vm9, 1.0, %v4513_v17  ;;  %vm1315_vm12 = vcmp.ge.f32.partialorder %v5057_v37, 0.0  ;;  %4401 = vpow2.f32 %v1442_v49  ;;  %vm1520_vm13 = vcmask 785408  }
 0xb08   :  { %v1418_v46 = vmul.f32 %v1414_v35, %v1347_v61  ;;  %v1368_v48 = vadd.f32 %v4394_v6, %v1367_v40  ;;  %v1403_v50 = vmul.f32 %v1399_v43, %v1362_v27  ;;  %v1437_v40 = vmul.f32 %v1433_v14, %v5083_v21 }
 0xb09   :  { %v4396_v7 = vpop.eup %4395  ;;  %vm1316_vm14 = vcmp.ge.f32.partialorder %v5068_v51, 0.0  ;;  %vm1317_vm15 = vcmp.ge.f32.partialorder %v5080_v25, 0.0  ;;  %v1309_v51 = vmul.f32 0.5, %v5076_v59 }
 0xb0a   :  { %v1422_v53 = vadd.f32 0.2548296, %v1418_v46  ;;  %v1372_v55 = vsel %vm1371_vm5, %v4394_v6, %v1368_v48  ;;  %v1407_v57 = vadd.f32 1.4214138, %v1403_v50  ;;  %v1380_v44 = vmul.f32 %v4396_v7, %v1333_v12  ;;  %v4398_v60 = vpop.eup %4397 }
 0xb0b   :  { %v1377_v20 = vsel %vm1374_vm6, %v1376_v52, %v1372_v55  ;;  %vm1385_vm7 = vweird.f32 %v4396_v7  ;;  %v1391_v6 = vor.u32 1.1754944e-38, %v1390_v16  ;;  %v4400_v63 = vpop.eup %4399  ;;  %v1306_v52 = vmul.f32 0.5, %v5048_v29 }
 0xb0c   :  { %v1426_v11 = vmul.f32 %v1422_v53, %v1347_v61  ;;  %v1396_v26 = vmul.f32 1.0614054, %v1377_v20  ;;  %v1411_v15 = vmul.f32 %v1407_v57, %v1362_v27  ;;  %v1381_v62 = vsub.f32 1.0, %v1380_v44  ;;  %vm1386_vm10 = vmor %vm1384_vm8, %vm1385_vm7 }
 0xb0d   :  { %v1307_v53 = vmul.f32 0.5, %v5054_v36  ;;  %v1444_v55 = vmul.f32 1.442695, %v1437_v40  ;;  %v4402_v57 = vpop.eup %4401  ;;  %v3669_v40 = vld [vmem:[%s5450_s21 + $0x20] sm:$0xf] }
 0xb0e   :  { %v1400_v24 = vadd.f32 -1.4531521, %v1396_v26  ;;  %v1446_v22 = vmul.f32 %v4398_v60, %v1426_v11  ;;  %v1415_v19 = vadd.f32 -0.28449672, %v1411_v15  ;;  %v1382_v38 = vmul.f32 %v4396_v7, %v1381_v62 }
 0xb0f   :  { %4403 = vpow2.f32 %v1444_v55  ;;  %v1320_v60 = vsel %vm1316_vm14, 1.0, %v4513_v17  ;;  %v3675_v55 = vld [vmem:[%s5452_s29 + $0x18] sm:$0xff] }
 0xb10   :  { %v1404_v31 = vmul.f32 %v1400_v24, %v1377_v20  ;;  %v1419_v1 = vmul.f32 %v1415_v19, %v1362_v27  ;;  %v1383_v2 = vadd.f32 %v4396_v7, %v1382_v38  ;;  %v1450_v3 = vsub.f32 1.0, %v1446_v22 }
 0xb11   :  { %v1321_v19 = vsel %vm1317_vm15, 1.0, %v4513_v17  ;;  %v1308_v38 = vmul.f32 0.5, %v5065_v47 }
 0xb12   :  { %v1408_v61 = vadd.f32 1.4214138, %v1404_v31  ;;  %v1423_v4 = vadd.f32 0.2548296, %v1419_v1  ;;  %v1387_v8 = vsel %vm1386_vm10, %v4396_v7, %v1383_v2  ;;  %v1454_v32 = vmul.f32 %v1450_v3, %v1318_v56  ;;  %v3654_v2 = vld [vmem:[%s5450_s21 + $0x14] sm:$0xf] }
 0xb13   :  { %v1392_v13 = vsel %vm1389_vm11, %v1391_v6, %v1387_v8  ;;  %v1613_v25 = vunpack.c.l.b16 %v3654_v2  ;;  %v4156_v6 = vld [vmem:[%s5450_s21 + $0xc] sm:$0xff] }
 0xb14   :  { %v1412_v23 = vmul.f32 %v1408_v61, %v1377_v20  ;;  %v1427_v9 = vmul.f32 %v1423_v4, %v1362_v27  ;;  %v1397_v12 = vmul.f32 1.0614054, %v1392_v13  ;;  %v1319_v27 = vsel %vm1315_vm12, 1.0, %v4513_v17 }
 0xb15   :  { %v1458_v45 = vadd.f32 1.0, %v1454_v32  ;;  %v4404_v36 = vpop.eup %4403  ;;  %v1615_v3 = vpack.c.b16 %v1613_v25, %v1613_v25 }
 0xb16   :  { %v1416_v18 = vadd.f32 -0.28449672, %v1412_v23  ;;  %v1447_v5 = vmul.f32 %v4400_v63, %v1427_v9  ;;  %v1401_v10 = vadd.f32 -1.4531521, %v1397_v12  ;;  %v4296_v63 = vld [vmem:[%s5451_s25] ss:$0 sm:$0xff] }
 0xb17   :  { %v1462_v34 = vmul.f32 %v1458_v45, %v1306_v52  ;;  %v1621_v4 = vsel %vm380_vm3, %v1615_v3, 0  ;;  %v4157_v45 = vld [vmem:[%s5450_s21 + $0x18] sm:$0xff] }
 0xb18   :  { %v1420_v33 = vmul.f32 %v1416_v18, %v1377_v20  ;;  %v1451_v35 = vsub.f32 1.0, %v1447_v5  ;;  %v1405_v43 = vmul.f32 %v1401_v10, %v1392_v13  ;;  %1629 = vmatpush.bf16.msrb.mxu0 %v1621_v4  ;;  %v3650_v5 = vld [vmem:[%s5452_s29 + $0x8] sm:$0xff] }
 0xb1a   :  { %v1424_v42 = vadd.f32 0.2548296, %v1420_v33  ;;  %v1455_v46 = vmul.f32 %v1451_v35, %v1319_v27  ;;  %v1409_v50 = vadd.f32 1.4214138, %v1405_v43  ;;  %v4155_v35 = vld [vmem:[%s5450_s21] sm:$0xff]  ;;  %v1699_v27 = vunpack.c.l.b16 %v3669_v40 }
 0xb1c   :  { %v1428_v48 = vmul.f32 %v1424_v42, %v1377_v20  ;;  %v1459_v37 = vadd.f32 1.0, %v1455_v46  ;;  %v1413_v7 = vmul.f32 %v1409_v50, %v1392_v13  ;;  %1630 = vmatpush.bf16.msrb.mxu0 %v4156_v6  ;;  %v1701_v42 = vpack.c.b16 %v1699_v27, %v1699_v27 }
 0xb1e   :  { %v1463_v11 = vmul.f32 %v1459_v37, %v1307_v53  ;;  %v1448_v26 = vmul.f32 %v4402_v57, %v1428_v48  ;;  %v1417_v21 = vadd.f32 -0.28449672, %v1413_v7  ;;  %v1707_v43 = vsel %vm380_vm3, %v1701_v42, 0  ;;  %v3679_v7 = vld [vmem:[%s5450_s21 + $0x2c] sm:$0xf] }
 0xb1f   :  { %v1758_v57 = vunpack.c.l.b16 %v3679_v7 }
 0xb20   :  { %v1466_v44 = vpack.c.bf16 %v1463_v11, %v1462_v34  ;;  %v1421_v15 = vmul.f32 %v1417_v21, %v1392_v13  ;;  %v1452_v20 = vsub.f32 1.0, %v1448_v26  ;;  %v4158_v26 = vld [vmem:[%s5450_s21 + $0x24] sm:$0xff] }
 0xb21   :  { %v1760_v34 = vpack.c.b16 %v1758_v57, %v1758_v57  ;;  %v4301_v57 = vld [vmem:[%s5459_s6] ss:$0 sm:$0xff] }
 0xb22   :  { %3647 = vmatmul.msk.bf16.vlgmr.msrb.gmra.mxu1 %vm1520_vm13, %v1466_v44  ;;  %v1425_v29 = vadd.f32 0.2548296, %v1421_v15  ;;  %v1456_v24 = vmul.f32 %v1452_v20, %v1320_v60 }
 0xb23   :  { %v1766_v11 = vsel %vm380_vm3, %v1760_v34, 0 }
 0xb24   :  { %v1429_v41 = vmul.f32 %v1425_v29, %v1392_v13  ;;  %v1460_v16 = vadd.f32 1.0, %v1456_v24 }
 0xb26   :  { %v1449_v62 = vmul.f32 %v4404_v36, %v1429_v41  ;;  %v1464_v1 = vmul.f32 %v1460_v16, %v1308_v38 }
 0xb28   :  { %v1453_v22 = vsub.f32 1.0, %v1449_v62 }
 0xb2a   :  { %v1457_v31 = vmul.f32 %v1453_v22, %v1321_v19  ;;  %v4297_v22 = vld [vmem:[%s5453_s3] ss:$0 sm:$0xff] }
 0xb2c   :  { %v1461_v39 = vadd.f32 1.0, %v1457_v31 }
 0xb2e   :  { %v1465_v0 = vmul.f32 %v1461_v39, %v1309_v51  ;;  %v4514_v39 = vmov 48.0  }
 0xb2f   :  { %4405 = vrcp.f32 %v4514_v39 }
 0xb30   :  { %v1467_v61 = vpack.c.bf16 %v1465_v0, %v1464_v1 }
 0xb32   :  { %3648 = vmatmul.msk.bf16.gmra.mxu1 %vm1520_vm13, %v1467_v61 }
 0xb35   :  { %v4406_v1 = vpop.eup %4405 }
 0xb36   :  { %v1793_v0 = vmul.f32 48.0, %v4406_v1 }
 0xb38   :  { %v1794_v61 = vsub.f32 1.0, %v1793_v0  ;;  %v4304_v0 = vld [vmem:[%s5459_s6 + $0x1] ss:$0 sm:$0xff] }
 0xb3a   :  { %v1795_v2 = vmul.f32 %v4406_v1, %v1794_v61 }
 0xb3c   :  { %v1796_v25 = vadd.f32 %v4406_v1, %v1795_v2 }
 0xb9f   :  { %v1536_v23 = vpop.f32.mrf.mxu1 }
 0xba0   :  { %v1537_v56 = vadd.f32 %v4296_v63, %v1536_v23 }
 0xba2   :  { %v1546_v32 = vadd.f32 %v1537_v56, %v4984_v54  ;;  %v3665_v54 = vld [vmem:[%s5452_s29 + $0x10] sm:$0xff]  ;;  %v4159_v56 = vld [vmem:[%s5454_s8] sm:$0xff] }
 0xba7   :  { %v1538_v8 = vpop.f32.mrf.mxu1 }
 0xba8   :  { %v1539_v13 = vadd.f32 %v4296_v63, %v1538_v8 }
 0xbaa   :  { %v1547_v12 = vadd.f32 %v1539_v13, %v4991_v58  ;;  %v1577_v58 = vld [vmem:[%s5450_s21 + $0x8] sm:$0xf] }
 0xbab   :  { %v4163_v13 = vld [vmem:[%s5455_s14 + $0x8] sm:$0xff] }
 0xbaf   :  { %v1541_v47 = vpop.f32.mrf.mxu1 }
 0xbb0   :  { %v1542_v9 = vadd.f32 %v4296_v63, %v1541_v47 }
 0xbb2   :  { %v1548_v18 = vadd.f32 %v1542_v9, %v4998_v28  ;;  %v1641_v28 = vunpack.c.l.b16 %v1577_v58  ;;  %v4167_v9 = vld [vmem:[%s5456_s19 + $0x10] sm:$0xff]  ;;  %v4169_v58 = vld [vmem:[%s5454_s8 + $0x20] sm:$0xff] }
 0xbb4   :  { %v1643_v33 = vpack.c.b16 %v1641_v28, %v1641_v28  ;;  %v4172_v28 = vld [vmem:[%s5455_s14 + $0x20] sm:$0xff] }
 0xbb6   :  { %v1649_v10 = vsel %vm380_vm3, %v1643_v33, 0 }
 0xbb7   :  { %v1543_v59 = vpop.f32.mrf.mxu1 }
 0xbb8   :  { %v1544_v49 = vadd.f32 %v4296_v63, %v1543_v59  ;;  %v4161_v63 = vld [vmem:[%s5454_s8 + $0x10] sm:$0xff] }
 0xbb9   :  { %v4164_v59 = vld [vmem:[%s5455_s14 + $0x10] sm:$0xff] }
 0xbba   :  { %v1549_v14 = vadd.f32 %v1544_v49, %v5005_v30  ;;  %v1550_v30 = vld [vmem:[%s5452_s29] sm:$0xff]  ;;  %1905 = vmatpush.bf16.msra.mxu1 %v4164_v59  ;;  %v4160_v49 = vld [vmem:[%s5454_s8 + $0x8] sm:$0xff] }
 0xbbc   :  { %1566 = vmatpush.msrb.mxu2 %v1549_v14  ;;  %1595 = vmatpush.msrb.mxu3 %v1549_v14 }
 0xbbd   :  { %1740 = vmatpush.msra.mxu0 %v1549_v14 }
 0xbbe   :  { %1567 = vmatpush.msrb.mxu2 %v1548_v18  ;;  %1596 = vmatpush.msrb.mxu3 %v1548_v18 }
 0xbbf   :  { %1741 = vmatpush.msra.mxu0 %v1548_v18  ;;  %1906 = vmatpush.bf16.msra.mxu1 %v4163_v13 }
 0xbc0   :  { %1568 = vmatpush.msrb.mxu2 %v1547_v12  ;;  %1597 = vmatpush.msrb.mxu3 %v1547_v12 }
 0xbc1   :  { %1742 = vmatpush.msra.mxu0 %v1547_v12 }
 0xbc2   :  { %1569 = vmatpush.msrb.mxu2 %v1546_v32  ;;  %1598 = vmatpush.msrb.mxu3 %v1546_v32 }
 0xbc3   :  { %1743 = vmatpush.msra.mxu0 %v1546_v32  ;;  %3651 = vmatmul.msk.f32.vlgmr.msrb.gmra.mxu3 %vm515_vm4, %v3650_v5  ;;  %v4170_v5 = vld [vmem:[%s5454_s8 + $0x28] sm:$0xff] }
 0xbc4   :  { %1681 = vmatpush.msra.mxu3 %v1549_v14  ;;  %3649 = vmatmul.msk.f32.vlgmr.msrb.gmra.mxu2 %vm515_vm4, %v1550_v30  ;;  %v4166_v14 = vld [vmem:[%s5456_s19 + $0x8] sm:$0xff] }
 0xbc5   :  { %1657 = vmatpush.bf16.msra.mxu2 %v1649_v10  ;;  %v4173_v30 = vld [vmem:[%s5455_s14 + $0x28] sm:$0xff]  ;;  %v4168_v10 = vld [vmem:[%s5454_s8 + $0x18] sm:$0xff] }
 0xbc6   :  { %1682 = vmatpush.msra.mxu3 %v1548_v18  ;;  %v4162_v18 = vld [vmem:[%s5455_s14] sm:$0xff] }
 0xbc7   :  { %1907 = vmatpush.bf16.msra.mxu1 %v4162_v18 }
 0xbc8   :  { %1683 = vmatpush.msra.mxu3 %v1547_v12  ;;  %v4165_v12 = vld [vmem:[%s5456_s19] sm:$0xff] }
 0xbc9   :  { %1658 = vmatpush.bf16.msra.mxu2 %v4155_v35  ;;  %v4171_v35 = vld [vmem:[%s5455_s14 + $0x18] sm:$0xff] }
 0xbca   :  { %1684 = vmatpush.msra.mxu3 %v1546_v32 }
 0xbcb   :  { %3666 = vmatmul.msk.f32.vlgmr.msra.gmra.mxu3 %vm515_vm4, %v3665_v54  ;;  %2044 = vmatpush.bf16.msrb.mxu1 %v4170_v5 }
 0xbcc   :  { %1715 = vmatpush.bf16.msrb.mxu3 %v1707_v43 }
 0xbcd   :  { %1774 = vmatpush.bf16.msrb.mxu2 %v1766_v11 }
 0xbcf   :  { %2045 = vmatpush.bf16.msrb.mxu1 %v4169_v58 }
 0xbd0   :  { %1716 = vmatpush.bf16.msrb.mxu3 %v4157_v45 }
 0xbd1   :  { %1775 = vmatpush.bf16.msrb.mxu2 %v4158_v26 }
 0xbd3   :  { %2046 = vmatpush.bf16.msrb.mxu1 %v4168_v10 }
 0xbd4   :  { %1946 = vmatpush.bf16.msra.mxu3 %v4167_v9 }
 0xbd8   :  { %1947 = vmatpush.bf16.msra.mxu3 %v4166_v14 }
 0xbdc   :  { %1948 = vmatpush.bf16.msra.mxu3 %v4165_v12 }
 0xc46   :  { %v1600_v46 = vpop.f32.mrf.mxu3 }
 0xc47   :  { %v1603_v48 = vpack.c.bf16 %v1600_v46, %v1600_v46  ;;  %v1571_v50 = vpop.f32.mrf.mxu2 }
 0xc48   :  { %v1574_v52 = vpack.c.bf16 %v1571_v50, %v1571_v50 }
 0xc49   :  { %3659 = vmatmul.msk.bf16.vlgmr.msrb.gmra.mxu0 %vm242_vm1, %v1603_v48  ;;  %v4298_v48 = vld [vmem:[%s5457_s24] ss:$0 sm:$0xff] }
 0xc4a   :  { %3664 = vmatmul.msk.bf16.vlgmr.msra.gmra.mxu2 %vm242_vm1, %v1574_v52  ;;  %1864 = vmatpush.bf16.msrb.mxu0 %v4161_v63  ;;  %v4299_v52 = vld [vmem:[%s5458_s30] ss:$0 sm:$0xff] }
 0xc4e   :  { %v1686_v53 = vpop.f32.mrf.mxu3  ;;  %1865 = vmatpush.bf16.msrb.mxu0 %v4160_v49  ;;  %v4305_v49 = vld [vmem:[%s5461_s23 + $0x1] ss:$0 sm:$0xff] }
 0xc4f   :  { %v1689_v37 = vpack.c.bf16 %v1686_v53, %v1686_v53 }
 0xc51   :  { %3674 = vmatmul.msk.bf16.vlgmr.msrb.gmra.mxu3 %vm242_vm1, %v1689_v37 }
 0xc52   :  { %1866 = vmatpush.bf16.msrb.mxu0 %v4159_v56  ;;  %2087 = vmatpush.bf16.msrb.mxu3 %v4173_v30 }
 0xc56   :  { %2088 = vmatpush.bf16.msrb.mxu3 %v4172_v28 }
 0xc59   :  { %3676 = vmatmul.msk.f32.vlgmr.msra.gmra.mxu0 %vm515_vm4, %v3675_v55 }
 0xc5a   :  { %2089 = vmatpush.bf16.msrb.mxu3 %v4171_v35  ;;  %v4179_v35 = vld [vmem:[%s5454_s8 + $0x40] sm:$0xff] }
 0xcc6   :  { %v1632_v21 = vpop.f32.mrf.mxu0 }
 0xccd   :  { %v1660_v44 = vpop.f32.mrf.mxu2 }
 0xcce   :  { %v1634_v15 = vpop.f32.mrf.mxu0  ;;  %v1661_v20 = vadd.f32 %v1660_v44, %v1632_v21  ;;  %v4300_v21 = vld [vmem:[%s5460_s22] ss:$0 sm:$0xff] }
 0xccf   :  { %v4176_v15 = vld [vmem:[%s5456_s19 + $0x28] sm:$0xff] }
 0xcd4   :  { %v1718_v29 = vpop.f32.mrf.mxu3 }
 0xcd5   :  { %v1722_v41 = vadd.f32 %v1718_v29, %v1661_v20  ;;  %v1662_v36 = vpop.f32.mrf.mxu2  ;;  %v4302_v20 = vld [vmem:[%s5461_s23] ss:$0 sm:$0xff] }
 0xcd6   :  { %v1745_v60 = vpop.f32.mrf.mxu0 }
 0xcd7   :  { %v1748_v24 = vpack.c.bf16 %v1745_v60, %v1745_v60  ;;  %v4175_v60 = vld [vmem:[%s5456_s19 + $0x20] sm:$0xff] }
 0xcd9   :  { %3684 = vmatmul.msk.bf16.vlgmr.msrb.gmra.mxu2 %vm242_vm1, %v1748_v24  ;;  %vm1797_vm1 = vweird.f32 %v4406_v1 }
 0xcda   :  { %v5141_v3 = vsel %vm1797_vm1, %v4406_v1, %v1796_v25 }
 0xcdc   :  { %v1720_v62 = vpop.f32.mrf.mxu3 }
 0xd5c   :  { %v1777_v19 = vpop.f32.mrf.mxu2 }
 0xd5d   :  { %v1781_v16 = vadd.f32 %v1777_v19, %v1722_v41 }
 0xd5f   :  { %v5137_v31 = vadd.f32 %v4297_v22, %v1781_v16 }
 0xd61   :  { %v1789_v38 = vsel %vm214_vm0, %v5137_v31, 0.0 }
 0xd62   :  { %1790 = vadd.xlane.f32.xlu1 %v1789_v38  ;;  %v4174_v38 = vld [vmem:[%s5456_s19 + $0x18] sm:$0xff] }
 0xd64   :  { %v1779_v51 = vpop.f32.mrf.mxu2 }
 0xdd5   :  { %v1791_v4 = vpop.xlane.xlu1 %1790 }
 0xdd6   :  { %v1799_v6 = vmul.f32 %v5141_v3, %v1791_v4 }
 0xdd8   :  { %v1800_v23 = vsub.f32 %v5137_v31, %v1799_v6 }
 0xdda   :  { %v1801_v8 = vmul.f32 %v1800_v23, %v1800_v23 }
 0xddc   :  { %v1802_v47 = vsel %vm214_vm0, %v1801_v8, 0.0  ;;  %v5190_v8 = vld [vmem:[%s5462_s26] sm:$0xff] }
 0xddd   :  { %1803 = vadd.xlane.f32.xlu2 %v1802_v47 }
 0xe50   :  { %v1804_v32 = vpop.xlane.xlu2 %1803 }
 0xe51   :  { %v1805_v54 = vmul.f32 %v1804_v32, %v5141_v3 }
 0xe53   :  { %v1806_v33 = vadd.f32 1e-05, %v1805_v54 }
 0xe55   :  { %4407 = vrsqrt.f32 %v1806_v33  ;;  %vm1813_vm5 = vweird.f32 %v1806_v33 }
 0xe5b   :  { %v4408_v40 = vpop.eup %4407 }
 0xe5c   :  { %v1808_v27 = vmul.f32 %v4408_v40, %v1806_v33  ;;  %vm1814_vm4 = vweird.f32 %v4408_v40 }
 0xe5d   :  { %vm1815_vm6 = vmor %vm1813_vm5, %vm1814_vm4 }
 0xe5e   :  { %v1809_v42 = vmul.f32 %v4408_v40, %v1808_v27  ;;  %v4178_v27 = vld [vmem:[%s5454_s8 + $0x38] sm:$0xff] }
 0xe60   :  { %v1810_v43 = vmul.f32 0.5, %v1809_v42  ;;  %v4177_v42 = vld [vmem:[%s5454_s8 + $0x30] sm:$0xff] }
 0xe62   :  { %v1811_v45 = vsub.f32 1.5, %v1810_v43  ;;  %v4303_v43 = vld [vmem:[%s5460_s22 + $0x1] ss:$0 sm:$0xff] }
 0xe64   :  { %v1812_v46 = vmul.f32 %v4408_v40, %v1811_v45 }
 0xe66   :  { %v1816_v50 = vsel %vm1815_vm6, %v4408_v40, %v1812_v46  ;;  %vm3344_vm6 = vcmask 523264  }
 0xe67   :  { %v1817_v53 = vmul.f32 %v1816_v50, %v1800_v23 }
 0xe69   :  { %v1821_v37 = vmul.f32 %v4298_v48, %v1817_v53  ;;  %v2008_v48 = vld [vmem:[%s5463_s28] sm:$0xf] }
 0xe6a   :  { %v2217_v50 = vsel %vm380_vm3, %v2008_v48, 0 }
 0xe6b   :  { %v1825_v55 = vadd.f32 %v4299_v52, %v1821_v37 }
 0xe6d   :  { %v5164_v7 = vpack.c.bf16 %v1825_v55, %v1825_v55 }
 0xe6f   :  { %3697 = vmatmul.msk.bf16.vlgmr.msrb.gmra.mxu0 %vm214_vm0, %v5164_v7  ;;  %3710 = vmatmul.msk.bf16.vlgmr.msra.gmra.mxu1 %vm214_vm0, %v5164_v7 }
 0xe70   :  { %3723 = vmatmul.msk.bf16.vlgmr.msra.gmra.mxu3 %vm214_vm0, %v5164_v7 }
 0xe7f   :  { %3745 = vmatmul.msk.bf16.vlgmr.msrb.gmra.mxu1 %vm214_vm0, %v5164_v7 }
 0xe80   :  { %3765 = vmatmul.msk.bf16.vlgmr.msrb.gmra.mxu3 %vm214_vm0, %v5164_v7 }
 0xeec   :  { %v1868_v34 = vpop.f32.mrf.mxu0  ;;  %v1909_v11 = vpop.f32.mrf.mxu1 }
 0xeed   :  { %v1910_v26 = vadd.f32 %v4301_v57, %v1909_v11  ;;  %v1869_v41 = vadd.f32 %v4300_v21, %v1868_v34 }
 0xeef   :  { %v1955_v44 = vpack.c.bf16 %v1910_v26, %v1910_v26  ;;  %v1954_v16 = vpack.c.bf16 %v1869_v41, %v1869_v41 }
 0xef1   :  { %v1960_v29 = vsel %vm483_vm2, %v1955_v44, 0 }
 0xef2   :  { %1969 = vmatpush.bf16.xpose.msra.mxu2 %v1960_v29 }
 0xef3   :  { %v1950_v36 = vpop.f32.mrf.mxu3 }
 0xef4   :  { %v1951_v24 = vadd.f32 %v4302_v20, %v1950_v36  ;;  %v1870_v62 = vpop.f32.mrf.mxu0  ;;  %v1911_v22 = vpop.f32.mrf.mxu1 }
 0xef5   :  { %v4181_v62 = vld [vmem:[%s5455_s14 + $0x38] sm:$0xff]  ;;  %v4180_v22 = vld [vmem:[%s5455_s14 + $0x30] sm:$0xff] }
 0xef6   :  { %v1987_v19 = vpack.c.bf16 %v1951_v24, %v1951_v24  ;;  %v4182_v24 = vld [vmem:[%s5455_s14 + $0x40] sm:$0xff] }
 0xef8   :  { %v1992_v51 = vsel %vm380_vm3, %v1987_v19, 0 }
 0xef9   :  { %2001 = vmatpush.bf16.msra.mxu0 %v1992_v51  ;;  %3724 = vmatmul.msk.bf16.vlgmr.msra.gmra.mxu2 %vm483_vm2, %v1954_v16 }
 0xefa   :  { %2130 = vmatpush.bf16.msrb.mxu2 %v4176_v15 }
 0xefb   :  { %v1952_v39 = vpop.f32.mrf.mxu3 }
 0xefc   :  { %v2048_v1 = vpop.f32.mrf.mxu1  ;;  %v3788_v39 = vld [vmem:[%s5463_s28 + $0x4] sm:$0xf] }
 0xefd   :  { %v2049_v45 = vadd.f32 %v4303_v43, %v2048_v1  ;;  %v2198_v1 = vsel %vm380_vm3, %v3788_v39, 0  ;;  %v4196_v39 = vld [vmem:[%s5454_s8 + $0x68] sm:$0xff] }
 0xefe   :  { %2131 = vmatpush.bf16.msrb.mxu2 %v4175_v60  ;;  %2207 = vmatpush.bf16.msra.mxu3 %v2198_v1  ;;  %v4195_v1 = vld [vmem:[%s5454_s8 + $0x60] sm:$0xff] }
 0xeff   :  { %v2138_v46 = vpack.c.bf16 %v2049_v45, %v2049_v45 }
 0xf02   :  { %2132 = vmatpush.bf16.msrb.mxu2 %v4174_v38 }
 0xf03   :  { %v2091_v61 = vpop.f32.mrf.mxu3 }
 0xf04   :  { %v2092_v2 = vadd.f32 %v4304_v0, %v2091_v61  ;;  %v2050_v25 = vpop.f32.mrf.mxu1  ;;  %v4185_v0 = vld [vmem:[%s5456_s19 + $0x40] sm:$0xff]  ;;  %v4184_v61 = vld [vmem:[%s5456_s19 + $0x38] sm:$0xff] }
 0xf05   :  { %2353 = vmatpush.bf16.msrb.mxu3 %v4185_v0 }
 0xf06   :  { %v2139_v4 = vpack.c.bf16 %v2092_v2, %v2092_v2  ;;  %2226 = vmatpush.bf16.msra.mxu2 %v2217_v50  ;;  %v4183_v2 = vld [vmem:[%s5456_s19 + $0x30] sm:$0xff] }
 0xf08   :  { %v2144_v6 = vsel %vm483_vm2, %v2139_v4, 0  ;;  %v4188_v4 = vld [vmem:[%s5454_s8 + $0x58] sm:$0xff] }
 0xf09   :  { %2153 = vmatpush.bf16.xpose.msrb.mxu0 %v2144_v6  ;;  %3785 = vmatmul.msk.bf16.vlgmr.msrb.gmra.mxu2 %vm214_vm0, %v5164_v7 }
 0xf0a   :  { %2354 = vmatpush.bf16.msrb.mxu3 %v4184_v61  ;;  %v4200_v61 = vld [vmem:[%s5455_s14 + $0x70] sm:$0xff] }
 0xf0b   :  { %v2093_v23 = vpop.f32.mrf.mxu3 }
 0xf0c   :  { %v4187_v23 = vld [vmem:[%s5454_s8 + $0x50] sm:$0xff] }
 0xf0e   :  { %2355 = vmatpush.bf16.msrb.mxu3 %v4183_v2 }
 0xf7c   :  { %v1971_v47 = vpop.f32.mrf.mxu2 }
 0xf7d   :  { %v1972_v63 = vadd.f32 %v1971_v47, %v5190_v8 }
 0xf7f   :  { %v1975_v59 = vsel %vm483_vm2, %v1972_v63, -inf }
 0xf80   :  { %1976 = vmax.xlane.f32.xlu0 %v1975_v59  ;;  %v4307_v59 = vld [vmem:[%s5459_s6 + $0x2] ss:$0 sm:$0xff] }
 0xf84   :  { %v1973_v9 = vpop.f32.mrf.mxu2 }
 0xf8c   :  { %v2134_v13 = vpop.f32.mrf.mxu2 }
 0xf8d   :  { %v2135_v14 = vadd.f32 %v4305_v49, %v2134_v13  ;;  %v4306_v13 = vld [vmem:[%s5460_s22 + $0x2] ss:$0 sm:$0xff] }
 0xf8f   :  { %v2171_v56 = vpack.c.bf16 %v2135_v14, %v2135_v14 }
 0xf91   :  { %v2176_v18 = vsel %vm380_vm3, %v2171_v56, 0  ;;  %v4191_v56 = vld [vmem:[%s5455_s14 + $0x58] sm:$0xff] }
 0xf92   :  { %2185 = vmatpush.bf16.msra.mxu1 %v2176_v18 }
 0xf94   :  { %v2136_v12 = vpop.f32.mrf.mxu2 }
 0xf96   :  { %2310 = vmatpush.bf16.msrb.mxu1 %v4182_v24  ;;  %v4193_v24 = vld [vmem:[%s5456_s19 + $0x50] sm:$0xff] }
 0xf9a   :  { %2311 = vmatpush.bf16.msrb.mxu1 %v4181_v62  ;;  %v4192_v62 = vld [vmem:[%s5456_s19 + $0x48] sm:$0xff] }
 0xf9e   :  { %2312 = vmatpush.bf16.msrb.mxu1 %v4180_v22 }
 0xff3   :  { %v1977_v32 = vpop.xlane.xlu0 %1976 }
 0xff4   :  { %v1978_v5 = vsub.f32 %v1972_v63, %v1977_v32  ;;  %v4186_v63 = vld [vmem:[%s5454_s8 + $0x48] sm:$0xff]  ;;  %v4190_v32 = vld [vmem:[%s5455_s14 + $0x50] sm:$0xff] }
 0xff6   :  { %v1979_v30 = vmul.f32 1.442695, %v1978_v5 }
 0xff8   :  { %4409 = vpow2.f32 %v1979_v30 }
 0xffe   :  { %v4410_v54 = vpop.eup %4409 }
 0xfff   :  { %v1981_v58 = vsel %vm483_vm2, %v4410_v54, 0.0 }
0x1000   :  { %1982 = vadd.xlane.f32.xlu1 %v1981_v58 }
0x1073   :  { %v1983_v28 = vpop.xlane.xlu1 %1982 }
0x1074   :  { %4411 = vrcp.f32 %v1983_v28 }
0x107a   :  { %v4412_v33 = vpop.eup %4411 }
0x107b   :  { %v1985_v10 = vmul.f32 %v4412_v33, %v4410_v54  ;;  %v4189_v54 = vld [vmem:[%s5455_s14 + $0x48] sm:$0xff]  ;;  %v4308_v33 = vld [vmem:[%s5461_s23 + $0x2] ss:$0 sm:$0xff] }
0x107d   :  { %v1986_v40 = vpack.c.bf16 %v1985_v10, %v1985_v10  ;;  %v3853_v10 = vld [vmem:[%s5463_s28 + $0x8] sm:$0xf] }
0x107f   :  { %3725 = vmatmul.msk.bf16.vlgmr.msra.gmra.mxu0 %vm483_vm2, %v1986_v40 }
0x1080   :  { %2267 = vmatpush.bf16.msra.mxu0 %v4179_v35  ;;  %v2421_v35 = vsel %vm380_vm3, %v3853_v10, 0 }
0x1084   :  { %2268 = vmatpush.bf16.msra.mxu0 %v4178_v27 }
0x1088   :  { %2269 = vmatpush.bf16.msra.mxu0 %v4177_v42 }
0x108f   :  { %3786 = vmatmul.msk.bf16.vlgmr.msrb.gmra.mxu0 %vm483_vm2, %v2138_v46 }
0x109f   :  { %3810 = vmatmul.msk.bf16.vlgmr.msra.gmra.mxu0 %vm214_vm0, %v5164_v7 }
0x10fc   :  { %v2003_v52 = vpop.f32.mrf.mxu0 }
0x10fd   :  { %v2007_v53 = vpack.c.bf16 %v2003_v52, %v2003_v52 }
0x10ff   :  { %3790 = vmatmul.msk.bf16.vlgmr.msra.gmra.mxu2 %vm483_vm2, %v2007_v53 }
0x1104   :  { %v2005_v37 = vpop.f32.mrf.mxu0 }
0x1105   :  { %v4310_v37 = vld [vmem:[%s5459_s6 + $0x3] ss:$0 sm:$0xff] }
0x110c   :  { %v2155_v55 = vpop.f32.mrf.mxu0 }
0x110d   :  { %v2156_v57 = vadd.f32 %v2155_v55, %v5190_v8 }
0x110f   :  { %v2159_v34 = vsel %vm483_vm2, %v2156_v57, -inf }
0x1110   :  { %2160 = vmax.xlane.f32.xlu2 %v2159_v34 }
0x1114   :  { %v2157_v11 = vpop.f32.mrf.mxu0 }
0x111c   :  { %v2271_v26 = vpop.f32.mrf.mxu0 }
0x111d   :  { %v2272_v12 = vadd.f32 %v4306_v13, %v2271_v26 }
0x111f   :  { %v2361_v30 = vpack.c.bf16 %v2272_v12, %v2272_v12 }
0x1124   :  { %v2273_v21 = vpop.f32.mrf.mxu0 }
0x1182   :  { %v5210_v44 = vpop.f32.mrf.mxu2 }
0x1183   :  { %v2161_v15 = vpop.xlane.xlu2 %2160 }
0x1184   :  { %v2162_v20 = vsub.f32 %v2156_v57, %v2161_v15 }
0x1186   :  { %v2163_v29 = vmul.f32 1.442695, %v2162_v20 }
0x1188   :  { %4413 = vpow2.f32 %v2163_v29 }
0x118a   :  { %v2230_v41 = vpop.f32.mrf.mxu2 }
0x118e   :  { %v4414_v36 = vpop.eup %4413 }
0x118f   :  { %v2165_v60 = vsel %vm483_vm2, %v4414_v36, 0.0 }
0x1190   :  { %2166 = vadd.xlane.f32.xlu0 %v2165_v60  ;;  %v4194_v60 = vld [vmem:[%s5456_s19 + $0x58] sm:$0xff] }
0x1203   :  { %v2167_v19 = vpop.xlane.xlu0 %2166 }
0x1204   :  { %4415 = vrcp.f32 %v2167_v19 }
0x120a   :  { %v4416_v16 = vpop.eup %4415 }
0x120b   :  { %v2169_v38 = vmul.f32 %v4416_v16, %v4414_v36 }
0x120d   :  { %v2170_v51 = vpack.c.bf16 %v2169_v38, %v2169_v38  ;;  %v4197_v38 = vld [vmem:[%s5454_s8 + $0x70] sm:$0xff] }
0x120f   :  { %3787 = vmatmul.msk.bf16.vlgmr.msra.gmra.mxu1 %vm483_vm2, %v2170_v51 }
0x1210   :  { %2430 = vmatpush.bf16.msra.mxu1 %v2421_v35 }
0x121f   :  { %3830 = vmatmul.msk.bf16.vlgmr.msrb.gmra.mxu1 %vm214_vm0, %v5164_v7 }
0x128c   :  { %v2187_v25 = vpop.f32.mrf.mxu1 }
0x128d   :  { %v2191_v6 = vpack.c.bf16 %v2187_v25, %v2187_v25  ;;  %v4199_v25 = vld [vmem:[%s5455_s14 + $0x68] sm:$0xff] }
0x128f   :  { %3789 = vmatmul.msk.bf16.vlgmr.msra.gmra.mxu3 %vm483_vm2, %v2191_v6  ;;  %v4198_v6 = vld [vmem:[%s5455_s14 + $0x60] sm:$0xff] }
0x1290   :  { %2472 = vmatpush.bf16.msra.mxu3 %v4188_v4 }
0x1294   :  { %v2189_v47 = vpop.f32.mrf.mxu1  ;;  %2473 = vmatpush.bf16.msra.mxu3 %v4187_v23  ;;  %v4309_v23 = vld [vmem:[%s5460_s22 + $0x3] ss:$0 sm:$0xff] }
0x1298   :  { %2474 = vmatpush.bf16.msra.mxu3 %v4186_v63  ;;  %v4311_v63 = vld [vmem:[%s5461_s23 + $0x3] ss:$0 sm:$0xff] }
0x129c   :  { %v2314_v9 = vpop.f32.mrf.mxu1 }
0x129d   :  { %v2315_v49 = vadd.f32 %v4307_v59, %v2314_v9 }
0x129f   :  { %v2362_v14 = vpack.c.bf16 %v2315_v49, %v2315_v49  ;;  %3850 = vmatmul.msk.bf16.vlgmr.msrb.gmra.mxu3 %vm214_vm0, %v5164_v7 }
0x12a1   :  { %v2367_v18 = vsel %vm483_vm2, %v2362_v14, 0 }
0x12a2   :  { %2376 = vmatpush.bf16.xpose.msrb.mxu2 %v2367_v18 }
0x12a4   :  { %v2316_v5 = vpop.f32.mrf.mxu1 }
0x12a9   :  { %3851 = vmatmul.msk.bf16.vlgmr.msrb.gmra.mxu2 %vm483_vm2, %v2361_v30 }
0x12aa   :  { %2515 = vmatpush.bf16.msra.mxu2 %v4191_v56 }
0x12ae   :  { %2516 = vmatpush.bf16.msra.mxu2 %v4190_v32 }
0x12af   :  { %3874 = vmatmul.msk.bf16.vlgmr.msra.gmra.mxu3 %vm214_vm0, %v5164_v7 }
0x12b2   :  { %2517 = vmatpush.bf16.msra.mxu2 %v4189_v54  ;;  %v3917_v54 = vld [vmem:[%s5463_s28 + $0xc] sm:$0xf] }
0x12b9   :  { %3894 = vmatmul.msk.bf16.vlgmr.msra.gmra.mxu2 %vm214_vm0, %v5164_v7 }
0x1312   :  { %v5241_v58 = vpop.f32.mrf.mxu3 }
0x1313   :  { %v2229_v32 = vadd.f32 %v5210_v44, %v5241_v58 }
0x131a   :  { %v2211_v28 = vpop.f32.mrf.mxu3 }
0x131b   :  { %v2626_v28 = vsel %vm380_vm3, %v3917_v54, 0 }
0x131c   :  { %2635 = vmatpush.bf16.msrb.mxu2 %v2626_v28 }
0x1322   :  { %v2357_v40 = vpop.f32.mrf.mxu3 }
0x1323   :  { %v2358_v27 = vadd.f32 %v4308_v33, %v2357_v40 }
0x1325   :  { %v2394_v42 = vpack.c.bf16 %v2358_v27, %v2358_v27 }
0x1327   :  { %v2399_v43 = vsel %vm380_vm3, %v2394_v42, 0  ;;  %v4313_v42 = vld [vmem:[%s5459_s6 + $0x4] ss:$0 sm:$0xff] }
0x1328   :  { %2408 = vmatpush.bf16.msrb.mxu0 %v2399_v43 }
0x132a   :  { %v2359_v45 = vpop.f32.mrf.mxu3 }
0x132c   :  { %v2378_v46 = vpop.f32.mrf.mxu2  ;;  %2558 = vmatpush.bf16.msra.mxu0 %v4194_v60  ;;  %v4209_v60 = vld [vmem:[%s5455_s14 + $0x88] sm:$0xff] }
0x132d   :  { %v2379_v48 = vadd.f32 %v2378_v46, %v5190_v8 }
0x132f   :  { %v2382_v50 = vsel %vm483_vm2, %v2379_v48, -inf }
0x1330   :  { %2383 = vmax.xlane.f32.xlu1 %v2382_v50  ;;  %2559 = vmatpush.bf16.msra.mxu0 %v4193_v24 }
0x1332   :  { %v2476_v52 = vpop.f32.mrf.mxu3 }
0x1333   :  { %v2477_v47 = vadd.f32 %v4309_v23, %v2476_v52 }
0x1334   :  { %v2380_v53 = vpop.f32.mrf.mxu2  ;;  %2560 = vmatpush.bf16.msra.mxu0 %v4192_v62  ;;  %v4208_v62 = vld [vmem:[%s5455_s14 + $0x80] sm:$0xff] }
0x1335   :  { %v2566_v9 = vpack.c.bf16 %v2477_v47, %v2477_v47 }
0x133a   :  { %v2478_v55 = vpop.f32.mrf.mxu3 }
0x133b   :  { %v4203_v55 = vld [vmem:[%s5456_s19 + $0x70] sm:$0xff] }
0x133c   :  { %v2519_v57 = vpop.f32.mrf.mxu2 }
0x133d   :  { %v2520_v34 = vadd.f32 %v4310_v37, %v2519_v57  ;;  %v4202_v57 = vld [vmem:[%s5456_s19 + $0x68] sm:$0xff] }
0x133f   :  { %v2567_v11 = vpack.c.bf16 %v2520_v34, %v2520_v34  ;;  %v4201_v34 = vld [vmem:[%s5456_s19 + $0x60] sm:$0xff] }
0x1341   :  { %v2572_v26 = vsel %vm483_vm2, %v2567_v11, 0 }
0x1342   :  { %2581 = vmatpush.bf16.xpose.msrb.mxu1 %v2572_v26 }
0x1344   :  { %v2521_v21 = vpop.f32.mrf.mxu2 }
0x13a3   :  { %v2384_v15 = vpop.xlane.xlu1 %2383 }
0x13a4   :  { %v2385_v20 = vsub.f32 %v2379_v48, %v2384_v15  ;;  %v4206_v15 = vld [vmem:[%s5454_s8 + $0x88] sm:$0xff] }
0x13a6   :  { %v2386_v29 = vmul.f32 1.442695, %v2385_v20 }
0x13a8   :  { %4417 = vpow2.f32 %v2386_v29  ;;  %v4205_v29 = vld [vmem:[%s5454_s8 + $0x80] sm:$0xff] }
0x13ae   :  { %v4418_v41 = vpop.eup %4417 }
0x13af   :  { %v2388_v36 = vsel %vm483_vm2, %v4418_v41, 0.0 }
0x13b0   :  { %2389 = vadd.xlane.f32.xlu2 %v2388_v36 }
0x1423   :  { %v2390_v22 = vpop.xlane.xlu2 %2389 }
0x1424   :  { %4419 = vrcp.f32 %v2390_v22 }
0x142a   :  { %v4420_v19 = vpop.eup %4419 }
0x142b   :  { %v2392_v16 = vmul.f32 %v4420_v19, %v4418_v41  ;;  %v4204_v41 = vld [vmem:[%s5454_s8 + $0x78] sm:$0xff] }
0x142c   :  { %v4207_v19 = vld [vmem:[%s5455_s14 + $0x78] sm:$0xff] }
0x142d   :  { %v2393_v51 = vpack.c.bf16 %v2392_v16, %v2392_v16  ;;  %v4312_v16 = vld [vmem:[%s5460_s22 + $0x4] ss:$0 sm:$0xff] }
0x142f   :  { %3852 = vmatmul.msk.bf16.vlgmr.msrb.gmra.mxu0 %vm483_vm2, %v2393_v51  ;;  %v4314_v51 = vld [vmem:[%s5461_s23 + $0x4] ss:$0 sm:$0xff] }
0x1430   :  { %2677 = vmatpush.bf16.msrb.mxu0 %v4197_v38 }
0x1434   :  { %2678 = vmatpush.bf16.msrb.mxu0 %v4196_v39 }
0x1438   :  { %2679 = vmatpush.bf16.msrb.mxu0 %v4195_v1 }
0x143f   :  { %3914 = vmatmul.msk.bf16.vlgmr.msra.gmra.mxu0 %vm214_vm0, %v5164_v7 }
0x144f   :  { %3938 = vmatmul.msk.bf16.vlgmr.msrb.gmra.mxu0 %vm214_vm0, %v5164_v7 }
0x14ac   :  { %v2410_v0 = vpop.f32.mrf.mxu0 }
0x14ad   :  { %v2414_v2 = vpack.c.bf16 %v2410_v0, %v2410_v0 }
0x14af   :  { %3854 = vmatmul.msk.bf16.vlgmr.msra.gmra.mxu1 %vm483_vm2, %v2414_v2 }
0x14b0   :  { %2720 = vmatpush.bf16.msra.mxu1 %v4200_v61 }
0x14b4   :  { %v2412_v4 = vpop.f32.mrf.mxu0  ;;  %2721 = vmatpush.bf16.msra.mxu1 %v4199_v25 }
0x14b8   :  { %2722 = vmatpush.bf16.msra.mxu1 %v4198_v6 }
0x14bc   :  { %v2562_v59 = vpop.f32.mrf.mxu0 }
0x14bd   :  { %v2563_v49 = vadd.f32 %v4311_v63, %v2562_v59  ;;  %v3981_v63 = vld [vmem:[%s5463_s28 + $0x10] sm:$0xf] }
0x14be   :  { %v2831_v59 = vsel %vm380_vm3, %v3981_v63, 0 }
0x14bf   :  { %v2599_v13 = vpack.c.bf16 %v2563_v49, %v2563_v49  ;;  %3915 = vmatmul.msk.bf16.vlgmr.msrb.gmra.mxu1 %vm483_vm2, %v2566_v9 }
0x14c0   :  { %2840 = vmatpush.bf16.msrb.mxu1 %v2831_v59 }
0x14c1   :  { %v2604_v14 = vsel %vm380_vm3, %v2599_v13, 0 }
0x14c2   :  { %2613 = vmatpush.bf16.msrb.mxu3 %v2604_v14 }
0x14c4   :  { %v2564_v56 = vpop.f32.mrf.mxu0 }
0x14c6   :  { %2763 = vmatpush.bf16.msra.mxu3 %v4203_v55  ;;  %v4317_v55 = vld [vmem:[%s5461_s23 + $0x5] ss:$0 sm:$0xff] }
0x14ca   :  { %2764 = vmatpush.bf16.msra.mxu3 %v4202_v57 }
0x14cc   :  { %v2681_v18 = vpop.f32.mrf.mxu0 }
0x14cd   :  { %v2682_v38 = vadd.f32 %v4312_v16, %v2681_v18  ;;  %v4316_v18 = vld [vmem:[%s5459_s6 + $0x5] ss:$0 sm:$0xff] }
0x14ce   :  { %2765 = vmatpush.bf16.msra.mxu3 %v4201_v34 }
0x14cf   :  { %3958 = vmatmul.msk.bf16.vlgmr.msra.gmra.mxu1 %vm214_vm0, %v5164_v7  ;;  %v2771_v1 = vpack.c.bf16 %v2682_v38, %v2682_v38 }
0x14d4   :  { %v2683_v12 = vpop.f32.mrf.mxu0 }
0x152c   :  { %v2432_v5 = vpop.f32.mrf.mxu1 }
0x152d   :  { %v5275_v30 = vadd.f32 %v2432_v5, %v2229_v32 }
0x1534   :  { %v2434_v33 = vpop.f32.mrf.mxu1 }
0x153c   :  { %v2583_v10 = vpop.f32.mrf.mxu1 }
0x153d   :  { %v2584_v35 = vadd.f32 %v2583_v10, %v5190_v8 }
0x153f   :  { %v2587_v40 = vsel %vm483_vm2, %v2584_v35, -inf }
0x1540   :  { %2588 = vmax.xlane.f32.xlu0 %v2587_v40 }
0x1544   :  { %v2585_v27 = vpop.f32.mrf.mxu1 }
0x1545   :  { %v4212_v27 = vld [vmem:[%s5456_s19 + $0x88] sm:$0xff] }
0x154c   :  { %v2724_v43 = vpop.f32.mrf.mxu1 }
0x154d   :  { %v2725_v44 = vadd.f32 %v4313_v42, %v2724_v43  ;;  %v4211_v42 = vld [vmem:[%s5456_s19 + $0x80] sm:$0xff]  ;;  %v4210_v43 = vld [vmem:[%s5456_s19 + $0x78] sm:$0xff] }
0x154f   :  { %v2772_v58 = vpack.c.bf16 %v2725_v44, %v2725_v44 }
0x1551   :  { %v2777_v45 = vsel %vm483_vm2, %v2772_v58, 0 }
0x1552   :  { %2786 = vmatpush.bf16.xpose.msra.mxu2 %v2777_v45 }
0x1554   :  { %v2726_v46 = vpop.f32.mrf.mxu1 }
0x15b3   :  { %v2589_v48 = vpop.xlane.xlu0 %2588 }
0x15b4   :  { %v2590_v50 = vsub.f32 %v2584_v35, %v2589_v48 }
0x15b6   :  { %v2591_v52 = vmul.f32 1.442695, %v2590_v50 }
0x15b8   :  { %4421 = vpow2.f32 %v2591_v52 }
0x15be   :  { %v4422_v53 = vpop.eup %4421 }
0x15bf   :  { %v2593_v37 = vsel %vm483_vm2, %v4422_v53, 0.0 }
0x15c0   :  { %2594 = vadd.xlane.f32.xlu1 %v2593_v37 }
0x1633   :  { %v2595_v11 = vpop.xlane.xlu1 %2594 }
0x1634   :  { %4423 = vrcp.f32 %v2595_v11 }
0x163a   :  { %v4424_v26 = vpop.eup %4423 }
0x163b   :  { %v2597_v21 = vmul.f32 %v4424_v26, %v4422_v53  ;;  %v4315_v53 = vld [vmem:[%s5460_s22 + $0x5] ss:$0 sm:$0xff] }
0x163d   :  { %v2598_v20 = vpack.c.bf16 %v2597_v21, %v2597_v21 }
0x163f   :  { %3916 = vmatmul.msk.bf16.vlgmr.msrb.gmra.mxu3 %vm483_vm2, %v2598_v20 }
0x1640   :  { %2882 = vmatpush.bf16.msrb.mxu3 %v4206_v15 }
0x1644   :  { %2883 = vmatpush.bf16.msrb.mxu3 %v4205_v29 }
0x1648   :  { %2884 = vmatpush.bf16.msrb.mxu3 %v4204_v41 }
0x164f   :  { %3978 = vmatmul.msk.bf16.vlgmr.msra.gmra.mxu3 %vm214_vm0, %v5164_v7 }
0x165f   :  { %4002 = vmatmul.msk.bf16.vlgmr.msrb.gmra.mxu3 %vm214_vm0, %v5164_v7 }
0x16c2   :  { %v2615_v36 = vpop.f32.mrf.mxu3 }
0x16c3   :  { %v2619_v24 = vpack.c.bf16 %v2615_v36, %v2615_v36 }
0x16c5   :  { %3918 = vmatmul.msk.bf16.vlgmr.msrb.gmra.mxu2 %vm483_vm2, %v2619_v24 }
0x16c6   :  { %2925 = vmatpush.bf16.msrb.mxu2 %v4209_v60 }
0x16ca   :  { %v2617_v22 = vpop.f32.mrf.mxu3  ;;  %2926 = vmatpush.bf16.msrb.mxu2 %v4208_v62 }
0x16ce   :  { %2927 = vmatpush.bf16.msrb.mxu2 %v4207_v19 }
0x16d2   :  { %v2767_v39 = vpop.f32.mrf.mxu3 }
0x16d3   :  { %v2768_v0 = vadd.f32 %v4314_v51, %v2767_v39 }
0x16d5   :  { %v2804_v61 = vpack.c.bf16 %v2768_v0, %v2768_v0  ;;  %3979 = vmatmul.msk.bf16.vlgmr.msra.gmra.mxu2 %vm483_vm2, %v2771_v1 }
0x16d7   :  { %v2809_v2 = vsel %vm380_vm3, %v2804_v61, 0 }
0x16d8   :  { %2818 = vmatpush.bf16.msra.mxu0 %v2809_v2 }
0x16da   :  { %v2769_v25 = vpop.f32.mrf.mxu3 }
0x16dc   :  { %2968 = vmatpush.bf16.msrb.mxu0 %v4212_v27  ;;  %v4059_v27 = vld [vmem:[%s5465_s2 + $0x18] sm:$0xf0] }
0x16e0   :  { %2969 = vmatpush.bf16.msrb.mxu0 %v4211_v42 }
0x16e2   :  { %v2886_v4 = vpop.f32.mrf.mxu3 }
0x16e3   :  { %v2887_v37 = vadd.f32 %v4315_v53, %v2886_v4 }
0x16e4   :  { %2970 = vmatpush.bf16.msrb.mxu0 %v4210_v43  ;;  %v4049_v43 = vld [vmem:[%s5465_s2] sm:$0xf] }
0x16e5   :  { %4022 = vmatmul.msk.bf16.vlgmr.msrb.gmra.mxu2 %vm214_vm0, %v5164_v7  ;;  %v2976_v34 = vpack.c.bf16 %v2887_v37, %v2887_v37 }
0x16ea   :  { %v2888_v6 = vpop.f32.mrf.mxu3 }
0x1748   :  { %v2637_v23 = vpop.f32.mrf.mxu2 }
0x1749   :  { %v2641_v47 = vadd.f32 %v2637_v23, %v5275_v30 }
0x1750   :  { %v2639_v9 = vpop.f32.mrf.mxu2 }
0x1758   :  { %v2788_v49 = vpop.f32.mrf.mxu2 }
0x1759   :  { %v2789_v13 = vadd.f32 %v2788_v49, %v5190_v8 }
0x175b   :  { %v2792_v14 = vsel %vm483_vm2, %v2789_v13, -inf }
0x175c   :  { %2793 = vmax.xlane.f32.xlu2 %v2792_v14 }
0x1760   :  { %v2790_v56 = vpop.f32.mrf.mxu2 }
0x1768   :  { %v2929_v12 = vpop.f32.mrf.mxu2 }
0x1769   :  { %v2930_v32 = vadd.f32 %v4316_v18, %v2929_v12 }
0x176b   :  { %v2977_v5 = vpack.c.bf16 %v2930_v32, %v2930_v32  ;;  %v4218_v32 = vld [vmem:[%s5465_s2 + $0x24] sm:$0xf0] }
0x176d   :  { %v2982_v30 = vsel %vm483_vm2, %v2977_v5, 0  ;;  %v4217_v5 = vld [vmem:[%s5465_s2 + $0x24] sm:$0xf] }
0x176e   :  { %2991 = vmatpush.bf16.xpose.msra.mxu1 %v2982_v30 }
0x1770   :  { %v2931_v54 = vpop.f32.mrf.mxu2 }
0x1771   :  { %v4067_v54 = vld [vmem:[%s5465_s2 + $0x28] sm:$0xf0] }
0x17cf   :  { %v2794_v28 = vpop.xlane.xlu2 %2793 }
0x17d0   :  { %v2795_v33 = vsub.f32 %v2789_v13, %v2794_v28  ;;  %v4070_v28 = vor.u32 %v4217_v5, %v4067_v54  ;;  %v4228_v5 = vld [vmem:[%s5469_s15 + $0x48] sm:$0xff] }
0x17d2   :  { %v2796_v10 = vmul.f32 1.442695, %v2795_v33  ;;  %v4057_v33 = vld [vmem:[%s5465_s2 + $0x10] sm:$0xf] }
0x17d4   :  { %4425 = vpow2.f32 %v2796_v10  ;;  %v4216_v10 = vld [vmem:[%s5465_s2 + $0x14] sm:$0xf0] }
0x17da   :  { %v4426_v35 = vpop.eup %4425 }
0x17db   :  { %v2798_v40 = vsel %vm483_vm2, %v4426_v35, 0.0 }
0x17dc   :  { %2799 = vadd.xlane.f32.xlu0 %v2798_v40  ;;  %v4058_v40 = vor.u32 %v4216_v10, %v4057_v33 }
0x184f   :  { %v2800_v44 = vpop.xlane.xlu0 %2799 }
0x1850   :  { %4427 = vrcp.f32 %v2800_v44  ;;  %v4214_v44 = vld [vmem:[%s5465_s2 + $0x4] sm:$0xf0] }
0x1856   :  { %v4428_v58 = vpop.eup %4427 }
0x1857   :  { %v2802_v45 = vmul.f32 %v4428_v58, %v4426_v35  ;;  %v4215_v35 = vld [vmem:[%s5465_s2 + $0x14] sm:$0xf]  ;;  %v4213_v58 = vld [vmem:[%s5465_s2 + $0x4] sm:$0xf] }
0x1858   :  { %v4062_v42 = vor.u32 %v4215_v35, %v4059_v27 }
0x1859   :  { %v2803_v46 = vpack.c.bf16 %v2802_v45, %v2802_v45  ;;  %v4050_v45 = vor.u32 %v4214_v44, %v4049_v43  ;;  %v4227_v43 = vld [vmem:[%s5469_s15 + $0x40] sm:$0xff] }
0x185b   :  { %3980 = vmatmul.msk.bf16.vlgmr.msra.gmra.mxu0 %vm483_vm2, %v2803_v46  ;;  %v4051_v46 = vld [vmem:[%s5465_s2 + $0x8] sm:$0xf0] }
0x186b   :  { %4042 = vmatmul.msk.bf16.vlgmr.msrb.gmra.mxu0 %vm214_vm0, %v5164_v7 }
0x18d8   :  { %v2820_v48 = vpop.f32.mrf.mxu0 }
0x18d9   :  { %v2824_v50 = vpack.c.bf16 %v2820_v48, %v2820_v48  ;;  %v4054_v48 = vor.u32 %v4213_v58, %v4051_v46 }
0x18db   :  { %3982 = vmatmul.msk.bf16.vlgmr.msrb.gmra.mxu1 %vm483_vm2, %v2824_v50 }
0x18dc   :  { %3154 = vmatpush.bf16.msrb.mxu1 %v4070_v28 }
0x18e0   :  { %v2822_v52 = vpop.f32.mrf.mxu0  ;;  %3155 = vmatpush.bf16.msrb.mxu1 %v4062_v42  ;;  %v4219_v42 = vld [vmem:[%s5469_s15] sm:$0xff] }
0x18e4   :  { %3156 = vmatpush.bf16.msrb.mxu1 %v4054_v48 }
0x18e8   :  { %v2972_v57 = vpop.f32.mrf.mxu0 }
0x18e9   :  { %v2973_v11 = vadd.f32 %v4317_v55, %v2972_v57 }
0x18eb   :  { %v3009_v26 = vpack.c.bf16 %v2973_v11, %v2973_v11  ;;  %4043 = vmatmul.msk.bf16.vlgmr.msra.gmra.mxu1 %vm483_vm2, %v2976_v34 }
0x18ed   :  { %v3014_v21 = vsel %vm380_vm3, %v3009_v26, 0 }
0x18ee   :  { %3023 = vmatpush.bf16.msra.mxu3 %v3014_v21  ;;  %v4319_v21 = vld [vmem:[%s5466_s7] ss:$0 sm:$0xff] }
0x18f0   :  { %v2974_v15 = vpop.f32.mrf.mxu0 }
0x1958   :  { %v2842_v20 = vpop.f32.mrf.mxu1 }
0x1959   :  { %v2846_v7 = vadd.f32 %v2842_v20, %v2641_v47  ;;  %v4318_v47 = vld [vmem:[%s5464_s1] ss:$0 sm:$0xff] }
0x195a   :  { %v4320_v20 = vld [vmem:[%s5467_s10] ss:$0 sm:$0xff] }
0x1960   :  { %v2844_v29 = vpop.f32.mrf.mxu1 }
0x1968   :  { %v2993_v41 = vpop.f32.mrf.mxu1 }
0x1969   :  { %v2994_v36 = vadd.f32 %v2993_v41, %v5190_v8  ;;  %v4045_v8 = vld [vmem:[%s5463_s28 + $0x14] sm:$0xf] }
0x196a   :  { %v3036_v61 = vsel %vm380_vm3, %v4045_v8, 0 }
0x196b   :  { %v2997_v60 = vsel %vm483_vm2, %v2994_v36, -inf  ;;  %3045 = vmatpush.bf16.msra.mxu2 %v3036_v61 }
0x196c   :  { %2998 = vmax.xlane.f32.xlu1 %v2997_v60  ;;  %v4226_v60 = vld [vmem:[%s5469_s15 + $0x38] sm:$0xff] }
0x196d   :  { %3348 = vmatpush.bf16.msrb.mxu3 %v4226_v60 }
0x1970   :  { %v2995_v24 = vpop.f32.mrf.mxu1 }
0x19df   :  { %v2999_v62 = vpop.xlane.xlu1 %2998 }
0x19e0   :  { %v3000_v22 = vsub.f32 %v2994_v36, %v2999_v62  ;;  %v3097_v36 = vld [vmem:[%s5468_s11] sm:$0x3] }
0x19e1   :  { %v3099_v24 = vperm.slane %v3097_v36, 0  ;;  %v3100_v62 = vperm.slane %v3097_v36, 1 }
0x19e2   :  { %v3001_v19 = vmul.f32 1.442695, %v3000_v22  ;;  %v4225_v22 = vld [vmem:[%s5469_s15 + $0x30] sm:$0xff] }
0x19e3   :  { %3349 = vmatpush.bf16.msrb.mxu3 %v4225_v22 }
0x19e4   :  { %4429 = vpow2.f32 %v3001_v19 }
0x19ea   :  { %v4430_v16 = vpop.eup %4429 }
0x19eb   :  { %v3003_v38 = vsel %vm483_vm2, %v4430_v16, 0.0 }
0x19ec   :  { %3004 = vadd.xlane.f32.xlu2 %v3003_v38 }
0x1a5f   :  { %v3005_v51 = vpop.xlane.xlu2 %3004 }
0x1a60   :  { %4431 = vrcp.f32 %v3005_v51 }
0x1a66   :  { %v4432_v39 = vpop.eup %4431 }
0x1a67   :  { %v3007_v1 = vmul.f32 %v4432_v39, %v4430_v16 }
0x1a69   :  { %v3008_v0 = vpack.c.bf16 %v3007_v1, %v3007_v1 }
0x1a6b   :  { %4044 = vmatmul.msk.bf16.vlgmr.msra.gmra.mxu3 %vm483_vm2, %v3008_v0  ;;  %v4224_v0 = vld [vmem:[%s5469_s15 + $0x28] sm:$0xff] }
0x1a6c   :  { %3350 = vmatpush.bf16.msrb.mxu3 %v4224_v0 }
0x1aee   :  { %v3025_v2 = vpop.f32.mrf.mxu3 }
0x1aef   :  { %v3029_v25 = vpack.c.bf16 %v3025_v2, %v3025_v2 }
0x1af1   :  { %4046 = vmatmul.msk.bf16.vlgmr.msra.gmra.mxu2 %vm483_vm2, %v3029_v25 }
0x1af6   :  { %v3027_v4 = vpop.f32.mrf.mxu3 }
0x1b74   :  { %v3047_v6 = vpop.f32.mrf.mxu2 }
0x1b75   :  { %v3051_v23 = vadd.f32 %v3047_v6, %v2846_v7 }
0x1b77   :  { %v3052_v63 = vadd.f32 %v3051_v23, %v5137_v31  ;;  %v4065_v31 = vld [vmem:[%s5465_s2 + $0x20] sm:$0xf] }
0x1b78   :  { %v4066_v30 = vor.u32 %v4218_v32, %v4065_v31  ;;  %v4223_v23 = vld [vmem:[%s5469_s15 + $0x20] sm:$0xff]  ;;  %v4220_v32 = vld [vmem:[%s5469_s15 + $0x8] sm:$0xff] }
0x1b79   :  { %v5333_v59 = vadd.f32 %v4318_v47, %v3052_v63  ;;  %3351 = vmatpush.bf16.msrb.mxu3 %v4223_v23 }
0x1b7a   :  { %3141 = vmatpush.bf16.msra.mxu0 %v4066_v30 }
0x1b7b   :  { %v3060_v9 = vsel %vm214_vm0, %v5333_v59, 0.0 }
0x1b7c   :  { %3061 = vadd.xlane.f32.xlu0 %v3060_v9  ;;  %v3049_v49 = vpop.f32.mrf.mxu2  ;;  %v4222_v9 = vld [vmem:[%s5469_s15 + $0x18] sm:$0xff] }
0x1b7d   :  { %v4230_v49 = vld [vmem:[%s5469_s15 + $0x58] sm:$0xff]  ;;  %3352 = vmatpush.bf16.msrb.mxu3 %v4222_v9 }
0x1b7e   :  { %3142 = vmatpush.bf16.msra.mxu0 %v4058_v40  ;;  %3365 = vmatpush.bf16.msrb.mxu2 %v4230_v49 }
0x1b82   :  { %3143 = vmatpush.bf16.msra.mxu0 %v4050_v45 }
0x1bef   :  { %v3062_v13 = vpop.xlane.xlu0 %3061 }
0x1bf0   :  { %v3063_v14 = vmul.f32 %v3062_v13, %v5141_v3  ;;  %v4221_v13 = vld [vmem:[%s5469_s15 + $0x10] sm:$0xff] }
0x1bf1   :  { %3353 = vmatpush.bf16.msrb.mxu3 %v4221_v13 }
0x1bf2   :  { %v3064_v56 = vsub.f32 %v5333_v59, %v3063_v14  ;;  %v4229_v14 = vld [vmem:[%s5469_s15 + $0x50] sm:$0xff] }
0x1bf3   :  { %3366 = vmatpush.bf16.msrb.mxu2 %v4229_v14 }
0x1bf4   :  { %v3065_v18 = vmul.f32 %v3064_v56, %v3064_v56 }
0x1bf5   :  { %3354 = vmatpush.bf16.msrb.mxu3 %v4220_v32 }
0x1bf6   :  { %v3066_v12 = vsel %vm214_vm0, %v3065_v18, 0.0 }
0x1bf7   :  { %3067 = vadd.xlane.f32.xlu1 %v3066_v12  ;;  %3367 = vmatpush.bf16.msrb.mxu2 %v4228_v5 }
0x1bf9   :  { %3355 = vmatpush.bf16.msrb.mxu3 %v4219_v42  ;;  %v4231_v42 = vld [vmem:[%s4729_s4] sm:$0xff] }
0x1bfb   :  { %3368 = vmatpush.bf16.msrb.mxu2 %v4227_v43 }
0x1c6a   :  { %v3068_v50 = vpop.xlane.xlu1 %3067 }
0x1c6b   :  { %v3069_v52 = vmul.f32 %v3068_v50, %v5141_v3 }
0x1c6d   :  { %v3070_v53 = vadd.f32 1e-05, %v3069_v52 }
0x1c6f   :  { %4433 = vrsqrt.f32 %v3070_v53  ;;  %vm3077_vm7 = vweird.f32 %v3070_v53 }
0x1c75   :  { %v4434_v37 = vpop.eup %4433 }
0x1c76   :  { %v3072_v55 = vmul.f32 %v4434_v37, %v3070_v53  ;;  %vm3078_vm3 = vweird.f32 %v4434_v37 }
0x1c77   :  { %vm3079_vm8 = vmor %vm3077_vm7, %vm3078_vm3  ;;  %vm3444_vm3 = vcmask 9216  }
0x1c78   :  { %v3073_v57 = vmul.f32 %v4434_v37, %v3072_v55 }
0x1c7a   :  { %v3074_v34 = vmul.f32 0.5, %v3073_v57 }
0x1c7c   :  { %v3075_v11 = vsub.f32 1.5, %v3074_v34 }
0x1c7e   :  { %v3076_v26 = vmul.f32 %v4434_v37, %v3075_v11 }
0x1c80   :  { %v3080_v15 = vsel %vm3079_vm8, %v4434_v37, %v3076_v26 }
0x1c81   :  { %v3081_v7 = vmul.f32 %v3080_v15, %v3064_v56 }
0x1c83   :  { %v3085_v29 = vmul.f32 %v4319_v21, %v3081_v7 }
0x1c85   :  { %v3089_v3 = vadd.f32 %v4320_v20, %v3085_v29 }
0x1c87   :  { %v3090_v41 = vpack.c.bf16 %v3089_v3, %v3089_v3 }
0x1c89   :  { %4071 = vmatmul.msk.bf16.vlgmr.msra.gmra.mxu0 %vm214_vm0, %v3090_v41  ;;  %4072 = vmatmul.msk.bf16.vlgmr.msrb.gmra.mxu1 %vm214_vm0, %v3090_v41 }
0x1d06   :  { %v3145_v19 = vpop.f32.mrf.mxu0  ;;  %v3158_v16 = vpop.f32.mrf.mxu1 }
0x1d07   :  { %v5360_v38 = vadd.f32 %v3145_v19, %v3099_v24  ;;  %v5362_v51 = vadd.f32 %v3158_v16, %v3100_v62 }
0x1d09   :  { %v5365_v39 = vmul.f32 0.70710677, %v5360_v38  ;;  %v5368_v1 = vmul.f32 0.70710677, %v5362_v51 }
0x1d0b   :  { %v3170_v8 = vand.u32 2147483647, %v5365_v39  ;;  %v5373_v61 = vand.u32 2147483647, %v5368_v1  ;;  %vm3166_vm4 = vcmp.ge.f32.partialorder %v5365_v39, 0.0  ;;  %vm3167_vm5 = vcmp.ge.f32.partialorder %v5368_v1, 0.0 }
0x1d0c   :  { %v3169_v13 = vsel %vm3167_vm5, 1.0, %v4513_v17  ;;  %v3163_v39 = vmul.f32 0.5, %v5362_v51 }
0x1d0d   :  { %v3172_v2 = vmul.f32 0.3275911, %v3170_v8  ;;  %v3173_v25 = vmul.f32 0.3275911, %v5373_v61  ;;  %v3224_v52 = vsub.f32 0.0, %v3170_v8  ;;  %v3225_v57 = vsub.f32 0.0, %v5373_v61 }
0x1d0e   :  { %v3147_v4 = vpop.f32.mrf.mxu0  ;;  %v3160_v6 = vpop.f32.mrf.mxu1 }
0x1d0f   :  { %v3174_v47 = vadd.f32 1.0, %v3172_v2  ;;  %v3175_v63 = vadd.f32 1.0, %v3173_v25  ;;  %v3226_v26 = vmul.f32 %v3224_v52, %v3170_v8  ;;  %v3227_v20 = vmul.f32 %v3225_v57, %v5373_v61 }
0x1d11   :  { %4435 = vrcp.f32 %v3174_v47  ;;  %v3187_v54 = vand.u32 2147483648, %v3174_v47  ;;  %v3185_v10 = vand.u32 2147483647, %v3174_v47  ;;  %v3202_v35 = vand.u32 2147483648, %v3175_v63 }
0x1d12   :  { %4437 = vrcp.f32 %v3175_v63  ;;  %v3200_v27 = vand.u32 2147483647, %v3175_v63  ;;  %vm3181_vm11 = vweird.f32 %v3174_v47  ;;  %vm3196_vm13 = vweird.f32 %v3175_v63 }
0x1d13   :  { %v3188_v58 = vor.u32 1.1754944e-38, %v3187_v54  ;;  %vm3186_vm14 = vcmp.eq.f32.partialorder %v3185_v10, 8.507059e+37  ;;  %v3203_v48 = vor.u32 1.1754944e-38, %v3202_v35  ;;  %v3228_v3 = vmul.f32 1.442695, %v3226_v26 }
0x1d14   :  { %vm3201_vm1 = vcmp.eq.f32.partialorder %v3200_v27, 8.507059e+37  ;;  %v3230_v60 = vmul.f32 1.442695, %v3227_v20  ;;  %v4321_v54 = vld [vmem:[%s5470_s16] ss:$0 sm:$0xff] }
0x1d15   :  { %4439 = vpow2.f32 %v3228_v3  ;;  %v3375_v35 = vld [vmem:[%s4724_s27] sm:$0x3]  ;;  %s4455_s27 = sshra.s32 %s3454_s5, 4  ;;  %s4456_s27 = int_to_ptr.hbm [resolvable:$true] %s4455_s27 }
0x1d16   :  { %4441 = vpow2.f32 %v3230_v60  ;;  %p4460_p1 = scmp.lt.s32.totalorder %s4456_s27, %s4739_s20 }
0x1d17   :  { %v4436_v56 = vpop.eup %4435 }
0x1d18   :  { %v4438_v18 = vpop.eup %4437  ;;  %v3177_v12 = vmul.f32 %v4436_v56, %v3174_v47  ;;  %vm3182_vm9 = vweird.f32 %v4436_v56 }
0x1d19   :  { %v3192_v31 = vmul.f32 %v4438_v18, %v3175_v63  ;;  %vm3197_vm10 = vweird.f32 %v4438_v18  ;;  %vm3183_vm12 = vmor %vm3181_vm11, %vm3182_vm9  ;;  %v3168_v63 = vsel %vm3166_vm4, 1.0, %v4513_v17  ;;  %v4232_v17 = vld [vmem:[%s4729_s4 + $0x8] sm:$0xff] }
0x1d1a   :  { %v3178_v30 = vsub.f32 1.0, %v3177_v12  ;;  %vm3198_vm15 = vmor %vm3196_vm13, %vm3197_vm10 }
0x1d1b   :  { %v3193_v28 = vsub.f32 1.0, %v3192_v31  ;;  %v4440_v25 = vpop.eup %4439 }
0x1d1c   :  { %v3179_v33 = vmul.f32 %v4436_v56, %v3178_v30  ;;  %v4442_v6 = vpop.eup %4441  ;;  %v4233_v30 = vld [vmem:[%s4729_s4 + $0x10] sm:$0xff]  ;;  %s4457_s4 = scalar_lea.hbm %s4456_s27, 2 }
0x1d1d   :  { %v3194_v40 = vmul.f32 %v4438_v18, %v3193_v28  ;;  %3436 = vmatpush.bf16.msra.mxu1 %v4233_v30  ;;  %p4458_p0 = scmp.ne.s32.totalorder %s4456_s27, %s4457_s4  ;;  %p4461_p2 = scmp.lt.s32.totalorder %s4459_s9, %s4457_s4 }
0x1d1e   :  { %v3180_v44 = vadd.f32 %v4436_v56, %v3179_v33 }
0x1d1f   :  { %v3195_v45 = vadd.f32 %v4438_v18, %v3194_v40  ;;  %p4462_p3 = por %p4461_p2, %p4460_p1 }
0x1d20   :  { %v3184_v46 = vsel %vm3183_vm12, %v4436_v56, %v3180_v44  ;;  %v3162_v56 = vmul.f32 0.5, %v5360_v38 }
0x1d21   :  { %v3189_v50 = vsel %vm3186_vm14, %v3188_v58, %v3184_v46  ;;  %v3199_v53 = vsel %vm3198_vm15, %v4438_v18, %v3195_v45  ;;  %3437 = vmatpush.bf16.msra.mxu1 %v4232_v17  ;;  %v4322_v58 = vld [vmem:[%s4734_s12] ss:$0 sm:$0xff]  ;;  %p4463_p4 = pnand %p4462_p3, %p4458_p0 }
0x1d22   :  { %v3206_v37 = vmul.f32 1.0614054, %v3189_v50  ;;  %v3204_v55 = vsel %vm3201_vm1, %v3203_v48, %v3199_v53 }
0x1d23   :  { %v3207_v34 = vmul.f32 1.0614054, %v3204_v55 }
0x1d24   :  { %v3208_v11 = vadd.f32 -1.4531521, %v3206_v37 }
0x1d25   :  { %v3209_v21 = vadd.f32 -1.4531521, %v3207_v34  ;;  %3438 = vmatpush.bf16.msra.mxu1 %v4231_v42 }
0x1d26   :  { %v3210_v15 = vmul.f32 %v3208_v11, %v3189_v50 }
0x1d27   :  { %v3211_v7 = vmul.f32 %v3209_v21, %v3204_v55 }
0x1d28   :  { %v3212_v29 = vadd.f32 1.4214138, %v3210_v15 }
0x1d29   :  { %v3213_v41 = vadd.f32 1.4214138, %v3211_v7 }
0x1d2a   :  { %v3214_v36 = vmul.f32 %v3212_v29, %v3189_v50 }
0x1d2b   :  { %v3215_v24 = vmul.f32 %v3213_v41, %v3204_v55 }
0x1d2c   :  { %v3216_v62 = vadd.f32 -0.28449672, %v3214_v36 }
0x1d2d   :  { %v3217_v22 = vadd.f32 -0.28449672, %v3215_v24 }
0x1d2e   :  { %v3218_v19 = vmul.f32 %v3216_v62, %v3189_v50 }
0x1d2f   :  { %v3219_v16 = vmul.f32 %v3217_v22, %v3204_v55 }
0x1d30   :  { %v3220_v0 = vadd.f32 0.2548296, %v3218_v19 }
0x1d31   :  { %v3221_v2 = vadd.f32 0.2548296, %v3219_v16 }
0x1d32   :  { %v3222_v8 = vmul.f32 %v3220_v0, %v3189_v50 }
0x1d33   :  { %v3223_v4 = vmul.f32 %v3221_v2, %v3204_v55 }
0x1d34   :  { %v3232_v61 = vmul.f32 %v4440_v25, %v3222_v8 }
0x1d35   :  { %v3233_v23 = vmul.f32 %v4442_v6, %v3223_v4 }
0x1d36   :  { %v3234_v47 = vsub.f32 1.0, %v3232_v61 }
0x1d37   :  { %v3235_v9 = vsub.f32 1.0, %v3233_v23 }
0x1d38   :  { %v3236_v49 = vmul.f32 %v3234_v47, %v3168_v63 }
0x1d39   :  { %v3237_v14 = vmul.f32 %v3235_v9, %v3169_v13 }
0x1d3a   :  { %v3238_v18 = vadd.f32 1.0, %v3236_v49 }
0x1d3b   :  { %v3239_v12 = vadd.f32 1.0, %v3237_v14 }
0x1d3c   :  { %v3240_v31 = vmul.f32 %v3238_v18, %v3162_v56 }
0x1d3d   :  { %v3241_v1 = vmul.f32 %v3239_v12, %v3163_v39 }
0x1d3e   :  { %v3242_v32 = vpack.c.bf16 %v3240_v31, %v3240_v31 }
0x1d3f   :  { %v3243_v5 = vpack.c.bf16 %v3241_v1, %v3241_v1 }
0x1d40   :  { %3356 = vmatmul.bf16.vlgmr.msrb.gmra.mxu3 %v3242_v32 }
0x1d41   :  { %4121 = vmatmul.msk.bf16.vlgmr.msrb.gmra.mxu2 %vm3344_vm6, %v3243_v5 }
0x1dc3   :  { %v3357_v38 = vpop.f32.mrf.mxu3 }
0x1dc4   :  { %v3358_v28 = vadd.f32 %v4321_v54, %v3357_v38  ;;  %v3370_v33 = vpop.f32.mrf.mxu2 }
0x1dc6   :  { %v3371_v51 = vadd.f32 %v3370_v33, %v3358_v28 }
0x1dc8   :  { %v3374_v10 = vadd.f32 %v3371_v51, %v5333_v59 }
0x1dca   :  { %3394 = vmatpush.msrb.mxu0 %v3374_v10 }
0x1dcb   :  { %v3359_v40 = vpop.f32.mrf.mxu3  ;;  %4122 = vmatmul.msk.f32.vlgmr.msrb.gmra.mxu0 %vm483_vm2, %v3375_v35 }
0x1dcc   :  { %v3372_v27 = vpop.f32.mrf.mxu2 }
0x1e48   :  { %v3396_v43 = vpop.f32.mrf.mxu0 }
0x1e49   :  { %v3399_v44 = vpack.c.bf16 %v3396_v43, %v3396_v43 }
0x1e4b   :  { %4135 = vmatmul.msk.bf16.vlgmr.msra.gmra.mxu1 %vm214_vm0, %v3399_v44 }
0x1ec8   :  { %v3440_v45 = vpop.f32.mrf.mxu1 }
0x1ec9   :  { %v3441_v59 = vadd.f32 %v4322_v58, %v3440_v45 }
0x1ecb   :  { %3445 = vst.msk [vmem:[#allocation2] sm:$0x3] %vm3444_vm3, %v3441_v59 }
0x1ecc   :  { %4466 = shalt.err (!%p4463_p4)
}
0x1ecd   :  { %3456 = dma.vmem_to_hbm [thread:$0]  %s3452_s0, 32, %s3454_s5, [#allocation3]  }
0x1ed0   :  { %v3442_v46 = vpop.f32.mrf.mxu1 }
0x1ed1   :  { %4467 = dma.done.wait [#allocation3], 32  }
0x1ed2   :  { %4468 = vsyncadd [#allocation3], 4294967264 }
0x1ed3   :  { %3461 = vsyncpa [#allocation3], 1 }

</bundles_post_ra>
